<compile_context>
chip_gen: v7x
topology: tpu7x:2x2x1
jax: 0.10.0
libtpu: 0.0.40
codegen_flags: <defaults>
</compile_context>

<pallas_src>
import jax
import jax.numpy as jnp
from jax.experimental import pallas as pl
from jax.experimental.pallas import tpu as pltpu

_BN_EPS = 1e-5


def _classifier_kernel(x_ref, scale0_ref, shift0_ref, *refs):
    """Fused 6-layer classifier head (inference).

    x_ref      : [TB, 1000] backbone features (bf16 stream).
    scale0_ref : [1, 1000] f32  block-0 BatchNorm folded affine scale.
    shift0_ref : [1, 1000] f32  block-0 BatchNorm folded affine shift.
    refs = (w0, b0, w1, b1, ..., w5, b5, o_ref)
      w_i : [in_i, out_i] bf16  pre-transposed Linear weight; for i < 5 the
                                NEXT block's BatchNorm affine is folded in.
      b_i : [1, out_i]  f32     bias (next BN affine folded in for i < 5).
      o_ref : [TB, classes]
    """
    o_ref = refs[-1]
    wbs = refs[:-1]
    n_layers = len(wbs) // 2

    h = x_ref[...].astype(jnp.float32)
    # Block 0 BatchNorm1d (inference running-stats affine). BN of blocks 1..5
    # is folded into the preceding Linear's weight/bias in the wrapper.
    h = h * scale0_ref[...] + shift0_ref[...]
    for i in range(n_layers):
        w = wbs[2 * i][...]
        b = wbs[2 * i + 1][...]
        # SiLU in f32 (legal on v5e, which has no bf16 VPU/EUP).
        h = h * jax.nn.sigmoid(h)
        # Dropout: identity at inference.
        # bf16 x bf16 operands, f32 accumulation -> single-pass MXU.
        h = jnp.dot(h.astype(w.dtype), w,
                    preferred_element_type=jnp.float32) + b
    o_ref[...] = h.astype(o_ref.dtype)


def _round_up(x, m):
    return ((x + m - 1) // m) * m


def _pick_batch_tile(B, target=512):
    """Batch tile: multiple of 8 (sublane-legal), capped at `target`.
    The batch is zero-padded to a multiple of the tile, so no full-batch
    fallback block is ever emitted."""
    return min(_round_up(max(B, 1), 8), _round_up(target, 8))


def _fold_params(params):
    """Fold every BatchNorm1d (running stats) into an affine, then fold block
    i+1's affine into block i's Linear. Only block 0's affine remains as an
    explicit input scale/shift. Weights are pre-transposed and cast to bf16."""
    scales, shifts = [], []
    for p in params:
        g = p["gamma"].astype(jnp.float32)
        bt = p["beta"].astype(jnp.float32)
        mu = p["mean"].astype(jnp.float32)
        vr = p["var"].astype(jnp.float32)
        s = g * jax.lax.rsqrt(vr + _BN_EPS)
        scales.append(s)
        shifts.append(bt - mu * s)

    folded = []
    n = len(params)
    for i, p in enumerate(params):
        w = p["weight"].astype(jnp.float32)   # [out, in] torch layout
        b = p["bias"].astype(jnp.float32)     # [out]
        if i + 1 < n:
            # BN_{i+1}(W_i x + b_i) == (scale_{i+1} ⊙ W_i) x + (scale_{i+1} b_i + shift_{i+1})
            w = w * scales[i + 1][:, None]
            b = b * scales[i + 1] + shifts[i + 1]
        outdim = w.shape[0]
        folded.append((jnp.transpose(w).astype(jnp.bfloat16),  # [in, out] bf16
                       b.reshape(1, outdim)))                   # [1, out] f32
    return scales[0], shifts[0], folded


def efficientb4_classifier(feats, params, *, batch_tile=512,
                           out_dtype=jnp.float32):
    """feats : [B, 1000] backbone features (any float dtype; streamed as bf16).
    params  : list of 6 dicts (torch layout) per LinearBlock:
      gamma/beta/mean/var [indim], weight [outdim, indim], bias [outdim]."""
    B, in_dim = feats.shape
    classes = params[-1]["weight"].shape[0]

    tb = _pick_batch_tile(B, batch_tile)
    Bp = _round_up(B, tb)

    # Stream features as bf16 (halves the dominant HBM traffic); zero-pad the
    # batch so the tuned tile / software pipeline / megacore split always apply.
    x = feats.astype(jnp.bfloat16)
    if Bp != B:
        x = jnp.pad(x, ((0, Bp - B), (0, 0)))

    scale0, shift0, folded = _fold_params(params)
    kernel_inputs = [x, scale0.reshape(1, in_dim), shift0.reshape(1, in_dim)]
    for w_t, b in folded:
        kernel_inputs += [w_t, b]

    grid = (Bp // tb,)

    def build_specs(single_buffer_params):
        def const_spec(shape):
            # Constant index map -> VMEM-resident across all grid steps.
            if single_buffer_params:
                return pl.BlockSpec(shape, lambda i: (0, 0),
                                    pipeline_mode=pl.Buffered(1))
            return pl.BlockSpec(shape, lambda i: (0, 0))

        in_specs = [
            pl.BlockSpec((tb, in_dim), lambda i: (i, 0)),   # streamed x tile
            const_spec((1, in_dim)),                        # scale0
            const_spec((1, in_dim)),                        # shift0
        ]
        for w_t, b in folded:
            in_specs.append(const_spec(w_t.shape))
            in_specs.append(const_spec(b.shape))
        return in_specs

    def run(single_buffer_params):
        call = pl.pallas_call(
            _classifier_kernel,
            out_shape=jax.ShapeDtypeStruct((Bp, classes), out_dtype),
            grid=grid,
            in_specs=build_specs(single_buffer_params),
            out_specs=pl.BlockSpec((tb, classes), lambda i: (i, 0)),
            compiler_params=pltpu.CompilerParams(
                dimension_semantics=("parallel",),
                # ~6-10 MiB actually used; 48 MiB gives tile headroom on
                # v5e/v6e while staying inside v7x's 64 MiB physical VMEM.
                vmem_limit_bytes=48 * 1024 * 1024,
            ),
        )
        return call(*kernel_inputs)

    try:
        out = run(single_buffer_params=True)
    except Exception:
        # pipeline_mode=pl.Buffered(1) unsupported on this jax/libtpu combo;
        # params are only ~1.4 MiB bf16, so double-buffering them is harmless.
        out = run(single_buffer_params=False)

    return out[:B] if Bp != B else out


if __name__ == "__main__":
    # Module hyper-parameters (EfficientB4.__init__ defaults).
    CLASSES = 18
    DIMS = [1000, 500, 256, 128, 64, 32, CLASSES]   # classifier chain
    B = 2                                           # small demo batch

    key = jax.random.PRNGKey(0)
    key, kx = jax.random.split(key)
    # Synthetic "backbone output" features (timm efficientnet_b4 -> [B, 1000]).
    feats = jax.random.normal(kx, (B, DIMS[0]), dtype=jnp.float32)

    params = []
    for li in range(len(DIMS) - 1):
        indim, outdim = DIMS[li], DIMS[li + 1]
        key, kg, kb, km, kv, kw, kb2 = jax.random.split(key, 7)
        params.append(dict(
            gamma=1.0 + 0.1 * jax.random.normal(kg, (indim,), jnp.float32),
            beta=0.1 * jax.random.normal(kb, (indim,), jnp.float32),
            mean=0.1 * jax.random.normal(km, (indim,), jnp.float32),
            var=jnp.abs(1.0 + 0.1 * jax.random.normal(kv, (indim,), jnp.float32)),
            weight=0.05 * jax.random.normal(kw, (outdim, indim), jnp.float32),
            bias=0.05 * jax.random.normal(kb2, (outdim,), jnp.float32),
        ))

    out = efficientb4_classifier(feats, params)
    out = jax.block_until_ready(out)

    # Pure-JAX structural reference of the same classifier (inference
    # semantics: BN(running stats) -> SiLU -> Dropout(identity) -> Linear),
    # evaluated at the kernel's matmul precision (bf16 operands, f32 accum).
    h = feats
    for p in params:
        scale = p["gamma"] / jnp.sqrt(p["var"] + _BN_EPS)
        shift = p["beta"] - p["mean"] * scale
        h = h * scale + shift                       # BatchNorm1d (eval)
        h = h * jax.nn.sigmoid(h)                   # SiLU
        # Dropout: identity at inference.
        h = jnp.dot(h.astype(jnp.bfloat16),
                    p["weight"].T.astype(jnp.bfloat16),
                    preferred_element_type=jnp.float32) + p["bias"]
    ref = h

    assert out.shape == (B, CLASSES), out.shape
    max_err = float(jnp.max(jnp.abs(out - ref)))
    assert jnp.allclose(out, ref, rtol=3e-2, atol=3e-2), max_err
    print("KERNEL_OK")
</pallas_src>

<mosaic_0001>
module attributes {stable_mosaic.version = 11 : i64} {
  func.func @_classifier_kernel(%arg0: i32, %arg1: memref<8x1000xbf16, #tpu.memory_space<vmem>>, %arg2: memref<1x1000xf32, #tpu.memory_space<vmem>>, %arg3: memref<1x1000xf32, #tpu.memory_space<vmem>>, %arg4: memref<1000x500xbf16, #tpu.memory_space<vmem>>, %arg5: memref<1x500xf32, #tpu.memory_space<vmem>>, %arg6: memref<500x256xbf16, #tpu.memory_space<vmem>>, %arg7: memref<1x256xf32, #tpu.memory_space<vmem>>, %arg8: memref<256x128xbf16, #tpu.memory_space<vmem>>, %arg9: memref<1x128xf32, #tpu.memory_space<vmem>>, %arg10: memref<128x64xbf16, #tpu.memory_space<vmem>>, %arg11: memref<1x64xf32, #tpu.memory_space<vmem>>, %arg12: memref<64x32xbf16, #tpu.memory_space<vmem>>, %arg13: memref<1x32xf32, #tpu.memory_space<vmem>>, %arg14: memref<32x18xbf16, #tpu.memory_space<vmem>>, %arg15: memref<1x18xf32, #tpu.memory_space<vmem>>, %arg16: memref<8x18xf32, #tpu.memory_space<vmem>>) attributes {dimension_semantics = [#tpu.dimension_semantics<parallel>], iteration_bounds = array<i64: 1>, scalar_prefetch = 0 : i64, scratch_operands = 0 : i64, tpu.core_type = #tpu.core_type<tc>, window_params = [{transform_indices = @transform_0, window_bounds = array<i64: 8, 1000>}, {pipeline_mode = #tpu.pipeline_mode<synchronous>, transform_indices = @transform_1, window_bounds = array<i64: 1, 1000>}, {pipeline_mode = #tpu.pipeline_mode<synchronous>, transform_indices = @transform_2, window_bounds = array<i64: 1, 1000>}, {pipeline_mode = #tpu.pipeline_mode<synchronous>, transform_indices = @transform_3, window_bounds = array<i64: 1000, 500>}, {pipeline_mode = #tpu.pipeline_mode<synchronous>, transform_indices = @transform_4, window_bounds = array<i64: 1, 500>}, {pipeline_mode = #tpu.pipeline_mode<synchronous>, transform_indices = @transform_5, window_bounds = array<i64: 500, 256>}, {pipeline_mode = #tpu.pipeline_mode<synchronous>, transform_indices = @transform_6, window_bounds = array<i64: 1, 256>}, {pipeline_mode = #tpu.pipeline_mode<synchronous>, transform_indices = @transform_7, window_bounds = array<i64: 256, 128>}, {pipeline_mode = #tpu.pipeline_mode<synchronous>, transform_indices = @transform_8, window_bounds = array<i64: 1, 128>}, {pipeline_mode = #tpu.pipeline_mode<synchronous>, transform_indices = @transform_9, window_bounds = array<i64: 128, 64>}, {pipeline_mode = #tpu.pipeline_mode<synchronous>, transform_indices = @transform_10, window_bounds = array<i64: 1, 64>}, {pipeline_mode = #tpu.pipeline_mode<synchronous>, transform_indices = @transform_11, window_bounds = array<i64: 64, 32>}, {pipeline_mode = #tpu.pipeline_mode<synchronous>, transform_indices = @transform_12, window_bounds = array<i64: 1, 32>}, {pipeline_mode = #tpu.pipeline_mode<synchronous>, transform_indices = @transform_13, window_bounds = array<i64: 32, 18>}, {pipeline_mode = #tpu.pipeline_mode<synchronous>, transform_indices = @transform_14, window_bounds = array<i64: 1, 18>}, {transform_indices = @transform_15, window_bounds = array<i64: 8, 18>}]} {
    %c0 = arith.constant 0 : index
    %c0_0 = arith.constant 0 : index
    %0 = vector.load %arg1[%c0, %c0_0] : memref<8x1000xbf16, #tpu.memory_space<vmem>>, vector<8x1000xbf16>
    %1 = arith.extf %0 : vector<8x1000xbf16> to vector<8x1000xf32>
    %c0_1 = arith.constant 0 : index
    %c0_2 = arith.constant 0 : index
    %2 = vector.load %arg2[%c0_1, %c0_2] : memref<1x1000xf32, #tpu.memory_space<vmem>>, vector<1x1000xf32>
    %3 = vector.broadcast %2 : vector<1x1000xf32> to vector<8x1000xf32>
    %4 = arith.mulf %1, %3 : vector<8x1000xf32>
    %c0_3 = arith.constant 0 : index
    %c0_4 = arith.constant 0 : index
    %5 = vector.load %arg3[%c0_3, %c0_4] : memref<1x1000xf32, #tpu.memory_space<vmem>>, vector<1x1000xf32>
    %6 = vector.broadcast %5 : vector<1x1000xf32> to vector<8x1000xf32>
    %7 = arith.addf %4, %6 : vector<8x1000xf32>
    %c0_5 = arith.constant 0 : index
    %c0_6 = arith.constant 0 : index
    %8 = vector.load %arg4[%c0_5, %c0_6] : memref<1000x500xbf16, #tpu.memory_space<vmem>>, vector<1000x500xbf16>
    %c0_7 = arith.constant 0 : index
    %c0_8 = arith.constant 0 : index
    %9 = vector.load %arg5[%c0_7, %c0_8] : memref<1x500xf32, #tpu.memory_space<vmem>>, vector<1x500xf32>
    %10 = arith.negf %7 : vector<8x1000xf32>
    %11 = math.exp %10 : vector<8x1000xf32>
    %cst = arith.constant 1.000000e+00 : f32
    %12 = vector.broadcast %cst : f32 to vector<8x1000xf32>
    %13 = arith.addf %12, %11 : vector<8x1000xf32>
    %14 = arith.divf %12, %13 : vector<8x1000xf32>
    %15 = arith.mulf %7, %14 : vector<8x1000xf32>
    %16 = arith.truncf %15 : vector<8x1000xf32> to vector<8x1000xbf16>
    %cst_9 = arith.constant dense<0.000000e+00> : vector<8x500xf32>
    %17 = tpu.matmul %16, %8, %cst_9 {dimension_numbers = #tpu.dot_dimension_numbers<[1], [0], [0], [1], [0, 0, 1, 1], [], []>} : vector<8x1000xbf16>, vector<1000x500xbf16>, vector<8x500xf32> -> vector<8x500xf32>
    %18 = vector.broadcast %9 : vector<1x500xf32> to vector<8x500xf32>
    %19 = arith.addf %17, %18 : vector<8x500xf32>
    %c0_10 = arith.constant 0 : index
    %c0_11 = arith.constant 0 : index
    %20 = vector.load %arg6[%c0_10, %c0_11] : memref<500x256xbf16, #tpu.memory_space<vmem>>, vector<500x256xbf16>
    %c0_12 = arith.constant 0 : index
    %c0_13 = arith.constant 0 : index
    %21 = vector.load %arg7[%c0_12, %c0_13] : memref<1x256xf32, #tpu.memory_space<vmem>>, vector<1x256xf32>
    %22 = arith.negf %19 : vector<8x500xf32>
    %23 = math.exp %22 : vector<8x500xf32>
    %cst_14 = arith.constant 1.000000e+00 : f32
    %24 = vector.broadcast %cst_14 : f32 to vector<8x500xf32>
    %25 = arith.addf %24, %23 : vector<8x500xf32>
    %26 = arith.divf %24, %25 : vector<8x500xf32>
    %27 = arith.mulf %19, %26 : vector<8x500xf32>
    %28 = arith.truncf %27 : vector<8x500xf32> to vector<8x500xbf16>
    %cst_15 = arith.constant dense<0.000000e+00> : vector<8x256xf32>
    %29 = tpu.matmul %28, %20, %cst_15 {dimension_numbers = #tpu.dot_dimension_numbers<[1], [0], [0], [1], [0, 0, 1, 1], [], []>} : vector<8x500xbf16>, vector<500x256xbf16>, vector<8x256xf32> -> vector<8x256xf32>
    %30 = vector.broadcast %21 : vector<1x256xf32> to vector<8x256xf32>
    %31 = arith.addf %29, %30 : vector<8x256xf32>
    %c0_16 = arith.constant 0 : index
    %c0_17 = arith.constant 0 : index
    %32 = vector.load %arg8[%c0_16, %c0_17] : memref<256x128xbf16, #tpu.memory_space<vmem>>, vector<256x128xbf16>
    %c0_18 = arith.constant 0 : index
    %c0_19 = arith.constant 0 : index
    %33 = vector.load %arg9[%c0_18, %c0_19] : memref<1x128xf32, #tpu.memory_space<vmem>>, vector<1x128xf32>
    %34 = arith.negf %31 : vector<8x256xf32>
    %35 = math.exp %34 : vector<8x256xf32>
    %cst_20 = arith.constant 1.000000e+00 : f32
    %36 = vector.broadcast %cst_20 : f32 to vector<8x256xf32>
    %37 = arith.addf %36, %35 : vector<8x256xf32>
    %38 = arith.divf %36, %37 : vector<8x256xf32>
    %39 = arith.mulf %31, %38 : vector<8x256xf32>
    %40 = arith.truncf %39 : vector<8x256xf32> to vector<8x256xbf16>
    %cst_21 = arith.constant dense<0.000000e+00> : vector<8x128xf32>
    %41 = tpu.matmul %40, %32, %cst_21 {dimension_numbers = #tpu.dot_dimension_numbers<[1], [0], [0], [1], [0, 0, 1, 1], [], []>} : vector<8x256xbf16>, vector<256x128xbf16>, vector<8x128xf32> -> vector<8x128xf32>
    %42 = vector.broadcast %33 : vector<1x128xf32> to vector<8x128xf32>
    %43 = arith.addf %41, %42 : vector<8x128xf32>
    %c0_22 = arith.constant 0 : index
    %c0_23 = arith.constant 0 : index
    %44 = vector.load %arg10[%c0_22, %c0_23] : memref<128x64xbf16, #tpu.memory_space<vmem>>, vector<128x64xbf16>
    %c0_24 = arith.constant 0 : index
    %c0_25 = arith.constant 0 : index
    %45 = vector.load %arg11[%c0_24, %c0_25] : memref<1x64xf32, #tpu.memory_space<vmem>>, vector<1x64xf32>
    %46 = arith.negf %43 : vector<8x128xf32>
    %47 = math.exp %46 : vector<8x128xf32>
    %cst_26 = arith.constant 1.000000e+00 : f32
    %48 = vector.broadcast %cst_26 : f32 to vector<8x128xf32>
    %49 = arith.addf %48, %47 : vector<8x128xf32>
    %50 = arith.divf %48, %49 : vector<8x128xf32>
    %51 = arith.mulf %43, %50 : vector<8x128xf32>
    %52 = arith.truncf %51 : vector<8x128xf32> to vector<8x128xbf16>
    %cst_27 = arith.constant dense<0.000000e+00> : vector<8x64xf32>
    %53 = tpu.matmul %52, %44, %cst_27 {dimension_numbers = #tpu.dot_dimension_numbers<[1], [0], [0], [1], [0, 0, 1, 1], [], []>} : vector<8x128xbf16>, vector<128x64xbf16>, vector<8x64xf32> -> vector<8x64xf32>
    %54 = vector.broadcast %45 : vector<1x64xf32> to vector<8x64xf32>
    %55 = arith.addf %53, %54 : vector<8x64xf32>
    %c0_28 = arith.constant 0 : index
    %c0_29 = arith.constant 0 : index
    %56 = vector.load %arg12[%c0_28, %c0_29] : memref<64x32xbf16, #tpu.memory_space<vmem>>, vector<64x32xbf16>
    %c0_30 = arith.constant 0 : index
    %c0_31 = arith.constant 0 : index
    %57 = vector.load %arg13[%c0_30, %c0_31] : memref<1x32xf32, #tpu.memory_space<vmem>>, vector<1x32xf32>
    %58 = arith.negf %55 : vector<8x64xf32>
    %59 = math.exp %58 : vector<8x64xf32>
    %cst_32 = arith.constant 1.000000e+00 : f32
    %60 = vector.broadcast %cst_32 : f32 to vector<8x64xf32>
    %61 = arith.addf %60, %59 : vector<8x64xf32>
    %62 = arith.divf %60, %61 : vector<8x64xf32>
    %63 = arith.mulf %55, %62 : vector<8x64xf32>
    %64 = arith.truncf %63 : vector<8x64xf32> to vector<8x64xbf16>
    %cst_33 = arith.constant dense<0.000000e+00> : vector<8x32xf32>
    %65 = tpu.matmul %64, %56, %cst_33 {dimension_numbers = #tpu.dot_dimension_numbers<[1], [0], [0], [1], [0, 0, 1, 1], [], []>} : vector<8x64xbf16>, vector<64x32xbf16>, vector<8x32xf32> -> vector<8x32xf32>
    %66 = vector.broadcast %57 : vector<1x32xf32> to vector<8x32xf32>
    %67 = arith.addf %65, %66 : vector<8x32xf32>
    %c0_34 = arith.constant 0 : index
    %c0_35 = arith.constant 0 : index
    %68 = vector.load %arg14[%c0_34, %c0_35] : memref<32x18xbf16, #tpu.memory_space<vmem>>, vector<32x18xbf16>
    %c0_36 = arith.constant 0 : index
    %c0_37 = arith.constant 0 : index
    %69 = vector.load %arg15[%c0_36, %c0_37] : memref<1x18xf32, #tpu.memory_space<vmem>>, vector<1x18xf32>
    %70 = arith.negf %67 : vector<8x32xf32>
    %71 = math.exp %70 : vector<8x32xf32>
    %cst_38 = arith.constant 1.000000e+00 : f32
    %72 = vector.broadcast %cst_38 : f32 to vector<8x32xf32>
    %73 = arith.addf %72, %71 : vector<8x32xf32>
    %74 = arith.divf %72, %73 : vector<8x32xf32>
    %75 = arith.mulf %67, %74 : vector<8x32xf32>
    %76 = arith.truncf %75 : vector<8x32xf32> to vector<8x32xbf16>
    %cst_39 = arith.constant dense<0.000000e+00> : vector<8x18xf32>
    %77 = tpu.matmul %76, %68, %cst_39 {dimension_numbers = #tpu.dot_dimension_numbers<[1], [0], [0], [1], [0, 0, 1, 1], [], []>} : vector<8x32xbf16>, vector<32x18xbf16>, vector<8x18xf32> -> vector<8x18xf32>
    %78 = vector.broadcast %69 : vector<1x18xf32> to vector<8x18xf32>
    %79 = arith.addf %77, %78 : vector<8x18xf32>
    %c0_40 = arith.constant 0 : index
    %c0_41 = arith.constant 0 : index
    %80 = vector.load %arg16[%c0_40, %c0_41] : memref<8x18xf32, #tpu.memory_space<vmem>>, vector<8x18xf32>
    tpu.vector_store %arg16[%c0_40, %c0_41], %79 {strides = array<i32>} : memref<8x18xf32, #tpu.memory_space<vmem>>, vector<8x18xf32>,
    return
  }
  func.func @transform_0(%arg0: i32) -> (i32, i32) {
    %c0_i32 = arith.constant 0 : i32
    %c0_i32_0 = arith.constant 0 : i32
    return %arg0, %c0_i32 : i32, i32
  }
  func.func @transform_1(%arg0: i32) -> (i32, i32) {
    %c0_i32 = arith.constant 0 : i32
    %c0_i32_0 = arith.constant 0 : i32
    %c0_i32_1 = arith.constant 0 : i32
    return %c0_i32, %c0_i32_0 : i32, i32
  }
  func.func @transform_2(%arg0: i32) -> (i32, i32) {
    %c0_i32 = arith.constant 0 : i32
    %c0_i32_0 = arith.constant 0 : i32
    %c0_i32_1 = arith.constant 0 : i32
    return %c0_i32, %c0_i32_0 : i32, i32
  }
  func.func @transform_3(%arg0: i32) -> (i32, i32) {
    %c0_i32 = arith.constant 0 : i32
    %c0_i32_0 = arith.constant 0 : i32
    %c0_i32_1 = arith.constant 0 : i32
    return %c0_i32, %c0_i32_0 : i32, i32
  }
  func.func @transform_4(%arg0: i32) -> (i32, i32) {
    %c0_i32 = arith.constant 0 : i32
    %c0_i32_0 = arith.constant 0 : i32
    %c0_i32_1 = arith.constant 0 : i32
    return %c0_i32, %c0_i32_0 : i32, i32
  }
  func.func @transform_5(%arg0: i32) -> (i32, i32) {
    %c0_i32 = arith.constant 0 : i32
    %c0_i32_0 = arith.constant 0 : i32
    %c0_i32_1 = arith.constant 0 : i32
    return %c0_i32, %c0_i32_0 : i32, i32
  }
  func.func @transform_6(%arg0: i32) -> (i32, i32) {
    %c0_i32 = arith.constant 0 : i32
    %c0_i32_0 = arith.constant 0 : i32
    %c0_i32_1 = arith.constant 0 : i32
    return %c0_i32, %c0_i32_0 : i32, i32
  }
  func.func @transform_7(%arg0: i32) -> (i32, i32) {
    %c0_i32 = arith.constant 0 : i32
    %c0_i32_0 = arith.constant 0 : i32
    %c0_i32_1 = arith.constant 0 : i32
    return %c0_i32, %c0_i32_0 : i32, i32
  }
  func.func @transform_8(%arg0: i32) -> (i32, i32) {
    %c0_i32 = arith.constant 0 : i32
    %c0_i32_0 = arith.constant 0 : i32
    %c0_i32_1 = arith.constant 0 : i32
    return %c0_i32, %c0_i32_0 : i32, i32
  }
  func.func @transform_9(%arg0: i32) -> (i32, i32) {
    %c0_i32 = arith.constant 0 : i32
    %c0_i32_0 = arith.constant 0 : i32
    %c0_i32_1 = arith.constant 0 : i32
    return %c0_i32, %c0_i32_0 : i32, i32
  }
  func.func @transform_10(%arg0: i32) -> (i32, i32) {
    %c0_i32 = arith.constant 0 : i32
    %c0_i32_0 = arith.constant 0 : i32
    %c0_i32_1 = arith.constant 0 : i32
    return %c0_i32, %c0_i32_0 : i32, i32
  }
  func.func @transform_11(%arg0: i32) -> (i32, i32) {
    %c0_i32 = arith.constant 0 : i32
    %c0_i32_0 = arith.constant 0 : i32
    %c0_i32_1 = arith.constant 0 : i32
    return %c0_i32, %c0_i32_0 : i32, i32
  }
  func.func @transform_12(%arg0: i32) -> (i32, i32) {
    %c0_i32 = arith.constant 0 : i32
    %c0_i32_0 = arith.constant 0 : i32
    %c0_i32_1 = arith.constant 0 : i32
    return %c0_i32, %c0_i32_0 : i32, i32
  }
  func.func @transform_13(%arg0: i32) -> (i32, i32) {
    %c0_i32 = arith.constant 0 : i32
    %c0_i32_0 = arith.constant 0 : i32
    %c0_i32_1 = arith.constant 0 : i32
    return %c0_i32, %c0_i32_0 : i32, i32
  }
  func.func @transform_14(%arg0: i32) -> (i32, i32) {
    %c0_i32 = arith.constant 0 : i32
    %c0_i32_0 = arith.constant 0 : i32
    %c0_i32_1 = arith.constant 0 : i32
    return %c0_i32, %c0_i32_0 : i32, i32
  }
  func.func @transform_15(%arg0: i32) -> (i32, i32) {
    %c0_i32 = arith.constant 0 : i32
    %c0_i32_0 = arith.constant 0 : i32
    return %arg0, %c0_i32 : i32, i32
  }
}

module attributes {stable_mosaic.version = 11 : i64} {
  func.func @_classifier_kernel(%arg0: i32, %arg1: memref<8x1000xbf16, #tpu.memory_space<vmem>>, %arg2: memref<1x1000xf32, #tpu.memory_space<vmem>>, %arg3: memref<1x1000xf32, #tpu.memory_space<vmem>>, %arg4: memref<1000x500xbf16, #tpu.memory_space<vmem>>, %arg5: memref<1x500xf32, #tpu.memory_space<vmem>>, %arg6: memref<500x256xbf16, #tpu.memory_space<vmem>>, %arg7: memref<1x256xf32, #tpu.memory_space<vmem>>, %arg8: memref<256x128xbf16, #tpu.memory_space<vmem>>, %arg9: memref<1x128xf32, #tpu.memory_space<vmem>>, %arg10: memref<128x64xbf16, #tpu.memory_space<vmem>>, %arg11: memref<1x64xf32, #tpu.memory_space<vmem>>, %arg12: memref<64x32xbf16, #tpu.memory_space<vmem>>, %arg13: memref<1x32xf32, #tpu.memory_space<vmem>>, %arg14: memref<32x18xbf16, #tpu.memory_space<vmem>>, %arg15: memref<1x18xf32, #tpu.memory_space<vmem>>, %arg16: memref<8x18xf32, #tpu.memory_space<vmem>>) attributes {dimension_semantics = [#tpu.dimension_semantics<parallel>], iteration_bounds = array<i64: 1>, scalar_prefetch = 0 : i64, scratch_operands = 0 : i64, tpu.core_type = #tpu.core_type<tc>, window_params = [{transform_indices = @transform_0, window_bounds = array<i64: 8, 1000>}, {pipeline_mode = #tpu.pipeline_mode<synchronous>, transform_indices = @transform_1, window_bounds = array<i64: 1, 1000>}, {pipeline_mode = #tpu.pipeline_mode<synchronous>, transform_indices = @transform_2, window_bounds = array<i64: 1, 1000>}, {pipeline_mode = #tpu.pipeline_mode<synchronous>, transform_indices = @transform_3, window_bounds = array<i64: 1000, 500>}, {pipeline_mode = #tpu.pipeline_mode<synchronous>, transform_indices = @transform_4, window_bounds = array<i64: 1, 500>}, {pipeline_mode = #tpu.pipeline_mode<synchronous>, transform_indices = @transform_5, window_bounds = array<i64: 500, 256>}, {pipeline_mode = #tpu.pipeline_mode<synchronous>, transform_indices = @transform_6, window_bounds = array<i64: 1, 256>}, {pipeline_mode = #tpu.pipeline_mode<synchronous>, transform_indices = @transform_7, window_bounds = array<i64: 256, 128>}, {pipeline_mode = #tpu.pipeline_mode<synchronous>, transform_indices = @transform_8, window_bounds = array<i64: 1, 128>}, {pipeline_mode = #tpu.pipeline_mode<synchronous>, transform_indices = @transform_9, window_bounds = array<i64: 128, 64>}, {pipeline_mode = #tpu.pipeline_mode<synchronous>, transform_indices = @transform_10, window_bounds = array<i64: 1, 64>}, {pipeline_mode = #tpu.pipeline_mode<synchronous>, transform_indices = @transform_11, window_bounds = array<i64: 64, 32>}, {pipeline_mode = #tpu.pipeline_mode<synchronous>, transform_indices = @transform_12, window_bounds = array<i64: 1, 32>}, {pipeline_mode = #tpu.pipeline_mode<synchronous>, transform_indices = @transform_13, window_bounds = array<i64: 32, 18>}, {pipeline_mode = #tpu.pipeline_mode<synchronous>, transform_indices = @transform_14, window_bounds = array<i64: 1, 18>}, {transform_indices = @transform_15, window_bounds = array<i64: 8, 18>}]} {
    %c0 = arith.constant 0 : index
    %c0_0 = arith.constant 0 : index
    %0 = vector.load %arg1[%c0, %c0_0] : memref<8x1000xbf16, #tpu.memory_space<vmem>>, vector<8x1000xbf16>
    %1 = arith.extf %0 : vector<8x1000xbf16> to vector<8x1000xf32>
    %c0_1 = arith.constant 0 : index
    %c0_2 = arith.constant 0 : index
    %2 = vector.load %arg2[%c0_1, %c0_2] : memref<1x1000xf32, #tpu.memory_space<vmem>>, vector<1x1000xf32>
    %3 = vector.broadcast %2 : vector<1x1000xf32> to vector<8x1000xf32>
    %4 = arith.mulf %1, %3 : vector<8x1000xf32>
    %c0_3 = arith.constant 0 : index
    %c0_4 = arith.constant 0 : index
    %5 = vector.load %arg3[%c0_3, %c0_4] : memref<1x1000xf32, #tpu.memory_space<vmem>>, vector<1x1000xf32>
    %6 = vector.broadcast %5 : vector<1x1000xf32> to vector<8x1000xf32>
    %7 = arith.addf %4, %6 : vector<8x1000xf32>
    %c0_5 = arith.constant 0 : index
    %c0_6 = arith.constant 0 : index
    %8 = vector.load %arg4[%c0_5, %c0_6] : memref<1000x500xbf16, #tpu.memory_space<vmem>>, vector<1000x500xbf16>
    %c0_7 = arith.constant 0 : index
    %c0_8 = arith.constant 0 : index
    %9 = vector.load %arg5[%c0_7, %c0_8] : memref<1x500xf32, #tpu.memory_space<vmem>>, vector<1x500xf32>
    %10 = arith.negf %7 : vector<8x1000xf32>
    %11 = math.exp %10 : vector<8x1000xf32>
    %cst = arith.constant 1.000000e+00 : f32
    %12 = vector.broadcast %cst : f32 to vector<8x1000xf32>
    %13 = arith.addf %12, %11 : vector<8x1000xf32>
    %14 = arith.divf %12, %13 : vector<8x1000xf32>
    %15 = arith.mulf %7, %14 : vector<8x1000xf32>
    %16 = arith.truncf %15 : vector<8x1000xf32> to vector<8x1000xbf16>
    %cst_9 = arith.constant dense<0.000000e+00> : vector<8x500xf32>
    %17 = tpu.matmul %16, %8, %cst_9 {dimension_numbers = #tpu.dot_dimension_numbers<[1], [0], [0], [1], [0, 0, 1, 1], [], []>} : vector<8x1000xbf16>, vector<1000x500xbf16>, vector<8x500xf32> -> vector<8x500xf32>
    %18 = vector.broadcast %9 : vector<1x500xf32> to vector<8x500xf32>
    %19 = arith.addf %17, %18 : vector<8x500xf32>
    %c0_10 = arith.constant 0 : index
    %c0_11 = arith.constant 0 : index
    %20 = vector.load %arg6[%c0_10, %c0_11] : memref<500x256xbf16, #tpu.memory_space<vmem>>, vector<500x256xbf16>
    %c0_12 = arith.constant 0 : index
    %c0_13 = arith.constant 0 : index
    %21 = vector.load %arg7[%c0_12, %c0_13] : memref<1x256xf32, #tpu.memory_space<vmem>>, vector<1x256xf32>
    %22 = arith.negf %19 : vector<8x500xf32>
    %23 = math.exp %22 : vector<8x500xf32>
    %cst_14 = arith.constant 1.000000e+00 : f32
    %24 = vector.broadcast %cst_14 : f32 to vector<8x500xf32>
    %25 = arith.addf %24, %23 : vector<8x500xf32>
    %26 = arith.divf %24, %25 : vector<8x500xf32>
    %27 = arith.mulf %19, %26 : vector<8x500xf32>
    %28 = arith.truncf %27 : vector<8x500xf32> to vector<8x500xbf16>
    %cst_15 = arith.constant dense<0.000000e+00> : vector<8x256xf32>
    %29 = tpu.matmul %28, %20, %cst_15 {dimension_numbers = #tpu.dot_dimension_numbers<[1], [0], [0], [1], [0, 0, 1, 1], [], []>} : vector<8x500xbf16>, vector<500x256xbf16>, vector<8x256xf32> -> vector<8x256xf32>
    %30 = vector.broadcast %21 : vector<1x256xf32> to vector<8x256xf32>
    %31 = arith.addf %29, %30 : vector<8x256xf32>
    %c0_16 = arith.constant 0 : index
    %c0_17 = arith.constant 0 : index
    %32 = vector.load %arg8[%c0_16, %c0_17] : memref<256x128xbf16, #tpu.memory_space<vmem>>, vector<256x128xbf16>
    %c0_18 = arith.constant 0 : index
    %c0_19 = arith.constant 0 : index
    %33 = vector.load %arg9[%c0_18, %c0_19] : memref<1x128xf32, #tpu.memory_space<vmem>>, vector<1x128xf32>
    %34 = arith.negf %31 : vector<8x256xf32>
    %35 = math.exp %34 : vector<8x256xf32>
    %cst_20 = arith.constant 1.000000e+00 : f32
    %36 = vector.broadcast %cst_20 : f32 to vector<8x256xf32>
    %37 = arith.addf %36, %35 : vector<8x256xf32>
    %38 = arith.divf %36, %37 : vector<8x256xf32>
    %39 = arith.mulf %31, %38 : vector<8x256xf32>
    %40 = arith.truncf %39 : vector<8x256xf32> to vector<8x256xbf16>
    %cst_21 = arith.constant dense<0.000000e+00> : vector<8x128xf32>
    %41 = tpu.matmul %40, %32, %cst_21 {dimension_numbers = #tpu.dot_dimension_numbers<[1], [0], [0], [1], [0, 0, 1, 1], [], []>} : vector<8x256xbf16>, vector<256x128xbf16>, vector<8x128xf32> -> vector<8x128xf32>
    %42 = vector.broadcast %33 : vector<1x128xf32> to vector<8x128xf32>
    %43 = arith.addf %41, %42 : vector<8x128xf32>
    %c0_22 = arith.constant 0 : index
    %c0_23 = arith.constant 0 : index
    %44 = vector.load %arg10[%c0_22, %c0_23] : memref<128x64xbf16, #tpu.memory_space<vmem>>, vector<128x64xbf16>
    %c0_24 = arith.constant 0 : index
    %c0_25 = arith.constant 0 : index
    %45 = vector.load %arg11[%c0_24, %c0_25] : memref<1x64xf32, #tpu.memory_space<vmem>>, vector<1x64xf32>
    %46 = arith.negf %43 : vector<8x128xf32>
    %47 = math.exp %46 : vector<8x128xf32>
    %cst_26 = arith.constant 1.000000e+00 : f32
    %48 = vector.broadcast %cst_26 : f32 to vector<8x128xf32>
    %49 = arith.addf %48, %47 : vector<8x128xf32>
    %50 = arith.divf %48, %49 : vector<8x128xf32>
    %51 = arith.mulf %43, %50 : vector<8x128xf32>
    %52 = arith.truncf %51 : vector<8x128xf32> to vector<8x128xbf16>
    %cst_27 = arith.constant dense<0.000000e+00> : vector<8x64xf32>
    %53 = tpu.matmul %52, %44, %cst_27 {dimension_numbers = #tpu.dot_dimension_numbers<[1], [0], [0], [1], [0, 0, 1, 1], [], []>} : vector<8x128xbf16>, vector<128x64xbf16>, vector<8x64xf32> -> vector<8x64xf32>
    %54 = vector.broadcast %45 : vector<1x64xf32> to vector<8x64xf32>
    %55 = arith.addf %53, %54 : vector<8x64xf32>
    %c0_28 = arith.constant 0 : index
    %c0_29 = arith.constant 0 : index
    %56 = vector.load %arg12[%c0_28, %c0_29] : memref<64x32xbf16, #tpu.memory_space<vmem>>, vector<64x32xbf16>
    %c0_30 = arith.constant 0 : index
    %c0_31 = arith.constant 0 : index
    %57 = vector.load %arg13[%c0_30, %c0_31] : memref<1x32xf32, #tpu.memory_space<vmem>>, vector<1x32xf32>
    %58 = arith.negf %55 : vector<8x64xf32>
    %59 = math.exp %58 : vector<8x64xf32>
    %cst_32 = arith.constant 1.000000e+00 : f32
    %60 = vector.broadcast %cst_32 : f32 to vector<8x64xf32>
    %61 = arith.addf %60, %59 : vector<8x64xf32>
    %62 = arith.divf %60, %61 : vector<8x64xf32>
    %63 = arith.mulf %55, %62 : vector<8x64xf32>
    %64 = arith.truncf %63 : vector<8x64xf32> to vector<8x64xbf16>
    %cst_33 = arith.constant dense<0.000000e+00> : vector<8x32xf32>
    %65 = tpu.matmul %64, %56, %cst_33 {dimension_numbers = #tpu.dot_dimension_numbers<[1], [0], [0], [1], [0, 0, 1, 1], [], []>} : vector<8x64xbf16>, vector<64x32xbf16>, vector<8x32xf32> -> vector<8x32xf32>
    %66 = vector.broadcast %57 : vector<1x32xf32> to vector<8x32xf32>
    %67 = arith.addf %65, %66 : vector<8x32xf32>
    %c0_34 = arith.constant 0 : index
    %c0_35 = arith.constant 0 : index
    %68 = vector.load %arg14[%c0_34, %c0_35] : memref<32x18xbf16, #tpu.memory_space<vmem>>, vector<32x18xbf16>
    %c0_36 = arith.constant 0 : index
    %c0_37 = arith.constant 0 : index
    %69 = vector.load %arg15[%c0_36, %c0_37] : memref<1x18xf32, #tpu.memory_space<vmem>>, vector<1x18xf32>
    %70 = arith.negf %67 : vector<8x32xf32>
    %71 = math.exp %70 : vector<8x32xf32>
    %cst_38 = arith.constant 1.000000e+00 : f32
    %72 = vector.broadcast %cst_38 : f32 to vector<8x32xf32>
    %73 = arith.addf %72, %71 : vector<8x32xf32>
    %74 = arith.divf %72, %73 : vector<8x32xf32>
    %75 = arith.mulf %67, %74 : vector<8x32xf32>
    %76 = arith.truncf %75 : vector<8x32xf32> to vector<8x32xbf16>
    %cst_39 = arith.constant dense<0.000000e+00> : vector<8x18xf32>
    %77 = tpu.matmul %76, %68, %cst_39 {dimension_numbers = #tpu.dot_dimension_numbers<[1], [0], [0], [1], [0, 0, 1, 1], [], []>} : vector<8x32xbf16>, vector<32x18xbf16>, vector<8x18xf32> -> vector<8x18xf32>
    %78 = vector.broadcast %69 : vector<1x18xf32> to vector<8x18xf32>
    %79 = arith.addf %77, %78 : vector<8x18xf32>
    %c0_40 = arith.constant 0 : index
    %c0_41 = arith.constant 0 : index
    %80 = vector.load %arg16[%c0_40, %c0_41] : memref<8x18xf32, #tpu.memory_space<vmem>>, vector<8x18xf32>
    tpu.vector_store %arg16[%c0_40, %c0_41], %79 {strides = array<i32>} : memref<8x18xf32, #tpu.memory_space<vmem>>, vector<8x18xf32>,
    return
  }
  func.func @transform_0(%arg0: i32) -> (i32, i32) {
    %c0_i32 = arith.constant 0 : i32
    %c0_i32_0 = arith.constant 0 : i32
    return %arg0, %c0_i32 : i32, i32
  }
  func.func @transform_1(%arg0: i32) -> (i32, i32) {
    %c0_i32 = arith.constant 0 : i32
    %c0_i32_0 = arith.constant 0 : i32
    %c0_i32_1 = arith.constant 0 : i32
    return %c0_i32, %c0_i32_0 : i32, i32
  }
  func.func @transform_2(%arg0: i32) -> (i32, i32) {
    %c0_i32 = arith.constant 0 : i32
    %c0_i32_0 = arith.constant 0 : i32
    %c0_i32_1 = arith.constant 0 : i32
    return %c0_i32, %c0_i32_0 : i32, i32
  }
  func.func @transform_3(%arg0: i32) -> (i32, i32) {
    %c0_i32 = arith.constant 0 : i32
    %c0_i32_0 = arith.constant 0 : i32
    %c0_i32_1 = arith.constant 0 : i32
    return %c0_i32, %c0_i32_0 : i32, i32
  }
  func.func @transform_4(%arg0: i32) -> (i32, i32) {
    %c0_i32 = arith.constant 0 : i32
    %c0_i32_0 = arith.constant 0 : i32
    %c0_i32_1 = arith.constant 0 : i32
    return %c0_i32, %c0_i32_0 : i32, i32
  }
  func.func @transform_5(%arg0: i32) -> (i32, i32) {
    %c0_i32 = arith.constant 0 : i32
    %c0_i32_0 = arith.constant 0 : i32
    %c0_i32_1 = arith.constant 0 : i32
    return %c0_i32, %c0_i32_0 : i32, i32
  }
  func.func @transform_6(%arg0: i32) -> (i32, i32) {
    %c0_i32 = arith.constant 0 : i32
    %c0_i32_0 = arith.constant 0 : i32
    %c0_i32_1 = arith.constant 0 : i32
    return %c0_i32, %c0_i32_0 : i32, i32
  }
  func.func @transform_7(%arg0: i32) -> (i32, i32) {
    %c0_i32 = arith.constant 0 : i32
    %c0_i32_0 = arith.constant 0 : i32
    %c0_i32_1 = arith.constant 0 : i32
    return %c0_i32, %c0_i32_0 : i32, i32
  }
  func.func @transform_8(%arg0: i32) -> (i32, i32) {
    %c0_i32 = arith.constant 0 : i32
    %c0_i32_0 = arith.constant 0 : i32
    %c0_i32_1 = arith.constant 0 : i32
    return %c0_i32, %c0_i32_0 : i32, i32
  }
  func.func @transform_9(%arg0: i32) -> (i32, i32) {
    %c0_i32 = arith.constant 0 : i32
    %c0_i32_0 = arith.constant 0 : i32
    %c0_i32_1 = arith.constant 0 : i32
    return %c0_i32, %c0_i32_0 : i32, i32
  }
  func.func @transform_10(%arg0: i32) -> (i32, i32) {
    %c0_i32 = arith.constant 0 : i32
    %c0_i32_0 = arith.constant 0 : i32
    %c0_i32_1 = arith.constant 0 : i32
    return %c0_i32, %c0_i32_0 : i32, i32
  }
  func.func @transform_11(%arg0: i32) -> (i32, i32) {
    %c0_i32 = arith.constant 0 : i32
    %c0_i32_0 = arith.constant 0 : i32
    %c0_i32_1 = arith.constant 0 : i32
    return %c0_i32, %c0_i32_0 : i32, i32
  }
  func.func @transform_12(%arg0: i32) -> (i32, i32) {
    %c0_i32 = arith.constant 0 : i32
    %c0_i32_0 = arith.constant 0 : i32
    %c0_i32_1 = arith.constant 0 : i32
    return %c0_i32, %c0_i32_0 : i32, i32
  }
  func.func @transform_13(%arg0: i32) -> (i32, i32) {
    %c0_i32 = arith.constant 0 : i32
    %c0_i32_0 = arith.constant 0 : i32
    %c0_i32_1 = arith.constant 0 : i32
    return %c0_i32, %c0_i32_0 : i32, i32
  }
  func.func @transform_14(%arg0: i32) -> (i32, i32) {
    %c0_i32 = arith.constant 0 : i32
    %c0_i32_0 = arith.constant 0 : i32
    %c0_i32_1 = arith.constant 0 : i32
    return %c0_i32, %c0_i32_0 : i32, i32
  }
  func.func @transform_15(%arg0: i32) -> (i32, i32) {
    %c0_i32 = arith.constant 0 : i32
    %c0_i32_0 = arith.constant 0 : i32
    return %arg0, %c0_i32 : i32, i32
  }
}

</mosaic_0001>

<bundles_post_ra>
// kernel: tpu_custom_call.1
= control target key start
LH: loop header
LB: loop body
LE: loop exit
PB: predicated region body
PF: predicated region fallthrough
CT: control target
= control target key end

     0   :  { %20 = vsyncpa [#allocation3], 0  ;;  %s4901_s0 = inlined_call_operand.vmem [shape: bf16[8,1000], index: 0, kind: input, shape index: {}]   ;;  %s4902_s1 = inlined_call_operand.hbm [shape: f32[1,1000], index: 1, kind: input, shape index: {}]   ;;  %s4903_s2 = inlined_call_operand.hbm [shape: f32[1,1000], index: 2, kind: input, shape index: {}]   ;;  %s4904_s3 = inlined_call_operand.hbm [shape: bf16[1000,500], index: 3, kind: input, shape index: {}]   ;;  %s4905_s4 = inlined_call_operand.hbm [shape: f32[1,500], index: 4, kind: input, shape index: {}]   ;;  %s4906_s5 = inlined_call_operand.hbm [shape: bf16[500,256], index: 5, kind: input, shape index: {}]   ;;  %s4907_s6 = inlined_call_operand.hbm [shape: f32[1,256], index: 6, kind: input, shape index: {}]   ;;  %s4908_s7 = inlined_call_operand.vmem [shape: bf16[256,128], index: 7, kind: input, shape index: {}]   ;;  %s4909_s8 = inlined_call_operand.vmem [shape: f32[1,128], index: 8, kind: input, shape index: {}]   ;;  %s4910_s9 = inlined_call_operand.vmem [shape: bf16[128,64], index: 9, kind: input, shape index: {}]   ;;  %s4911_s10 = inlined_call_operand.hbm [shape: f32[1,64], index: 10, kind: input, shape index: {}]   ;;  %s4912_s11 = inlined_call_operand.vmem [shape: bf16[64,32], index: 11, kind: input, shape index: {}]   ;;  %s4913_s12 = inlined_call_operand.hbm [shape: f32[1,32], index: 12, kind: input, shape index: {}]   ;;  %s4914_s13 = inlined_call_operand.vmem [shape: bf16[32,18], index: 13, kind: input, shape index: {}]   ;;  %s4915_s14 = inlined_call_operand.vmem [shape: f32[1,18], index: 14, kind: input, shape index: {}]   ;;  %s4916_s15 = inlined_call_operand.hbm [shape: f32[8,18], index: 15, kind: output, shape index: {}]  }
   0x1   :  { %21 = vsyncpa [#allocation6], 0 }
   0x2   :  { %22 = vsyncpa [#allocation9], 0 }
   0x3   :  { %23 = vsyncpa [#allocation12], 0 }
   0x4   :  { %24 = vsyncpa [#allocation15], 0 }
   0x5   :  { %25 = vsyncpa [#allocation4], 0  ;;  %s4486_s18 = smov [#allocation5]   ;;  %s4487_s20 = smov [#allocation8]  }
   0x6   :  { %s44_s19 = sshll.u32 %s4486_s18, 4  ;;  %s66_s21 = sshll.u32 %s4487_s20, 4  ;;  %s45_s19 = int_to_ptr.vmem [resolvable:$true] %s44_s19  ;;  %s67_s21 = int_to_ptr.vmem [resolvable:$true] %s66_s21 }
   0x7   :  { %s4276_s24 = scalar_lea.hbm %s4903_s2, 128 }
   0x8   :  { %p4277_p0 = scmp.ne.s32.totalorder %s4903_s2, %s4276_s24  ;;  %p4280_p1 = scmp.lt.u32.totalorder %s4276_s24, %s4903_s2 }
   0xa   :  { %p4282_p2 = pnand %p4280_p1, %p4277_p0 }
   0xc   :  { %4285 = shalt.err (!%p4282_p2)
}
   0xd   :  { %s4286_s29 = scalar_lea.vmem %s45_s19, 128  ;;  %p4291_p4 = scmp.lt.s32.totalorder %s45_s19, %s45_s19 }
   0xe   :  { %p4287_p3 = scmp.ne.s32.totalorder %s45_s19, %s4286_s29  ;;  %p4292_p5 = scmp.lt.s32.totalorder %s4286_s29, %s4286_s29 }
  0x10   :  { %p4293_p6 = por %p4292_p5, %p4291_p4 }
  0x12   :  { %p4294_p7 = pnand %p4293_p6, %p4287_p3 }
  0x14   :  { %4297 = shalt.err (!%p4294_p7)
}
  0x15   :  { %47 = dma.hbm_to_vmem [thread:$0]  %s4903_s2, 128, %s45_s19, [#allocation6]  }
  0x16   :  { %s4298_s20 = scalar_lea.hbm %s4905_s4, 64 }
  0x17   :  { %p4299_p8 = scmp.ne.s32.totalorder %s4905_s4, %s4298_s20  ;;  %p4302_p9 = scmp.lt.u32.totalorder %s4298_s20, %s4905_s4 }
  0x19   :  { %p4304_p10 = pnand %p4302_p9, %p4299_p8 }
  0x1b   :  { %4307 = shalt.err (!%p4304_p10)
}
  0x1c   :  { %s4308_s26 = scalar_lea.vmem %s67_s21, 64  ;;  %p4313_p12 = scmp.lt.s32.totalorder %s67_s21, %s67_s21 }
  0x1d   :  { %p4309_p11 = scmp.ne.s32.totalorder %s67_s21, %s4308_s26  ;;  %p4314_p13 = scmp.lt.s32.totalorder %s4308_s26, %s4308_s26 }
  0x1f   :  { %p4315_p0 = por %p4314_p13, %p4313_p12 }
  0x21   :  { %p4316_p1 = pnand %p4315_p0, %p4309_p11 }
  0x23   :  { %4319 = shalt.err (!%p4316_p1)
}
  0x24   :  { %69 = dma.hbm_to_vmem [thread:$0]  %s4905_s4, 64, %s67_s21, [#allocation9]  }
  0x25   :  { %s4488_s27 = smov [#allocation11]   ;;  %s4489_s29 = smov [#allocation2]  }
  0x26   :  { %s88_s28 = sshll.u32 %s4488_s27, 4  ;;  %s34_s30 = sshll.u32 %s4489_s29, 4  ;;  %s89_s28 = int_to_ptr.vmem [resolvable:$true] %s88_s28  ;;  %s35_s30 = int_to_ptr.vmem [resolvable:$true] %s34_s30 }
  0x27   :  { %s4320_s18 = scalar_lea.hbm %s4907_s6, 32 }
  0x28   :  { %p4321_p2 = scmp.ne.s32.totalorder %s4907_s6, %s4320_s18  ;;  %p4324_p3 = scmp.lt.u32.totalorder %s4320_s18, %s4907_s6 }
  0x2a   :  { %p4326_p4 = pnand %p4324_p3, %p4321_p2 }
  0x2c   :  { %4329 = shalt.err (!%p4326_p4)
}
  0x2d   :  { %s4330_s4 = scalar_lea.vmem %s89_s28, 32  ;;  %p4335_p6 = scmp.lt.s32.totalorder %s89_s28, %s89_s28 }
  0x2e   :  { %p4331_p5 = scmp.ne.s32.totalorder %s89_s28, %s4330_s4  ;;  %p4336_p7 = scmp.lt.s32.totalorder %s4330_s4, %s4330_s4 }
  0x30   :  { %p4337_p8 = por %p4336_p7, %p4335_p6 }
  0x32   :  { %p4338_p9 = pnand %p4337_p8, %p4331_p5 }
  0x34   :  { %4341 = shalt.err (!%p4338_p9)
}
  0x35   :  { %91 = dma.hbm_to_vmem [thread:$0]  %s4907_s6, 32, %s89_s28, [#allocation12]  }
  0x36   :  { %s4342_s19 = scalar_lea.hbm %s4902_s1, 128 }
  0x37   :  { %p4343_p10 = scmp.ne.s32.totalorder %s4902_s1, %s4342_s19  ;;  %p4346_p11 = scmp.lt.u32.totalorder %s4342_s19, %s4902_s1 }
  0x39   :  { %p4348_p12 = pnand %p4346_p11, %p4343_p10 }
  0x3b   :  { %4351 = shalt.err (!%p4348_p12)
}
  0x3c   :  { %s4352_s18 = scalar_lea.vmem %s35_s30, 128  ;;  %p4357_p0 = scmp.lt.s32.totalorder %s35_s30, %s35_s30 }
  0x3d   :  { %p4353_p13 = scmp.ne.s32.totalorder %s35_s30, %s4352_s18  ;;  %p4358_p1 = scmp.lt.s32.totalorder %s4352_s18, %s4352_s18 }
  0x3f   :  { %p4359_p2 = por %p4358_p1, %p4357_p0 }
  0x41   :  { %p4360_p3 = pnand %p4359_p2, %p4353_p13 }
  0x43   :  { %4363 = shalt.err (!%p4360_p3)
}
  0x44   :  { %37 = dma.hbm_to_vmem [thread:$0]  %s4902_s1, 128, %s35_s30, [#allocation3]  }
  0x45   :  { %s4490_s20 = smov [#allocation7]   ;;  %s4364_s4 = scalar_lea.hbm %s4904_s3, 32000 }
  0x46   :  { %s53_s22 = sshll.u32 %s4490_s20, 4  ;;  %p4365_p4 = scmp.ne.s32.totalorder %s4904_s3, %s4364_s4  ;;  %s54_s22 = int_to_ptr.vmem [resolvable:$true] %s53_s22 }
  0x47   :  { %p4368_p5 = scmp.lt.u32.totalorder %s4364_s4, %s4904_s3 }
  0x49   :  { %p4370_p6 = pnand %p4368_p5, %p4365_p4 }
  0x4b   :  { %4373 = shalt.err (!%p4370_p6)
}
  0x4c   :  { %s4374_s19 = scalar_lea.vmem %s54_s22, 32000  ;;  %p4379_p8 = scmp.lt.s32.totalorder %s54_s22, %s54_s22 }
  0x4d   :  { %p4375_p7 = scmp.ne.s32.totalorder %s54_s22, %s4374_s19  ;;  %p4380_p9 = scmp.lt.s32.totalorder %s4374_s19, %s4374_s19 }
  0x4f   :  { %p4381_p10 = por %p4380_p9, %p4379_p8 }
  0x51   :  { %p4382_p11 = pnand %p4381_p10, %p4375_p7 }
  0x53   :  { %4385 = shalt.err (!%p4382_p11)
}
  0x54   :  { %s4491_s1 = smov 256   ;;  %s4492_s30 = smov 16  }
  0x55   :  { %59 = dma.hbm_to_vmem [thread:$0]  %s4904_s3, 32000, %s54_s22, [#allocation6], %s4491_s1, %s4491_s1, %s4492_s30  }
  0x56   :  { %s4493_s16 = smov [#allocation10]   ;;  %s4386_s28 = scalar_lea.hbm %s4906_s5, 8064 }
  0x57   :  { %s75_s17 = sshll.u32 %s4493_s16, 4  ;;  %p4387_p12 = scmp.ne.s32.totalorder %s4906_s5, %s4386_s28  ;;  %s76_s17 = int_to_ptr.vmem [resolvable:$true] %s75_s17 }
  0x58   :  { %p4390_p13 = scmp.lt.u32.totalorder %s4386_s28, %s4906_s5 }
  0x5a   :  { %p4392_p0 = pnand %p4390_p13, %p4387_p12 }
  0x5c   :  { %4395 = shalt.err (!%p4392_p0)
}
  0x5d   :  { %s4396_s21 = scalar_lea.vmem %s76_s17, 8064  ;;  %p4401_p2 = scmp.lt.s32.totalorder %s76_s17, %s76_s17 }
  0x5e   :  { %p4397_p1 = scmp.ne.s32.totalorder %s76_s17, %s4396_s21  ;;  %p4402_p3 = scmp.lt.s32.totalorder %s4396_s21, %s4396_s21 }
  0x60   :  { %p4403_p4 = por %p4402_p3, %p4401_p2 }
  0x62   :  { %p4404_p5 = pnand %p4403_p4, %p4397_p1 }
  0x64   :  { %4407 = shalt.err (!%p4404_p5)
}
  0x65   :  { %s4494_s3 = smov 128   ;;  %s4495_s22 = smov 8  }
  0x66   :  { %81 = dma.hbm_to_vmem [thread:$0]  %s4906_s5, 8064, %s76_s17, [#allocation9], %s4494_s3, %s4494_s3, %s4495_s22  }
  0x67   :  { %s4496_s2 = smov [#allocation13]   ;;  %s4497_s1 = smov [#allocation14]  }
  0x68   :  { %s104_s19 = sshll.u32 %s4496_s2, 4  ;;  %s116_s30 = sshll.u32 %s4497_s1, 4  ;;  %s105_s19 = int_to_ptr.vmem [resolvable:$true] %s104_s19  ;;  %s117_s30 = int_to_ptr.vmem [resolvable:$true] %s116_s30 }
  0x69   :  { %s4408_s16 = scalar_lea.hbm %s4911_s10, 16 }
  0x6a   :  { %p4409_p6 = scmp.ne.s32.totalorder %s4911_s10, %s4408_s16  ;;  %p4412_p7 = scmp.lt.u32.totalorder %s4408_s16, %s4911_s10 }
  0x6c   :  { %p4414_p8 = pnand %p4412_p7, %p4409_p6 }
  0x6e   :  { %4417 = shalt.err (!%p4414_p8)
}
  0x6f   :  { %s4418_s5 = scalar_lea.vmem %s105_s19, 16  ;;  %s4422_s17 = scalar_lea.vmem %s105_s19, 32 }
  0x70   :  { %p4419_p9 = scmp.ne.s32.totalorder %s105_s19, %s4418_s5  ;;  %p4423_p10 = scmp.lt.s32.totalorder %s105_s19, %s105_s19 }
  0x71   :  { %p4424_p11 = scmp.lt.s32.totalorder %s4422_s17, %s4418_s5 }
  0x73   :  { %p4425_p12 = por %p4424_p11, %p4423_p10 }
  0x75   :  { %p4426_p13 = pnand %p4425_p12, %p4419_p9 }
  0x77   :  { %4429 = shalt.err (!%p4426_p13)
}
  0x78   :  { %107 = dma.hbm_to_vmem [thread:$0]  %s4911_s10, 16, %s105_s19, [#allocation12]  }
  0x79   :  { %s4430_s3 = scalar_lea.hbm %s4913_s12, 16 }
  0x7a   :  { %p4431_p0 = scmp.ne.s32.totalorder %s4913_s12, %s4430_s3  ;;  %p4434_p1 = scmp.lt.u32.totalorder %s4430_s3, %s4913_s12 }
  0x7c   :  { %p4436_p2 = pnand %p4434_p1, %p4431_p0 }
  0x7e   :  { %4439 = shalt.err (!%p4436_p2)
}
  0x7f   :  { %s4440_s1 = scalar_lea.vmem %s117_s30, 16  ;;  %s4444_s27 = scalar_lea.vmem %s117_s30, 32 }
  0x80   :  { %p4441_p3 = scmp.ne.s32.totalorder %s117_s30, %s4440_s1  ;;  %p4445_p4 = scmp.lt.s32.totalorder %s117_s30, %s117_s30 }
  0x81   :  { %p4446_p5 = scmp.lt.s32.totalorder %s4444_s27, %s4440_s1 }
  0x83   :  { %p4447_p6 = por %p4446_p5, %p4445_p4 }
  0x85   :  { %p4448_p7 = pnand %p4447_p6, %p4441_p3 }
  0x87   :  { %4451 = shalt.err (!%p4448_p7)
}
  0x88   :  { %119 = dma.hbm_to_vmem [thread:$0]  %s4913_s12, 16, %s117_s30, [#allocation15]  }
  0x89   :  { %4474 = dma.done.wait [#allocation3], 128  }
  0x8a   :  { %4475 = vsyncadd [#allocation3], 4294967168 }
  0x8b   :  { %4476 = dma.done.wait [#allocation6], 32128  }
  0x8c   :  { %4477 = vsyncadd [#allocation6], 4294935168 }
  0x8d   :  { %4478 = dma.done.wait [#allocation9], 8128  }
  0x8e   :  { %4479 = vsyncadd [#allocation9], 4294959168 }
  0x8f   :  { %4480 = dma.done.wait [#allocation12], 48  }
  0x90   :  { %4481 = vsyncadd [#allocation12], 4294967248 }
  0x91   :  { %4482 = dma.done.wait [#allocation15], 16  }
  0x92   :  { %4483 = vsyncadd [#allocation15], 4294967280  ;;  %v3707_v0 = vld [vmem:[#allocation7 + $0x4] ss:$16 sps:$4 sm:$0xff]   ;;  %v3709_v1 = vld [vmem:[#allocation7 + $0xc] ss:$16 sps:$4 sm:$0xff]   ;;  %v163_v37 = vlaneseq }
  0x93   :  { %1864 = vmatprep.subr.bf16.mxu0 %v3707_v0  ;;  %v3711_v2 = vld [vmem:[#allocation7] ss:$16 sps:$4 sm:$0xff]   ;;  %v3712_v3 = vld [vmem:[#allocation7 + $0x8] ss:$16 sps:$4 sm:$0xff]   ;;  %2028 = vmatprep.subr.bf16.mxu1 %v3709_v1  ;;  %v3713_v4 = vld [vmem:[#allocation7 + $0x24] ss:$16 sps:$4 sm:$0xff]  }
  0x94   :  { %1865 = vmatpush1.bf16.msra.mxu0 %v3711_v2  ;;  %2029 = vmatpush1.bf16.msra.mxu1 %v3712_v3  ;;  %v3715_v5 = vld [vmem:[#allocation7 + $0x2c] ss:$16 sps:$4 sm:$0xff]   ;;  %v3717_v6 = vld [vmem:[#allocation7 + $0x20] ss:$16 sps:$4 sm:$0xff]   ;;  %v3718_v7 = vld [vmem:[#allocation7 + $0x28] ss:$16 sps:$4 sm:$0xff]  }
  0x95   :  { %1866 = vmatprep.subr.bf16.mxu0 %v3713_v4  ;;  %2030 = vmatprep.subr.bf16.mxu1 %v3715_v5  ;;  %v3719_v8 = vld [vmem:[#allocation7 + $0x44] ss:$16 sps:$4 sm:$0xff]   ;;  %v3721_v9 = vld [vmem:[#allocation7 + $0x4c] ss:$16 sps:$4 sm:$0xff]   ;;  %v3723_v10 = vld [vmem:[#allocation7 + $0x40] ss:$16 sps:$4 sm:$0xff]  }
  0x96   :  { %v3724_v11 = vld [vmem:[#allocation7 + $0x48] ss:$16 sps:$4 sm:$0xff]   ;;  %v3725_v12 = vld [vmem:[#allocation7 + $0x64] ss:$16 sps:$4 sm:$0xff]   ;;  %v3727_v13 = vld [vmem:[#allocation7 + $0x6c] ss:$16 sps:$4 sm:$0xff]  }
  0x97   :  { %v3729_v14 = vld [vmem:[#allocation7 + $0x60] ss:$16 sps:$4 sm:$0xff]   ;;  %v3730_v15 = vld [vmem:[#allocation7 + $0x68] ss:$16 sps:$4 sm:$0xff]   ;;  %v3731_v16 = vld [vmem:[#allocation7 + $0x84] ss:$16 sps:$4 sm:$0xff]  }
  0x98   :  { %1867 = vmatpush1.bf16.msra.mxu0 %v3717_v6  ;;  %2031 = vmatpush1.bf16.msra.mxu1 %v3718_v7  ;;  %v3733_v17 = vld [vmem:[#allocation7 + $0x8c] ss:$16 sps:$4 sm:$0xff]   ;;  %v3735_v18 = vld [vmem:[#allocation7 + $0x80] ss:$16 sps:$4 sm:$0xff]   ;;  %v3736_v19 = vld [vmem:[#allocation7 + $0x88] ss:$16 sps:$4 sm:$0xff]  }
  0x99   :  { %1868 = vmatprep.subr.bf16.mxu0 %v3719_v8  ;;  %2032 = vmatprep.subr.bf16.mxu1 %v3721_v9  ;;  %v3737_v20 = vld [vmem:[#allocation7 + $0xa4] ss:$16 sps:$4 sm:$0xff]   ;;  %v3739_v21 = vld [vmem:[#allocation7 + $0xac] ss:$16 sps:$4 sm:$0xff]   ;;  %v3741_v22 = vld [vmem:[#allocation7 + $0xa0] ss:$16 sps:$4 sm:$0xff]  }
  0x9a   :  { %v3742_v23 = vld [vmem:[#allocation7 + $0xa8] ss:$16 sps:$4 sm:$0xff]   ;;  %v3743_v24 = vld [vmem:[#allocation7 + $0xc4] ss:$16 sps:$4 sm:$0xff]   ;;  %v3745_v25 = vld [vmem:[#allocation7 + $0xcc] ss:$16 sps:$4 sm:$0xff]  }
  0x9b   :  { %v3747_v26 = vld [vmem:[#allocation7 + $0xc0] ss:$16 sps:$4 sm:$0xff]   ;;  %v3748_v27 = vld [vmem:[#allocation7 + $0xc8] ss:$16 sps:$4 sm:$0xff]   ;;  %v3749_v28 = vld [vmem:[#allocation7 + $0xe4] ss:$16 sps:$4 sm:$0xff]  }
  0x9c   :  { %1869 = vmatpush1.bf16.msra.mxu0 %v3723_v10  ;;  %2033 = vmatpush1.bf16.msra.mxu1 %v3724_v11  ;;  %v3751_v29 = vld [vmem:[#allocation7 + $0xec] ss:$16 sps:$4 sm:$0xff]   ;;  %v3753_v30 = vld [vmem:[#allocation7 + $0xe0] ss:$16 sps:$4 sm:$0xff]   ;;  %v3754_v31 = vld [vmem:[#allocation7 + $0xe8] ss:$16 sps:$4 sm:$0xff]  }
  0x9d   :  { %1870 = vmatprep.subr.bf16.mxu0 %v3725_v12  ;;  %2034 = vmatprep.subr.bf16.mxu1 %v3727_v13  ;;  %v3755_v32 = vld [vmem:[#allocation7 + $0x104] ss:$16 sps:$4 sm:$0xff]   ;;  %v3757_v33 = vld [vmem:[#allocation7 + $0x10c] ss:$16 sps:$4 sm:$0xff]   ;;  %v3759_v34 = vld [vmem:[#allocation7 + $0x100] ss:$16 sps:$4 sm:$0xff]  }
  0x9e   :  { %v3760_v35 = vld [vmem:[#allocation7 + $0x108] ss:$16 sps:$4 sm:$0xff]   ;;  %v3761_v36 = vld [vmem:[#allocation7 + $0x124] ss:$16 sps:$4 sm:$0xff]   ;;  %v3763_v38 = vld [vmem:[#allocation7 + $0x12c] ss:$16 sps:$4 sm:$0xff]  }
  0x9f   :  { %v3765_v39 = vld [vmem:[#allocation7 + $0x120] ss:$16 sps:$4 sm:$0xff]   ;;  %v3766_v40 = vld [vmem:[#allocation7 + $0x128] ss:$16 sps:$4 sm:$0xff]   ;;  %v3767_v41 = vld [vmem:[#allocation7 + $0x144] ss:$16 sps:$4 sm:$0xff]  }
  0xa0   :  { %1871 = vmatpush1.bf16.msra.mxu0 %v3729_v14  ;;  %2035 = vmatpush1.bf16.msra.mxu1 %v3730_v15  ;;  %v4677_v42 = vshrl.u32 %v163_v37, 7  ;;  %v3769_v43 = vld [vmem:[#allocation7 + $0x14c] ss:$16 sps:$4 sm:$0xff]   ;;  %v3771_v44 = vld [vmem:[#allocation7 + $0x140] ss:$16 sps:$4 sm:$0xff]   ;;  %vm1847_vm0 = vcmask 850944  }
  0xa1   :  { %1872 = vmatprep.subr.bf16.mxu0 %v3731_v16  ;;  %2036 = vmatprep.subr.bf16.mxu1 %v3733_v17  ;;  %v3772_v45 = vld [vmem:[#allocation7 + $0x148] ss:$16 sps:$4 sm:$0xff]   ;;  %v3773_v46 = vld [vmem:[#allocation7 + $0x164] ss:$16 sps:$4 sm:$0xff]   ;;  %v3775_v49 = vld [vmem:[#allocation7 + $0x16c] ss:$16 sps:$4 sm:$0xff]  }
  0xa2   :  { %v4680_v47 = vsub.s32 1, %v4677_v42  ;;  %v4683_v48 = vsub.s32 0, %v4677_v42  ;;  %v3777_v50 = vld [vmem:[#allocation7 + $0x160] ss:$16 sps:$4 sm:$0xff]   ;;  %v4690_v55 = vld [vmem:[#allocation5] sm:$0xff]  ;;  %vm1851_vm1 = vcmask 1043456  }
  0xa3   :  { %v149_v51 = vld [vmem:[%s4901_s0] sm:$0xff]  ;;  %v3778_v56 = vld [vmem:[#allocation7 + $0x168] ss:$16 sps:$4 sm:$0xff]   ;;  %v3781_v61 = vld [vmem:[#allocation7 + $0x18c] ss:$16 sps:$4 sm:$0xff]   ;;  %vm2614_vm2 = vcmask 949248  }
  0xa4   :  { %1873 = vmatpush1.bf16.msra.mxu0 %v3735_v18  ;;  %2037 = vmatpush1.bf16.msra.mxu1 %v3736_v19  ;;  %v153_v52 = vunpack.c.l.bf16 %v149_v51  ;;  %v154_v53 = vunpack.c.h.bf16 %v149_v51  ;;  %v4688_v54 = vld [vmem:[#allocation2] sm:$0xff]  ;;  %v220_v59 = vrot.slane %v4690_v55, %v4680_v47  ;;  %v216_v62 = vrot.slane %v4690_v55, %v4683_v48  ;;  %v3784_v2 = vld [vmem:[#allocation7 + $0x188] ss:$16 sps:$4 sm:$0xff]   ;;  %v3787_v6 = vld [vmem:[#allocation7 + $0x1ac] ss:$16 sps:$4 sm:$0xff]  }
  0xa5   :  { %1874 = vmatprep.subr.bf16.mxu0 %v3737_v20  ;;  %2038 = vmatprep.subr.bf16.mxu1 %v3739_v21  ;;  %v3779_v57 = vld [vmem:[#allocation7 + $0x184] ss:$16 sps:$4 sm:$0xff]   ;;  %v170_v58 = vrot.slane %v4688_v54, %v4680_v47  ;;  %v166_v60 = vrot.slane %v4688_v54, %v4683_v48  ;;  %v3783_v1 = vld [vmem:[#allocation7 + $0x180] ss:$16 sps:$4 sm:$0xff]   ;;  %v3790_v10 = vld [vmem:[#allocation7 + $0x1a8] ss:$16 sps:$4 sm:$0xff]  }
  0xa6   :  { %v3785_v3 = vld [vmem:[#allocation7 + $0x1a4] ss:$16 sps:$4 sm:$0xff]   ;;  %v3789_v9 = vld [vmem:[#allocation7 + $0x1a0] ss:$16 sps:$4 sm:$0xff]   ;;  %v3793_v12 = vld [vmem:[#allocation7 + $0x1cc] ss:$16 sps:$4 sm:$0xff]  }
  0xa7   :  { %v204_v63 = vmul.f32 %v170_v58, %v154_v53  ;;  %v203_v0 = vmul.f32 %v166_v60, %v153_v52  ;;  %v3791_v11 = vld [vmem:[#allocation7 + $0x1c4] ss:$16 sps:$4 sm:$0xff]   ;;  %v3795_v13 = vld [vmem:[#allocation7 + $0x1c0] ss:$16 sps:$4 sm:$0xff]   ;;  %v3796_v14 = vld [vmem:[#allocation7 + $0x1c8] ss:$16 sps:$4 sm:$0xff]  }
  0xa8   :  { %1875 = vmatpush1.bf16.msra.mxu0 %v3741_v22  ;;  %2039 = vmatpush1.bf16.msra.mxu1 %v3742_v23  ;;  %v3797_v15 = vld [vmem:[#allocation7 + $0x1e4] ss:$16 sps:$4 sm:$0xff]   ;;  %v3799_v16 = vld [vmem:[#allocation7 + $0x1ec] ss:$16 sps:$4 sm:$0xff]   ;;  %v3801_v17 = vld [vmem:[#allocation7 + $0x1e0] ss:$16 sps:$4 sm:$0xff]  }
  0xa9   :  { %1876 = vmatprep.subr.bf16.mxu0 %v3743_v24  ;;  %2040 = vmatprep.subr.bf16.mxu1 %v3745_v25  ;;  %v254_v4 = vadd.f32 %v220_v59, %v204_v63  ;;  %v253_v5 = vadd.f32 %v216_v62, %v203_v0  ;;  %v3802_v18 = vld [vmem:[#allocation7 + $0x1e8] ss:$16 sps:$4 sm:$0xff]   ;;  %v3805_v19 = vld [vmem:[#allocation7 + $0x204] ss:$16 sps:$4 sm:$0xff]   ;;  %v3808_v20 = vld [vmem:[#allocation7 + $0x20c] ss:$16 sps:$4 sm:$0xff]  }
  0xaa   :  { %v3812_v37 = vld [vmem:[#allocation7 + $0x228] ss:$16 sps:$4 sm:$0xff]   ;;  %v3829_v59 = vld [vmem:[#allocation7 + $0x284] ss:$16 sps:$4 sm:$0xff]   ;;  %v3832_v62 = vld [vmem:[#allocation7 + $0x28c] ss:$16 sps:$4 sm:$0xff]  }
  0xab   :  { %v3205_v7 = vmul.f32 -1.442695, %v254_v4  ;;  %v3204_v8 = vmul.f32 -1.442695, %v253_v5  ;;  %v3824_v58 = vld [vmem:[#allocation7 + $0x268] ss:$16 sps:$4 sm:$0xff]  }
  0xac   :  { %1877 = vmatpush1.bf16.msra.mxu0 %v3747_v26  ;;  %2041 = vmatpush1.bf16.msra.mxu1 %v3748_v27  ;;  %vm2618_vm3 = vcmask 1041408   ;;  %vm4499_vm4 = vmmov 0   ;;  %vm3064_vm5 = vcmask 523264   ;;  %vm3139_vm6 = vcmask 261120  }
  0xad   :  { %1878 = vmatprep.subr.bf16.mxu0 %v3749_v28  ;;  %2042 = vmatprep.subr.bf16.mxu1 %v3751_v29  ;;  %4208 = vpow2.f32 %v3205_v7  ;;  %v3803_v28 = vld [vmem:[#allocation7 + $0x200] ss:$16 sps:$4 sm:$0xff]   ;;  %v3836_v7 = vld [vmem:[#allocation7 + $0x2a8] ss:$16 sps:$4 sm:$0xff]   ;;  %vm3183_vm7 = vcmask 146432  }
  0xae   :  { %4210 = vpow2.f32 %v3204_v8  ;;  %v3841_v8 = vld [vmem:[#allocation7 + $0x2c4] ss:$16 sps:$4 sm:$0xff]  }
  0xb0   :  { %1879 = vmatpush1.bf16.msra.mxu0 %v3753_v30  ;;  %2043 = vmatpush1.bf16.msra.mxu1 %v3754_v31  ;;  %v3806_v31 = vld [vmem:[#allocation7 + $0x208] ss:$16 sps:$4 sm:$0xff]  }
  0xb1   :  { %1880 = vmatprep.subr.bf16.mxu0 %v3755_v32  ;;  %2044 = vmatprep.subr.bf16.mxu1 %v3757_v33  ;;  %v3811_v32 = vld [vmem:[#allocation7 + $0x224] ss:$16 sps:$4 sm:$0xff]  }
  0xb4   :  { %1881 = vmatpush1.bf16.msra.mxu0 %v3759_v34  ;;  %2045 = vmatpush1.bf16.msra.mxu1 %v3760_v35  ;;  %v3814_v34 = vld [vmem:[#allocation7 + $0x22c] ss:$16 sps:$4 sm:$0xff]   ;;  %v3809_v35 = vld [vmem:[#allocation7 + $0x220] ss:$16 sps:$4 sm:$0xff]  }
  0xb5   :  { %1882 = vmatprep.subr.bf16.mxu0 %v3761_v36  ;;  %2046 = vmatprep.subr.bf16.mxu1 %v3763_v38  ;;  %v4701_v36 = vsub.s32 3, %v4677_v42  ;;  %v3817_v38 = vld [vmem:[#allocation7 + $0x244] ss:$16 sps:$4 sm:$0xff]  }
  0xb7   :  { %v4209_v21 = vpop.eup %4208  ;;  %v228_v53 = vrot.slane %v4690_v55, %v4701_v36 }
  0xb8   :  { %1883 = vmatpush1.bf16.msra.mxu0 %v3765_v39  ;;  %2047 = vmatpush1.bf16.msra.mxu1 %v3766_v40  ;;  %v4211_v22 = vpop.eup %4210  ;;  %v537_v23 = vadd.f32 1.0, %v4209_v21  ;;  %v4704_v39 = vsub.s32 2, %v4677_v42  ;;  %v3820_v40 = vld [vmem:[#allocation7 + $0x24c] ss:$16 sps:$4 sm:$0xff]   ;;  %v3851_v21 = vld [vmem:[#allocation7 + $0x300] ss:$16 sps:$4 sm:$0xff]  }
  0xb9   :  { %1884 = vmatprep.subr.bf16.mxu0 %v3767_v41  ;;  %2048 = vmatprep.subr.bf16.mxu1 %v3769_v43  ;;  %v536_v24 = vadd.f32 1.0, %v4211_v22  ;;  %v3815_v41 = vld [vmem:[#allocation7 + $0x240] ss:$16 sps:$4 sm:$0xff]   ;;  %v3818_v43 = vld [vmem:[#allocation7 + $0x248] ss:$16 sps:$4 sm:$0xff]  }
  0xba   :  { %4212 = vrcp.f32 %v537_v23  ;;  %v3854_v22 = vld [vmem:[#allocation7 + $0x308] ss:$16 sps:$4 sm:$0xff]   ;;  %v3859_v23 = vld [vmem:[#allocation7 + $0x324] ss:$16 sps:$4 sm:$0xff]  }
  0xbb   :  { %4214 = vrcp.f32 %v536_v24  ;;  %v3862_v24 = vld [vmem:[#allocation7 + $0x32c] ss:$16 sps:$4 sm:$0xff]  }
  0xbc   :  { %1885 = vmatpush1.bf16.msra.mxu0 %v3771_v44  ;;  %2049 = vmatpush1.bf16.msra.mxu1 %v3772_v45  ;;  %v3823_v44 = vld [vmem:[#allocation7 + $0x264] ss:$16 sps:$4 sm:$0xff]   ;;  %v3826_v45 = vld [vmem:[#allocation7 + $0x26c] ss:$16 sps:$4 sm:$0xff]  }
  0xbd   :  { %1886 = vmatprep.subr.bf16.mxu0 %v3773_v46  ;;  %2050 = vmatprep.subr.bf16.mxu1 %v3775_v49  ;;  %v178_v46 = vrot.slane %v4688_v54, %v4701_v36  ;;  %v174_v49 = vrot.slane %v4688_v54, %v4704_v39 }
  0xc0   :  { %1887 = vmatpush1.bf16.msra.mxu0 %v3777_v50  ;;  %2051 = vmatpush1.bf16.msra.mxu1 %v3778_v56  ;;  %v150_v50 = vld [vmem:[%s4901_s0 + $0x8] sm:$0xff]  ;;  %v224_v56 = vrot.slane %v4690_v55, %v4704_v39 }
  0xc1   :  { %1888 = vmatprep.subr.bf16.mxu0 %v3779_v57  ;;  %2052 = vmatprep.subr.bf16.mxu1 %v3781_v61  ;;  %v155_v51 = vunpack.c.l.bf16 %v150_v50  ;;  %v156_v52 = vunpack.c.h.bf16 %v150_v50  ;;  %v3821_v57 = vld [vmem:[#allocation7 + $0x260] ss:$16 sps:$4 sm:$0xff]   ;;  %v3878_v50 = vld [vmem:[#allocation7 + $0x388] ss:$16 sps:$4 sm:$0xff]  }
  0xc3   :  { %v206_v60 = vmul.f32 %v178_v46, %v156_v52  ;;  %v205_v61 = vmul.f32 %v174_v49, %v155_v51  ;;  %v185_v46 = vsub.s32 5, %v4677_v42  ;;  %v181_v49 = vsub.s32 4, %v4677_v42  ;;  %v3883_v51 = vld [vmem:[#allocation7 + $0x3a4] ss:$16 sps:$4 sm:$0xff]   ;;  %v3886_v52 = vld [vmem:[#allocation7 + $0x3ac] ss:$16 sps:$4 sm:$0xff]  }
  0xc4   :  { %1889 = vmatpush1.bf16.msra.mxu0 %v3783_v1  ;;  %2053 = vmatpush1.bf16.msra.mxu1 %v3784_v2  ;;  %v4213_v25 = vpop.eup %4212  ;;  %v3827_v1 = vld [vmem:[#allocation7 + $0x280] ss:$16 sps:$4 sm:$0xff]   ;;  %v3830_v2 = vld [vmem:[#allocation7 + $0x288] ss:$16 sps:$4 sm:$0xff]  }
  0xc5   :  { %1890 = vmatprep.subr.bf16.mxu0 %v3785_v3  ;;  %2054 = vmatprep.subr.bf16.mxu1 %v3787_v6  ;;  %v4215_v26 = vpop.eup %4214  ;;  %v561_v27 = vmul.f32 %v4213_v25, %v254_v4  ;;  %v4717_v63 = vadd.f32 %v228_v53, %v206_v60  ;;  %v4719_v0 = vadd.f32 %v224_v56, %v205_v61  ;;  %v3835_v4 = vld [vmem:[#allocation7 + $0x2a4] ss:$16 sps:$4 sm:$0xff]   ;;  %v3833_v6 = vld [vmem:[#allocation7 + $0x2a0] ss:$16 sps:$4 sm:$0xff]   ;;  %v3892_v61 = vld [vmem:[#allocation7 + $0x3cc] ss:$16 sps:$4 sm:$0xff]  }
  0xc6   :  { %v560_v29 = vmul.f32 %v4215_v26, %v253_v5  ;;  %v3838_v5 = vld [vmem:[#allocation7 + $0x2ac] ss:$16 sps:$4 sm:$0xff]   ;;  %v3857_v25 = vld [vmem:[#allocation7 + $0x320] ss:$16 sps:$4 sm:$0xff]   ;;  %v3860_v26 = vld [vmem:[#allocation7 + $0x328] ss:$16 sps:$4 sm:$0xff]   ;;  %v186_v56 = vrot.slane %v4688_v54, %v185_v46 }
  0xc7   :  { %v569_v30 = vpack.c.bf16 %v561_v27, %v561_v27  ;;  %v3207_v3 = vmul.f32 -1.442695, %v4717_v63  ;;  %v3865_v27 = vld [vmem:[#allocation7 + $0x344] ss:$16 sps:$4 sm:$0xff]   ;;  %v3881_v53 = vld [vmem:[#allocation7 + $0x3a0] ss:$16 sps:$4 sm:$0xff]  }
  0xc8   :  { %1891 = vmatpush1.bf16.msra.mxu0 %v3789_v9  ;;  %2055 = vmatpush1.bf16.msra.mxu1 %v3790_v10  ;;  %v568_v33 = vpack.c.bf16 %v560_v29, %v560_v29  ;;  %v3844_v9 = vld [vmem:[#allocation7 + $0x2cc] ss:$16 sps:$4 sm:$0xff]   ;;  %v3839_v10 = vld [vmem:[#allocation7 + $0x2c0] ss:$16 sps:$4 sm:$0xff]   ;;  %v3889_v60 = vld [vmem:[#allocation7 + $0x3c4] ss:$16 sps:$4 sm:$0xff]  }
  0xc9   :  { %1892 = vmatprep.subr.bf16.mxu0 %v3791_v11  ;;  %2056 = vmatprep.subr.bf16.mxu1 %v3793_v12  ;;  %4216 = vpow2.f32 %v3207_v3  ;;  %v3842_v11 = vld [vmem:[#allocation7 + $0x2c8] ss:$16 sps:$4 sm:$0xff]   ;;  %v3847_v12 = vld [vmem:[#allocation7 + $0x2e4] ss:$16 sps:$4 sm:$0xff]  }
  0xca   :  { %1896 = vmatprep.mubr.bf16.mxu0 %v569_v30  ;;  %2060 = vmatprep.mubr.bf16.mxu1 %v569_v30  ;;  %v3863_v30 = vld [vmem:[#allocation7 + $0x340] ss:$16 sps:$4 sm:$0xff]  }
  0xcc   :  { %1893 = vmatpush1.bf16.msra.mxu0 %v3795_v13  ;;  %2057 = vmatpush1.bf16.msra.mxu1 %v3796_v14  ;;  %v3850_v13 = vld [vmem:[#allocation7 + $0x2ec] ss:$16 sps:$4 sm:$0xff]   ;;  %v3206_v14 = vmul.f32 -1.442695, %v4719_v0 }
  0xcd   :  { %1894 = vmatprep.subr.bf16.mxu0 %v3797_v15  ;;  %2058 = vmatprep.subr.bf16.mxu1 %v3799_v16  ;;  %v3845_v15 = vld [vmem:[#allocation7 + $0x2e0] ss:$16 sps:$4 sm:$0xff]  }
  0xce   :  { %4218 = vpow2.f32 %v3206_v14 }
  0xd0   :  { %1895 = vmatpush1.bf16.msra.mxu0 %v3801_v17  ;;  %2059 = vmatpush1.bf16.msra.mxu1 %v3802_v18  ;;  %v3848_v17 = vld [vmem:[#allocation7 + $0x2e8] ss:$16 sps:$4 sm:$0xff]   ;;  %v3853_v18 = vld [vmem:[#allocation7 + $0x304] ss:$16 sps:$4 sm:$0xff]  }
  0xd1   :  { %1905 = vmatprep.subr.bf16.mxu0 %v3805_v19  ;;  %2069 = vmatprep.subr.bf16.mxu1 %v3808_v20  ;;  %v3856_v19 = vld [vmem:[#allocation7 + $0x30c] ss:$16 sps:$4 sm:$0xff]  }
  0xd3   :  { %1897 = vmatmul.mubr.bf16.vlgmr.msra.gmra.mrb[0].mxu0 %v568_v33  ;;  %2061 = vmatmul.mubr.bf16.vlgmr.msra.gmra.mrb[0].mxu1 %v568_v33  ;;  %v4217_v16 = vpop.eup %4216  ;;  %v3871_v33 = vld [vmem:[#allocation7 + $0x364] ss:$16 sps:$4 sm:$0xff]  }
  0xd4   :  { %1906 = vmatpush1.bf16.msra.mxu0 %v3803_v28  ;;  %2070 = vmatpush1.bf16.msra.mxu1 %v3806_v31  ;;  %v539_v20 = vadd.f32 1.0, %v4217_v16  ;;  %v3868_v28 = vld [vmem:[#allocation7 + $0x34c] ss:$16 sps:$4 sm:$0xff]   ;;  %v3866_v31 = vld [vmem:[#allocation7 + $0x348] ss:$16 sps:$4 sm:$0xff]  }
  0xd5   :  { %1907 = vmatprep.subr.bf16.mxu0 %v3811_v32  ;;  %2071 = vmatprep.subr.bf16.mxu1 %v3814_v34  ;;  %v3874_v34 = vld [vmem:[#allocation7 + $0x36c] ss:$16 sps:$4 sm:$0xff]   ;;  %v3901_v16 = vld [vmem:[#allocation7 + $0x404] ss:$16 sps:$4 sm:$0xff]  }
  0xd6   :  { %4220 = vrcp.f32 %v539_v20 }
  0xd8   :  { %1908 = vmatpush1.bf16.msra.mxu0 %v3809_v35  ;;  %2072 = vmatpush1.bf16.msra.mxu1 %v3812_v37  ;;  %v4219_v29 = vpop.eup %4218 }
  0xd9   :  { %1909 = vmatprep.subr.bf16.mxu0 %v3817_v38  ;;  %2073 = vmatprep.subr.bf16.mxu1 %v3820_v40  ;;  %v538_v37 = vadd.f32 1.0, %v4219_v29  ;;  %v3869_v38 = vld [vmem:[#allocation7 + $0x360] ss:$16 sps:$4 sm:$0xff]   ;;  %v3872_v40 = vld [vmem:[#allocation7 + $0x368] ss:$16 sps:$4 sm:$0xff]  }
  0xda   :  { %v3919_v29 = vld [vmem:[#allocation7 + $0x464] ss:$16 sps:$4 sm:$0xff]  }
  0xdb   :  { %4222 = vrcp.f32 %v538_v37  ;;  %v3923_v37 = vld [vmem:[#allocation7 + $0x480] ss:$16 sps:$4 sm:$0xff]  }
  0xdc   :  { %1910 = vmatpush1.bf16.msra.mxu0 %v3815_v41  ;;  %2074 = vmatpush1.bf16.msra.mxu1 %v3818_v43  ;;  %v3877_v43 = vld [vmem:[#allocation7 + $0x384] ss:$16 sps:$4 sm:$0xff]  }
  0xdd   :  { %1911 = vmatprep.subr.bf16.mxu0 %v3823_v44  ;;  %2075 = vmatprep.subr.bf16.mxu1 %v3826_v45  ;;  %v3880_v44 = vld [vmem:[#allocation7 + $0x38c] ss:$16 sps:$4 sm:$0xff]   ;;  %v3875_v45 = vld [vmem:[#allocation7 + $0x380] ss:$16 sps:$4 sm:$0xff]  }
  0xe0   :  { %1912 = vmatpush1.bf16.msra.mxu0 %v3821_v57  ;;  %2076 = vmatpush1.bf16.msra.mxu1 %v3824_v58  ;;  %v4221_v32 = vpop.eup %4220  ;;  %v182_v57 = vrot.slane %v4688_v54, %v181_v49  ;;  %v3884_v58 = vld [vmem:[#allocation7 + $0x3a8] ss:$16 sps:$4 sm:$0xff]  }
  0xe1   :  { %1913 = vmatprep.subr.bf16.mxu0 %v3829_v59  ;;  %2077 = vmatprep.subr.bf16.mxu1 %v3832_v62  ;;  %v563_v35 = vmul.f32 %v4221_v32, %v4717_v63  ;;  %v151_v59 = vld [vmem:[%s4901_s0 + $0x10] sm:$0xff] }
  0xe2   :  { %v157_v62 = vunpack.c.l.bf16 %v151_v59  ;;  %v158_v63 = vunpack.c.h.bf16 %v151_v59  ;;  %v3917_v32 = vld [vmem:[#allocation7 + $0x460] ss:$16 sps:$4 sm:$0xff]   ;;  %v3946_v59 = vld [vmem:[#allocation7 + $0x4ec] ss:$16 sps:$4 sm:$0xff]  }
  0xe3   :  { %v571_v41 = vpack.c.bf16 %v563_v35, %v563_v35  ;;  %v3928_v35 = vld [vmem:[#allocation7 + $0x48c] ss:$16 sps:$4 sm:$0xff]  }
  0xe4   :  { %1914 = vmatpush1.bf16.msra.mxu0 %v3827_v1  ;;  %2078 = vmatpush1.bf16.msra.mxu1 %v3830_v2  ;;  %v236_v1 = vrot.slane %v4690_v55, %v185_v46  ;;  %v232_v2 = vrot.slane %v4690_v55, %v181_v49  ;;  %v208_v3 = vmul.f32 %v186_v56, %v158_v63  ;;  %v3937_v46 = vld [vmem:[#allocation7 + $0x4c4] ss:$16 sps:$4 sm:$0xff]   ;;  %v3940_v49 = vld [vmem:[#allocation7 + $0x4cc] ss:$16 sps:$4 sm:$0xff]   ;;  %v3938_v56 = vld [vmem:[#allocation7 + $0x4c8] ss:$16 sps:$4 sm:$0xff]  }
  0xe5   :  { %1915 = vmatprep.subr.bf16.mxu0 %v3835_v4  ;;  %2079 = vmatprep.subr.bf16.mxu1 %v3838_v5  ;;  %v207_v4 = vmul.f32 %v182_v57, %v157_v62  ;;  %v4223_v5 = vpop.eup %4222  ;;  %v3941_v63 = vld [vmem:[#allocation7 + $0x4e0] ss:$16 sps:$4 sm:$0xff]  }
  0xe6   :  { %1937 = vmatprep.mubr.bf16.mxu0 %v571_v41  ;;  %2101 = vmatprep.mubr.bf16.mxu1 %v571_v41  ;;  %v562_v14 = vmul.f32 %v4223_v5, %v4719_v0  ;;  %v3905_v0 = vld [vmem:[#allocation7 + $0x420] ss:$16 sps:$4 sm:$0xff]   ;;  %v3934_v41 = vld [vmem:[#allocation7 + $0x4ac] ss:$16 sps:$4 sm:$0xff]  }
  0xe8   :  { %1916 = vmatpush1.bf16.msra.mxu0 %v3833_v6  ;;  %2080 = vmatpush1.bf16.msra.mxu1 %v3836_v7  ;;  %v3887_v6 = vld [vmem:[#allocation7 + $0x3c0] ss:$16 sps:$4 sm:$0xff]   ;;  %v3890_v7 = vld [vmem:[#allocation7 + $0x3c8] ss:$16 sps:$4 sm:$0xff]   ;;  %v570_v20 = vpack.c.bf16 %v562_v14, %v562_v14 }
  0xe9   :  { %1917 = vmatprep.subr.bf16.mxu0 %v3841_v8  ;;  %2081 = vmatprep.subr.bf16.mxu1 %v3844_v9  ;;  %v3895_v8 = vld [vmem:[#allocation7 + $0x3e4] ss:$16 sps:$4 sm:$0xff]   ;;  %v3898_v9 = vld [vmem:[#allocation7 + $0x3ec] ss:$16 sps:$4 sm:$0xff]  }
  0xec   :  { %1918 = vmatpush1.bf16.msra.mxu0 %v3839_v10  ;;  %2082 = vmatpush1.bf16.msra.mxu1 %v3842_v11  ;;  %v4733_v10 = vadd.f32 %v236_v1, %v208_v3  ;;  %v4735_v11 = vadd.f32 %v232_v2, %v207_v4  ;;  %v3944_v1 = vld [vmem:[#allocation7 + $0x4e8] ss:$16 sps:$4 sm:$0xff]   ;;  %v3949_v2 = vld [vmem:[#allocation7 + $0x504] ss:$16 sps:$4 sm:$0xff]  }
  0xed   :  { %1919 = vmatprep.subr.bf16.mxu0 %v3847_v12  ;;  %2083 = vmatprep.subr.bf16.mxu1 %v3850_v13  ;;  %v3893_v12 = vld [vmem:[#allocation7 + $0x3e0] ss:$16 sps:$4 sm:$0xff]   ;;  %v3896_v13 = vld [vmem:[#allocation7 + $0x3e8] ss:$16 sps:$4 sm:$0xff]  }
  0xf0   :  { %1920 = vmatpush1.bf16.msra.mxu0 %v3845_v15  ;;  %2084 = vmatpush1.bf16.msra.mxu1 %v3848_v17  ;;  %v3209_v15 = vmul.f32 -1.442695, %v4733_v10  ;;  %v3904_v17 = vld [vmem:[#allocation7 + $0x40c] ss:$16 sps:$4 sm:$0xff]  }
  0xf1   :  { %1921 = vmatprep.subr.bf16.mxu0 %v3853_v18  ;;  %2085 = vmatprep.subr.bf16.mxu1 %v3856_v19  ;;  %v3899_v18 = vld [vmem:[#allocation7 + $0x400] ss:$16 sps:$4 sm:$0xff]   ;;  %v3902_v19 = vld [vmem:[#allocation7 + $0x408] ss:$16 sps:$4 sm:$0xff]  }
  0xf2   :  { %4224 = vpow2.f32 %v3209_v15  ;;  %v3958_v15 = vld [vmem:[#allocation7 + $0x52c] ss:$16 sps:$4 sm:$0xff]  }
  0xf4   :  { %1922 = vmatpush1.bf16.msra.mxu0 %v3851_v21  ;;  %2086 = vmatpush1.bf16.msra.mxu1 %v3854_v22  ;;  %v3907_v21 = vld [vmem:[#allocation7 + $0x424] ss:$16 sps:$4 sm:$0xff]   ;;  %v3910_v22 = vld [vmem:[#allocation7 + $0x42c] ss:$16 sps:$4 sm:$0xff]  }
  0xf5   :  { %1923 = vmatprep.subr.bf16.mxu0 %v3859_v23  ;;  %2087 = vmatprep.subr.bf16.mxu1 %v3862_v24  ;;  %v3908_v23 = vld [vmem:[#allocation7 + $0x428] ss:$16 sps:$4 sm:$0xff]   ;;  %v3913_v24 = vld [vmem:[#allocation7 + $0x444] ss:$16 sps:$4 sm:$0xff]  }
  0xf8   :  { %1924 = vmatpush1.bf16.msra.mxu0 %v3857_v25  ;;  %2088 = vmatpush1.bf16.msra.mxu1 %v3860_v26  ;;  %v3916_v25 = vld [vmem:[#allocation7 + $0x44c] ss:$16 sps:$4 sm:$0xff]  }
  0xf9   :  { %1925 = vmatprep.subr.bf16.mxu0 %v3865_v27  ;;  %2089 = vmatprep.subr.bf16.mxu1 %v3868_v28  ;;  %v3911_v27 = vld [vmem:[#allocation7 + $0x440] ss:$16 sps:$4 sm:$0xff]   ;;  %v3914_v28 = vld [vmem:[#allocation7 + $0x448] ss:$16 sps:$4 sm:$0xff]  }
  0xfc   :  { %1926 = vmatpush1.bf16.msra.mxu0 %v3863_v30  ;;  %2090 = vmatpush1.bf16.msra.mxu1 %v3866_v31  ;;  %v4225_v26 = vpop.eup %4224  ;;  %v3922_v31 = vld [vmem:[#allocation7 + $0x46c] ss:$16 sps:$4 sm:$0xff]  }
  0xfd   :  { %1927 = vmatprep.subr.bf16.mxu0 %v3871_v33  ;;  %2091 = vmatprep.subr.bf16.mxu1 %v3874_v34  ;;  %v541_v30 = vadd.f32 1.0, %v4225_v26  ;;  %v3920_v33 = vld [vmem:[#allocation7 + $0x468] ss:$16 sps:$4 sm:$0xff]   ;;  %v3925_v34 = vld [vmem:[#allocation7 + $0x484] ss:$16 sps:$4 sm:$0xff]  }
  0xff   :  { %4226 = vrcp.f32 %v541_v30  ;;  %v3971_v30 = vld [vmem:[#allocation7 + $0x580] ss:$16 sps:$4 sm:$0xff]  }
 0x100   :  { %1928 = vmatpush1.bf16.msra.mxu0 %v3869_v38  ;;  %2092 = vmatpush1.bf16.msra.mxu1 %v3872_v40  ;;  %v3926_v38 = vld [vmem:[#allocation7 + $0x488] ss:$16 sps:$4 sm:$0xff]   ;;  %v3931_v40 = vld [vmem:[#allocation7 + $0x4a4] ss:$16 sps:$4 sm:$0xff]  }
 0x101   :  { %1929 = vmatprep.subr.bf16.mxu0 %v3877_v43  ;;  %2093 = vmatprep.subr.bf16.mxu1 %v3880_v44  ;;  %v3929_v43 = vld [vmem:[#allocation7 + $0x4a0] ss:$16 sps:$4 sm:$0xff]   ;;  %v3932_v44 = vld [vmem:[#allocation7 + $0x4a8] ss:$16 sps:$4 sm:$0xff]  }
 0x104   :  { %1930 = vmatpush1.bf16.msra.mxu0 %v3875_v45  ;;  %2094 = vmatpush1.bf16.msra.mxu1 %v3878_v50 }
 0x105   :  { %1931 = vmatprep.subr.bf16.mxu0 %v3883_v51  ;;  %2095 = vmatprep.subr.bf16.mxu1 %v3886_v52  ;;  %v193_v51 = vsub.s32 7, %v4677_v42  ;;  %v189_v52 = vsub.s32 6, %v4677_v42  ;;  %v152_v42 = vld [vmem:[%s4901_s0 + $0x18] sm:$0xff] }
 0x106   :  { %v160_v3 = vunpack.c.h.bf16 %v152_v42  ;;  %v159_v5 = vunpack.c.l.bf16 %v152_v42  ;;  %v4004_v42 = vld [vmem:[#allocation7 + $0x628] ss:$16 sps:$4 sm:$0xff]  }
 0x107   :  { %v190_v62 = vrot.slane %v4688_v54, %v189_v52  ;;  %v244_v4 = vrot.slane %v4690_v55, %v193_v51 }
 0x108   :  { %1932 = vmatpush1.bf16.msra.mxu0 %v3881_v53  ;;  %2096 = vmatpush1.bf16.msra.mxu1 %v3884_v58  ;;  %v3935_v53 = vld [vmem:[#allocation7 + $0x4c0] ss:$16 sps:$4 sm:$0xff]   ;;  %v3943_v58 = vld [vmem:[#allocation7 + $0x4e4] ss:$16 sps:$4 sm:$0xff]  }
 0x109   :  { %1933 = vmatprep.subr.bf16.mxu0 %v3889_v60  ;;  %2097 = vmatprep.subr.bf16.mxu1 %v3892_v61  ;;  %v4227_v45 = vpop.eup %4226  ;;  %v3208_v60 = vmul.f32 -1.442695, %v4735_v11  ;;  %v194_v61 = vrot.slane %v4688_v54, %v193_v51 }
 0x10a   :  { %v565_v50 = vmul.f32 %v4227_v45, %v4733_v10  ;;  %v3950_v10 = vld [vmem:[#allocation7 + $0x508] ss:$16 sps:$4 sm:$0xff]   ;;  %v3994_v45 = vld [vmem:[#allocation7 + $0x5ec] ss:$16 sps:$4 sm:$0xff]  }
 0x10b   :  { %4228 = vpow2.f32 %v3208_v60  ;;  %v210_v54 = vmul.f32 %v194_v61, %v160_v3  ;;  %v4003_v61 = vld [vmem:[#allocation7 + $0x624] ss:$16 sps:$4 sm:$0xff]   ;;  %v4007_v3 = vld [vmem:[#allocation7 + $0x640] ss:$16 sps:$4 sm:$0xff]  }
 0x10c   :  { %1934 = vmatpush1.bf16.msra.mxu0 %v3887_v6  ;;  %2098 = vmatpush1.bf16.msra.mxu1 %v3890_v7  ;;  %v573_v57 = vpack.c.bf16 %v565_v50, %v565_v50  ;;  %v240_v6 = vrot.slane %v4690_v55, %v189_v52  ;;  %v3952_v7 = vld [vmem:[#allocation7 + $0x50c] ss:$16 sps:$4 sm:$0xff]   ;;  %v3992_v50 = vld [vmem:[#allocation7 + $0x5e8] ss:$16 sps:$4 sm:$0xff]   ;;  %v3997_v52 = vld [vmem:[#allocation7 + $0x604] ss:$16 sps:$4 sm:$0xff]  }
 0x10d   :  { %1935 = vmatprep.subr.bf16.mxu0 %v3895_v8  ;;  %2099 = vmatprep.subr.bf16.mxu1 %v3898_v9  ;;  %v209_v8 = vmul.f32 %v190_v62, %v159_v5  ;;  %v3947_v9 = vld [vmem:[#allocation7 + $0x500] ss:$16 sps:$4 sm:$0xff]   ;;  %v4006_v62 = vld [vmem:[#allocation7 + $0x62c] ss:$16 sps:$4 sm:$0xff]   ;;  %v4015_v5 = vld [vmem:[#allocation7 + $0x664] ss:$16 sps:$4 sm:$0xff]  }
 0x10f   :  { %v4752_v14 = vadd.f32 %v240_v6, %v209_v8  ;;  %v4018_v6 = vld [vmem:[#allocation7 + $0x66c] ss:$16 sps:$4 sm:$0xff]   ;;  %v4021_v8 = vld [vmem:[#allocation7 + $0x684] ss:$16 sps:$4 sm:$0xff]  }
 0x110   :  { %1936 = vmatpush1.bf16.msra.mxu0 %v3893_v12  ;;  %2100 = vmatpush1.bf16.msra.mxu1 %v3896_v13  ;;  %v3955_v12 = vld [vmem:[#allocation7 + $0x524] ss:$16 sps:$4 sm:$0xff]   ;;  %v4750_v13 = vadd.f32 %v244_v4, %v210_v54  ;;  %v4010_v4 = vld [vmem:[#allocation7 + $0x648] ss:$16 sps:$4 sm:$0xff]  }
 0x111   :  { %1946 = vmatprep.subr.bf16.mxu0 %v3901_v16  ;;  %2110 = vmatprep.subr.bf16.mxu1 %v3904_v17  ;;  %v3953_v16 = vld [vmem:[#allocation7 + $0x520] ss:$16 sps:$4 sm:$0xff]   ;;  %v3956_v17 = vld [vmem:[#allocation7 + $0x528] ss:$16 sps:$4 sm:$0xff]  }
 0x112   :  { %v3211_v55 = vmul.f32 -1.442695, %v4750_v13  ;;  %v4016_v54 = vld [vmem:[#allocation7 + $0x668] ss:$16 sps:$4 sm:$0xff]  }
 0x113   :  { %1938 = vmatmul.mubr.bf16.vlgmr.msra.gmra.mrb[0].mxu0 %v570_v20  ;;  %2102 = vmatmul.mubr.bf16.vlgmr.msra.gmra.mrb[0].mxu1 %v570_v20  ;;  %v3959_v20 = vld [vmem:[#allocation7 + $0x540] ss:$16 sps:$4 sm:$0xff]  }
 0x114   :  { %1947 = vmatpush1.bf16.msra.mxu0 %v3899_v18  ;;  %2111 = vmatpush1.bf16.msra.mxu1 %v3902_v19  ;;  %4230 = vpow2.f32 %v3211_v55  ;;  %v3961_v18 = vld [vmem:[#allocation7 + $0x544] ss:$16 sps:$4 sm:$0xff]   ;;  %v3964_v19 = vld [vmem:[#allocation7 + $0x54c] ss:$16 sps:$4 sm:$0xff]   ;;  %v4025_v55 = vld [vmem:[#allocation7 + $0x6a0] ss:$16 sps:$4 sm:$0xff]  }
 0x115   :  { %1948 = vmatprep.subr.bf16.mxu0 %v3907_v21  ;;  %2112 = vmatprep.subr.bf16.mxu1 %v3910_v22  ;;  %v3962_v21 = vld [vmem:[#allocation7 + $0x548] ss:$16 sps:$4 sm:$0xff]   ;;  %v4229_v22 = vpop.eup %4228 }
 0x116   :  { %1978 = vmatprep.mubr.bf16.mxu0 %v573_v57  ;;  %2142 = vmatprep.mubr.bf16.mxu1 %v573_v57  ;;  %v540_v26 = vadd.f32 1.0, %v4229_v22  ;;  %v3995_v57 = vld [vmem:[#allocation7 + $0x600] ss:$16 sps:$4 sm:$0xff]   ;;  %v4039_v22 = vld [vmem:[#allocation7 + $0x6e4] ss:$16 sps:$4 sm:$0xff]  }
 0x118   :  { %1949 = vmatpush1.bf16.msra.mxu0 %v3905_v0  ;;  %2113 = vmatpush1.bf16.msra.mxu1 %v3908_v23  ;;  %v3967_v0 = vld [vmem:[#allocation7 + $0x564] ss:$16 sps:$4 sm:$0xff]   ;;  %v3970_v23 = vld [vmem:[#allocation7 + $0x56c] ss:$16 sps:$4 sm:$0xff]   ;;  %4232 = vrcp.f32 %v540_v26 }
 0x119   :  { %1950 = vmatprep.subr.bf16.mxu0 %v3913_v24  ;;  %2114 = vmatprep.subr.bf16.mxu1 %v3916_v25  ;;  %v3965_v24 = vld [vmem:[#allocation7 + $0x560] ss:$16 sps:$4 sm:$0xff]   ;;  %v3968_v25 = vld [vmem:[#allocation7 + $0x568] ss:$16 sps:$4 sm:$0xff]   ;;  %v4048_v26 = vld [vmem:[#allocation7 + $0x70c] ss:$16 sps:$4 sm:$0xff]  }
 0x11c   :  { %1951 = vmatpush1.bf16.msra.mxu0 %v3911_v27  ;;  %2115 = vmatpush1.bf16.msra.mxu1 %v3914_v28  ;;  %v3973_v27 = vld [vmem:[#allocation7 + $0x584] ss:$16 sps:$4 sm:$0xff]   ;;  %v3976_v28 = vld [vmem:[#allocation7 + $0x58c] ss:$16 sps:$4 sm:$0xff]  }
 0x11d   :  { %1952 = vmatprep.subr.bf16.mxu0 %v3919_v29  ;;  %2116 = vmatprep.subr.bf16.mxu1 %v3922_v31  ;;  %v3974_v31 = vld [vmem:[#allocation7 + $0x588] ss:$16 sps:$4 sm:$0xff]  }
 0x11e   :  { %v4231_v29 = vpop.eup %4230 }
 0x120   :  { %1953 = vmatpush1.bf16.msra.mxu0 %v3917_v32  ;;  %2117 = vmatpush1.bf16.msra.mxu1 %v3920_v33  ;;  %v3979_v32 = vld [vmem:[#allocation7 + $0x5a4] ss:$16 sps:$4 sm:$0xff]   ;;  %v3982_v33 = vld [vmem:[#allocation7 + $0x5ac] ss:$16 sps:$4 sm:$0xff]  }
 0x121   :  { %1954 = vmatprep.subr.bf16.mxu0 %v3925_v34  ;;  %2118 = vmatprep.subr.bf16.mxu1 %v3928_v35  ;;  %v543_v34 = vadd.f32 1.0, %v4231_v29  ;;  %v3977_v35 = vld [vmem:[#allocation7 + $0x5a0] ss:$16 sps:$4 sm:$0xff]   ;;  %v4051_v29 = vld [vmem:[#allocation7 + $0x724] ss:$16 sps:$4 sm:$0xff]  }
 0x123   :  { %4234 = vrcp.f32 %v543_v34  ;;  %v4057_v34 = vld [vmem:[#allocation7 + $0x744] ss:$16 sps:$4 sm:$0xff]  }
 0x124   :  { %1955 = vmatpush1.bf16.msra.mxu0 %v3923_v37  ;;  %2119 = vmatpush1.bf16.msra.mxu1 %v3926_v38  ;;  %v3980_v37 = vld [vmem:[#allocation7 + $0x5a8] ss:$16 sps:$4 sm:$0xff]   ;;  %v3985_v38 = vld [vmem:[#allocation7 + $0x5c4] ss:$16 sps:$4 sm:$0xff]  }
 0x125   :  { %1956 = vmatprep.subr.bf16.mxu0 %v3931_v40  ;;  %2120 = vmatprep.subr.bf16.mxu1 %v3934_v41  ;;  %v3988_v40 = vld [vmem:[#allocation7 + $0x5cc] ss:$16 sps:$4 sm:$0xff]   ;;  %v3983_v41 = vld [vmem:[#allocation7 + $0x5c0] ss:$16 sps:$4 sm:$0xff]  }
 0x128   :  { %1957 = vmatpush1.bf16.msra.mxu0 %v3929_v43  ;;  %2121 = vmatpush1.bf16.msra.mxu1 %v3932_v44  ;;  %v3986_v43 = vld [vmem:[#allocation7 + $0x5c8] ss:$16 sps:$4 sm:$0xff]   ;;  %v3991_v44 = vld [vmem:[#allocation7 + $0x5e4] ss:$16 sps:$4 sm:$0xff]  }
 0x129   :  { %1958 = vmatprep.subr.bf16.mxu0 %v3937_v46  ;;  %2122 = vmatprep.subr.bf16.mxu1 %v3940_v49  ;;  %v4233_v46 = vpop.eup %4232  ;;  %v3989_v49 = vld [vmem:[#allocation7 + $0x5e0] ss:$16 sps:$4 sm:$0xff]  }
 0x12c   :  { %1959 = vmatpush1.bf16.msra.mxu0 %v3935_v53  ;;  %2123 = vmatpush1.bf16.msra.mxu1 %v3938_v56  ;;  %v4000_v53 = vld [vmem:[#allocation7 + $0x60c] ss:$16 sps:$4 sm:$0xff]   ;;  %v564_v56 = vmul.f32 %v4233_v46, %v4735_v11  ;;  %v4009_v11 = vld [vmem:[#allocation7 + $0x644] ss:$16 sps:$4 sm:$0xff]  }
 0x12d   :  { %1960 = vmatprep.subr.bf16.mxu0 %v3943_v58  ;;  %2124 = vmatprep.subr.bf16.mxu1 %v3946_v59  ;;  %v4235_v51 = vpop.eup %4234  ;;  %v3998_v58 = vld [vmem:[#allocation7 + $0x608] ss:$16 sps:$4 sm:$0xff]   ;;  %v4069_v46 = vld [vmem:[#allocation7 + $0x784] ss:$16 sps:$4 sm:$0xff]  }
 0x12e   :  { %v567_v59 = vmul.f32 %v4235_v51, %v4750_v13  ;;  %v572_v60 = vpack.c.bf16 %v564_v56, %v564_v56  ;;  %v4027_v13 = vld [vmem:[#allocation7 + $0x6a4] ss:$16 sps:$4 sm:$0xff]   ;;  %v4070_v51 = vld [vmem:[#allocation7 + $0x788] ss:$16 sps:$4 sm:$0xff]  }
 0x12f   :  { %v509_v56 = vld [vmem:[#allocation7 + $0x7c0] sm:$0xff] }
 0x130   :  { %1961 = vmatpush1.bf16.msra.mxu0 %v3941_v63  ;;  %2125 = vmatpush1.bf16.msra.mxu1 %v3944_v1  ;;  %v4001_v63 = vld [vmem:[#allocation7 + $0x620] ss:$16 sps:$4 sm:$0xff]   ;;  %v575_v1 = vpack.c.bf16 %v567_v59, %v567_v59 }
 0x131   :  { %1962 = vmatprep.subr.bf16.mxu0 %v3949_v2  ;;  %2126 = vmatprep.subr.bf16.mxu1 %v3952_v7  ;;  %v4012_v2 = vld [vmem:[#allocation7 + $0x64c] ss:$16 sps:$4 sm:$0xff]   ;;  %v4013_v7 = vld [vmem:[#allocation7 + $0x660] ss:$16 sps:$4 sm:$0xff]  }
 0x132   :  { %v4073_v59 = vld [vmem:[#allocation7 + $0x7a0] ss:$16 sps:$4 sm:$0xff]  }
 0x134   :  { %1963 = vmatpush1.bf16.msra.mxu0 %v3947_v9  ;;  %2127 = vmatpush1.bf16.msra.mxu1 %v3950_v10  ;;  %v4024_v9 = vld [vmem:[#allocation7 + $0x68c] ss:$16 sps:$4 sm:$0xff]   ;;  %v4019_v10 = vld [vmem:[#allocation7 + $0x680] ss:$16 sps:$4 sm:$0xff]  }
 0x135   :  { %1964 = vmatprep.subr.bf16.mxu0 %v3955_v12  ;;  %2128 = vmatprep.subr.bf16.mxu1 %v3958_v15  ;;  %v4022_v12 = vld [vmem:[#allocation7 + $0x688] ss:$16 sps:$4 sm:$0xff]   ;;  %v4030_v15 = vld [vmem:[#allocation7 + $0x6ac] ss:$16 sps:$4 sm:$0xff]  }
 0x138   :  { %1965 = vmatpush1.bf16.msra.mxu0 %v3953_v16  ;;  %2129 = vmatpush1.bf16.msra.mxu1 %v3956_v17  ;;  %v4028_v16 = vld [vmem:[#allocation7 + $0x6a8] ss:$16 sps:$4 sm:$0xff]   ;;  %v4033_v17 = vld [vmem:[#allocation7 + $0x6c4] ss:$16 sps:$4 sm:$0xff]  }
 0x139   :  { %1966 = vmatprep.subr.bf16.mxu0 %v3961_v18  ;;  %2130 = vmatprep.subr.bf16.mxu1 %v3964_v19  ;;  %v4036_v18 = vld [vmem:[#allocation7 + $0x6cc] ss:$16 sps:$4 sm:$0xff]   ;;  %v3210_v19 = vmul.f32 -1.442695, %v4752_v14 }
 0x13b   :  { %4236 = vpow2.f32 %v3210_v19  ;;  %v4109_v19 = vld [vmem:[#allocation10 + $0x84] ss:$8 sps:$4 sm:$0xff]  }
 0x13c   :  { %1967 = vmatpush1.bf16.msra.mxu0 %v3959_v20  ;;  %2131 = vmatpush1.bf16.msra.mxu1 %v3962_v21  ;;  %v4031_v20 = vld [vmem:[#allocation7 + $0x6c0] ss:$16 sps:$4 sm:$0xff]   ;;  %v4034_v21 = vld [vmem:[#allocation7 + $0x6c8] ss:$16 sps:$4 sm:$0xff]  }
 0x13d   :  { %1968 = vmatprep.subr.bf16.mxu0 %v3967_v0  ;;  %2132 = vmatprep.subr.bf16.mxu1 %v3970_v23  ;;  %v4042_v0 = vld [vmem:[#allocation7 + $0x6ec] ss:$16 sps:$4 sm:$0xff]   ;;  %v4037_v23 = vld [vmem:[#allocation7 + $0x6e0] ss:$16 sps:$4 sm:$0xff]  }
 0x140   :  { %1969 = vmatpush1.bf16.msra.mxu0 %v3965_v24  ;;  %2133 = vmatpush1.bf16.msra.mxu1 %v3968_v25  ;;  %v4040_v24 = vld [vmem:[#allocation7 + $0x6e8] ss:$16 sps:$4 sm:$0xff]   ;;  %v4045_v25 = vld [vmem:[#allocation7 + $0x704] ss:$16 sps:$4 sm:$0xff]  }
 0x141   :  { %1970 = vmatprep.subr.bf16.mxu0 %v3973_v27  ;;  %2134 = vmatprep.subr.bf16.mxu1 %v3976_v28  ;;  %v4043_v27 = vld [vmem:[#allocation7 + $0x700] ss:$16 sps:$4 sm:$0xff]   ;;  %v4046_v28 = vld [vmem:[#allocation7 + $0x708] ss:$16 sps:$4 sm:$0xff]  }
 0x144   :  { %1971 = vmatpush1.bf16.msra.mxu0 %v3971_v30  ;;  %2135 = vmatpush1.bf16.msra.mxu1 %v3974_v31  ;;  %v4054_v30 = vld [vmem:[#allocation7 + $0x72c] ss:$16 sps:$4 sm:$0xff]  }
 0x145   :  { %1972 = vmatprep.subr.bf16.mxu0 %v3979_v32  ;;  %2136 = vmatprep.subr.bf16.mxu1 %v3982_v33  ;;  %v4237_v31 = vpop.eup %4236  ;;  %v4049_v32 = vld [vmem:[#allocation7 + $0x720] ss:$16 sps:$4 sm:$0xff]   ;;  %v4052_v33 = vld [vmem:[#allocation7 + $0x728] ss:$16 sps:$4 sm:$0xff]  }
 0x148   :  { %1973 = vmatpush1.bf16.msra.mxu0 %v3977_v35  ;;  %2137 = vmatpush1.bf16.msra.mxu1 %v3980_v37  ;;  %v4060_v35 = vld [vmem:[#allocation7 + $0x74c] ss:$16 sps:$4 sm:$0xff]   ;;  %v542_v37 = vadd.f32 1.0, %v4237_v31 }
 0x149   :  { %1974 = vmatprep.subr.bf16.mxu0 %v3985_v38  ;;  %2138 = vmatprep.subr.bf16.mxu1 %v3988_v40  ;;  %v4055_v38 = vld [vmem:[#allocation7 + $0x740] ss:$16 sps:$4 sm:$0xff]   ;;  %v4058_v40 = vld [vmem:[#allocation7 + $0x748] ss:$16 sps:$4 sm:$0xff]   ;;  %v4125_v31 = vld [vmem:[#allocation10 + $0xe0] ss:$8 sps:$4 sm:$0xff]  }
 0x14a   :  { %4238 = vrcp.f32 %v542_v37 }
 0x14c   :  { %1975 = vmatpush1.bf16.msra.mxu0 %v3983_v41  ;;  %2139 = vmatpush1.bf16.msra.mxu1 %v3986_v43  ;;  %v4063_v41 = vld [vmem:[#allocation7 + $0x764] ss:$16 sps:$4 sm:$0xff]   ;;  %v4066_v43 = vld [vmem:[#allocation7 + $0x76c] ss:$16 sps:$4 sm:$0xff]  }
 0x14d   :  { %1976 = vmatprep.subr.bf16.mxu0 %v3991_v44  ;;  %2140 = vmatprep.subr.bf16.mxu1 %v3994_v45  ;;  %v4061_v44 = vld [vmem:[#allocation7 + $0x760] ss:$16 sps:$4 sm:$0xff]   ;;  %v4064_v45 = vld [vmem:[#allocation7 + $0x768] ss:$16 sps:$4 sm:$0xff]  }
 0x150   :  { %1977 = vmatpush1.bf16.msra.mxu0 %v3989_v49  ;;  %2141 = vmatpush1.bf16.msra.mxu1 %v3992_v50  ;;  %v4072_v49 = vld [vmem:[#allocation7 + $0x78c] ss:$16 sps:$4 sm:$0xff]   ;;  %v4067_v50 = vld [vmem:[#allocation7 + $0x780] ss:$16 sps:$4 sm:$0xff]  }
 0x151   :  { %1987 = vmatprep.subr.bf16.mxu0 %v3997_v52  ;;  %2151 = vmatprep.subr.bf16.mxu1 %v4000_v53  ;;  %v4075_v52 = vld [vmem:[#allocation7 + $0x7a4] ss:$16 sps:$4 sm:$0xff]   ;;  %v4078_v53 = vld [vmem:[#allocation7 + $0x7ac] ss:$16 sps:$4 sm:$0xff]  }
 0x153   :  { %1979 = vmatmul.mubr.bf16.vlgmr.msra.gmra.mrb[0].mxu0 %v572_v60  ;;  %2143 = vmatmul.mubr.bf16.vlgmr.msra.gmra.mrb[0].mxu1 %v572_v60  ;;  %v4076_v60 = vld [vmem:[#allocation7 + $0x7a8] ss:$16 sps:$4 sm:$0xff]  }
 0x154   :  { %1988 = vmatpush1.bf16.msra.mxu0 %v3995_v57  ;;  %2152 = vmatpush1.bf16.msra.mxu1 %v3998_v58  ;;  %v510_v57 = vld [vmem:[#allocation7 + $0x7c8] sm:$0xff]  ;;  %v4239_v58 = vpop.eup %4238 }
 0x155   :  { %1989 = vmatprep.subr.bf16.mxu0 %v4003_v61  ;;  %2153 = vmatprep.subr.bf16.mxu1 %v4006_v62  ;;  %v3461_v61 = vcombine.high %v509_v56, %v509_v56  ;;  %v3463_v62 = vcombine.high %v510_v57, %v510_v57 }
 0x156   :  { %3465 = vmatprep.mubr.msk.bf16.mxu0 %vm1847_vm0, %v575_v1  ;;  %3467 = vmatprep.mubr.msk.bf16.mxu1 %vm1847_vm0, %v575_v1  ;;  %v566_v1 = vmul.f32 %v4239_v58, %v4752_v14  ;;  %v4089_v14 = vld [vmem:[#allocation10 + $0x20] ss:$8 sps:$4 sm:$0xff]  }
 0x158   :  { %1990 = vmatpush1.bf16.msra.mxu0 %v4001_v63  ;;  %2154 = vmatpush1.bf16.msra.mxu1 %v4004_v42  ;;  %v3460_v63 = vcombine.low %v509_v56, %v509_v56  ;;  %v3462_v42 = vcombine.low %v510_v57, %v510_v57 }
 0x159   :  { %1991 = vmatprep.subr.bf16.mxu0 %v4009_v11  ;;  %2155 = vmatprep.subr.bf16.mxu1 %v4012_v2 }
 0x15a   :  { %v1853_v11 = vsel %vm1851_vm1, %v3460_v63, 0  ;;  %v1859_v2 = vsel %vm1851_vm1, %v3462_v42, 0 }
 0x15c   :  { %1992 = vmatpush1.bf16.msra.mxu0 %v4007_v3  ;;  %2156 = vmatpush1.bf16.msra.mxu1 %v4010_v4  ;;  %v4085_v3 = vld [vmem:[#allocation10 + $0x4] ss:$8 sps:$4 sm:$0xff]   ;;  %v574_v4 = vpack.c.bf16 %v566_v1, %v566_v1 }
 0x15d   :  { %1993 = vmatprep.subr.bf16.mxu0 %v4015_v5  ;;  %2157 = vmatprep.subr.bf16.mxu1 %v4018_v6  ;;  %v4083_v5 = vld [vmem:[#allocation10] ss:$8 sps:$4 sm:$0xff]   ;;  %v4088_v6 = vld [vmem:[#allocation10 + $0x14] ss:$8 sps:$4 sm:$0xff]  }
 0x160   :  { %1994 = vmatpush1.bf16.msra.mxu0 %v4013_v7  ;;  %2158 = vmatpush1.bf16.msra.mxu1 %v4016_v54  ;;  %v4086_v7 = vld [vmem:[#allocation10 + $0x10] ss:$8 sps:$4 sm:$0xff]   ;;  %v4091_v54 = vld [vmem:[#allocation10 + $0x24] ss:$8 sps:$4 sm:$0xff]  }
 0x161   :  { %1995 = vmatprep.subr.bf16.mxu0 %v4021_v8  ;;  %2159 = vmatprep.subr.bf16.mxu1 %v4024_v9  ;;  %v4094_v8 = vld [vmem:[#allocation10 + $0x34] ss:$8 sps:$4 sm:$0xff]   ;;  %v4092_v9 = vld [vmem:[#allocation10 + $0x30] ss:$8 sps:$4 sm:$0xff]  }
 0x164   :  { %1996 = vmatpush1.bf16.msra.mxu0 %v4019_v10  ;;  %2160 = vmatpush1.bf16.msra.mxu1 %v4022_v12  ;;  %v4097_v10 = vld [vmem:[#allocation10 + $0x44] ss:$8 sps:$4 sm:$0xff]   ;;  %v4095_v12 = vld [vmem:[#allocation10 + $0x40] ss:$8 sps:$4 sm:$0xff]  }
 0x165   :  { %1997 = vmatprep.subr.bf16.mxu0 %v4027_v13  ;;  %2161 = vmatprep.subr.bf16.mxu1 %v4030_v15  ;;  %v4100_v13 = vld [vmem:[#allocation10 + $0x54] ss:$8 sps:$4 sm:$0xff]   ;;  %v4098_v15 = vld [vmem:[#allocation10 + $0x50] ss:$8 sps:$4 sm:$0xff]  }
 0x168   :  { %1998 = vmatpush1.bf16.msra.mxu0 %v4025_v55  ;;  %2162 = vmatpush1.bf16.msra.mxu1 %v4028_v16  ;;  %v4103_v55 = vld [vmem:[#allocation10 + $0x64] ss:$8 sps:$4 sm:$0xff]   ;;  %v4101_v16 = vld [vmem:[#allocation10 + $0x60] ss:$8 sps:$4 sm:$0xff]  }
 0x169   :  { %1999 = vmatprep.subr.bf16.mxu0 %v4033_v17  ;;  %2163 = vmatprep.subr.bf16.mxu1 %v4036_v18  ;;  %v4106_v17 = vld [vmem:[#allocation10 + $0x74] ss:$8 sps:$4 sm:$0xff]   ;;  %v4104_v18 = vld [vmem:[#allocation10 + $0x70] ss:$8 sps:$4 sm:$0xff]  }
 0x16c   :  { %2000 = vmatpush1.bf16.msra.mxu0 %v4031_v20  ;;  %2164 = vmatpush1.bf16.msra.mxu1 %v4034_v21  ;;  %v4107_v20 = vld [vmem:[#allocation10 + $0x80] ss:$8 sps:$4 sm:$0xff]   ;;  %v4112_v21 = vld [vmem:[#allocation10 + $0x94] ss:$8 sps:$4 sm:$0xff]  }
 0x16d   :  { %2001 = vmatprep.subr.bf16.mxu0 %v4039_v22  ;;  %2165 = vmatprep.subr.bf16.mxu1 %v4042_v0  ;;  %v4110_v22 = vld [vmem:[#allocation10 + $0x90] ss:$8 sps:$4 sm:$0xff]   ;;  %v4115_v0 = vld [vmem:[#allocation10 + $0xa4] ss:$8 sps:$4 sm:$0xff]  }
 0x170   :  { %2002 = vmatpush1.bf16.msra.mxu0 %v4037_v23  ;;  %2166 = vmatpush1.bf16.msra.mxu1 %v4040_v24  ;;  %v4113_v23 = vld [vmem:[#allocation10 + $0xa0] ss:$8 sps:$4 sm:$0xff]   ;;  %v4118_v24 = vld [vmem:[#allocation10 + $0xb4] ss:$8 sps:$4 sm:$0xff]  }
 0x171   :  { %2003 = vmatprep.subr.bf16.mxu0 %v4045_v25  ;;  %2167 = vmatprep.subr.bf16.mxu1 %v4048_v26  ;;  %v4116_v25 = vld [vmem:[#allocation10 + $0xb0] ss:$8 sps:$4 sm:$0xff]   ;;  %v4121_v26 = vld [vmem:[#allocation10 + $0xc4] ss:$8 sps:$4 sm:$0xff]  }
 0x174   :  { %2004 = vmatpush1.bf16.msra.mxu0 %v4043_v27  ;;  %2168 = vmatpush1.bf16.msra.mxu1 %v4046_v28  ;;  %v4119_v27 = vld [vmem:[#allocation10 + $0xc0] ss:$8 sps:$4 sm:$0xff]   ;;  %v4124_v28 = vld [vmem:[#allocation10 + $0xd4] ss:$8 sps:$4 sm:$0xff]  }
 0x175   :  { %2005 = vmatprep.subr.bf16.mxu0 %v4051_v29  ;;  %2169 = vmatprep.subr.bf16.mxu1 %v4054_v30  ;;  %v4122_v29 = vld [vmem:[#allocation10 + $0xd0] ss:$8 sps:$4 sm:$0xff]   ;;  %v4127_v30 = vld [vmem:[#allocation10 + $0xe4] ss:$8 sps:$4 sm:$0xff]  }
 0x178   :  { %2006 = vmatpush1.bf16.msra.mxu0 %v4049_v32  ;;  %2170 = vmatpush1.bf16.msra.mxu1 %v4052_v33  ;;  %v4130_v32 = vld [vmem:[#allocation10 + $0xf4] ss:$8 sps:$4 sm:$0xff]   ;;  %v4128_v33 = vld [vmem:[#allocation10 + $0xf0] ss:$8 sps:$4 sm:$0xff]  }
 0x179   :  { %2007 = vmatprep.subr.bf16.mxu0 %v4057_v34  ;;  %2171 = vmatprep.subr.bf16.mxu1 %v4060_v35  ;;  %v4133_v34 = vld [vmem:[#allocation10 + $0x104] ss:$8 sps:$4 sm:$0xff]   ;;  %v4761_v35 = vld [vmem:[#allocation8] sm:$0xf] }
 0x17a   :  { %v580_v37 = vrot.slane %v4761_v35, %v4683_v48 }
 0x17c   :  { %2008 = vmatpush1.bf16.msra.mxu0 %v4055_v38  ;;  %2172 = vmatpush1.bf16.msra.mxu1 %v4058_v40  ;;  %v584_v38 = vrot.slane %v4761_v35, %v4680_v47  ;;  %v592_v40 = vrot.slane %v4761_v35, %v4701_v36 }
 0x17d   :  { %2009 = vmatprep.subr.bf16.mxu0 %v4063_v41  ;;  %2173 = vmatprep.subr.bf16.mxu1 %v4066_v43 }
 0x180   :  { %2010 = vmatpush1.bf16.msra.mxu0 %v4061_v44  ;;  %2174 = vmatpush1.bf16.msra.mxu1 %v4064_v45 }
 0x181   :  { %2011 = vmatprep.subr.bf16.mxu0 %v4069_v46  ;;  %2175 = vmatprep.subr.bf16.mxu1 %v4072_v49 }
 0x184   :  { %2012 = vmatpush1.bf16.msra.mxu0 %v4067_v50  ;;  %2176 = vmatpush1.bf16.msra.mxu1 %v4070_v51 }
 0x185   :  { %2013 = vmatprep.subr.bf16.mxu0 %v4075_v52  ;;  %2177 = vmatprep.subr.bf16.mxu1 %v4078_v53 }
 0x188   :  { %2014 = vmatpush1.bf16.msra.mxu0 %v4073_v59  ;;  %2178 = vmatpush1.bf16.msra.mxu1 %v4076_v60 }
 0x189   :  { %3464 = vmatprep.subr.msk.bf16.mxu0 %vm1851_vm1, %v3461_v61  ;;  %3466 = vmatprep.subr.msk.bf16.mxu1 %vm1851_vm1, %v3463_v62 }
 0x18c   :  { %2016 = vmatpush1.bf16.msra.mxu0 %v1853_v11  ;;  %2180 = vmatpush1.bf16.msra.mxu1 %v1859_v2 }
 0x18d   :  { %2625 = vmatprep.subr.bf16.mxu0 %v4085_v3 }
 0x18f   :  { %2020 = vmatmul.mubr.bf16.vlgmr.msra.gmra.mrb[0].mxu0 %v574_v4  ;;  %2184 = vmatmul.mubr.bf16.vlgmr.msra.gmra.mrb[0].mxu1 %v574_v4 }
 0x190   :  { %2626 = vmatpush1.bf16.msra.mxu0 %v4083_v5 }
 0x191   :  { %2627 = vmatprep.subr.bf16.mxu0 %v4088_v6 }
 0x194   :  { %2628 = vmatpush1.bf16.msra.mxu0 %v4086_v7  ;;  %v4131_v7 = vld [vmem:[#allocation10 + $0x100] ss:$8 sps:$4 sm:$0xff]  }
 0x195   :  { %2629 = vmatprep.subr.bf16.mxu0 %v4091_v54 }
 0x198   :  { %2630 = vmatpush1.bf16.msra.mxu0 %v4089_v14  ;;  %v4136_v14 = vld [vmem:[#allocation10 + $0x114] ss:$8 sps:$4 sm:$0xff]  }
 0x199   :  { %2631 = vmatprep.subr.bf16.mxu0 %v4094_v8 }
 0x19c   :  { %2632 = vmatpush1.bf16.msra.mxu0 %v4092_v9  ;;  %v4134_v9 = vld [vmem:[#allocation10 + $0x110] ss:$8 sps:$4 sm:$0xff]  }
 0x19d   :  { %2633 = vmatprep.subr.bf16.mxu0 %v4097_v10  ;;  %v4139_v10 = vld [vmem:[#allocation10 + $0x124] ss:$8 sps:$4 sm:$0xff]  }
 0x1a0   :  { %2634 = vmatpush1.bf16.msra.mxu0 %v4095_v12  ;;  %v4137_v12 = vld [vmem:[#allocation10 + $0x120] ss:$8 sps:$4 sm:$0xff]  }
 0x1a1   :  { %2635 = vmatprep.subr.bf16.mxu0 %v4100_v13  ;;  %v4142_v13 = vld [vmem:[#allocation10 + $0x134] ss:$8 sps:$4 sm:$0xff]  }
 0x1a4   :  { %2636 = vmatpush1.bf16.msra.mxu0 %v4098_v15  ;;  %v4140_v15 = vld [vmem:[#allocation10 + $0x130] ss:$8 sps:$4 sm:$0xff]  }
 0x1a5   :  { %2637 = vmatprep.subr.bf16.mxu0 %v4103_v55  ;;  %v4145_v55 = vld [vmem:[#allocation10 + $0x144] ss:$8 sps:$4 sm:$0xff]  }
 0x1a8   :  { %2638 = vmatpush1.bf16.msra.mxu0 %v4101_v16  ;;  %v4143_v16 = vld [vmem:[#allocation10 + $0x140] ss:$8 sps:$4 sm:$0xff]  }
 0x1a9   :  { %2639 = vmatprep.subr.bf16.mxu0 %v4106_v17  ;;  %v4148_v17 = vld [vmem:[#allocation10 + $0x154] ss:$8 sps:$4 sm:$0xff]  }
 0x1ac   :  { %2640 = vmatpush1.bf16.msra.mxu0 %v4104_v18  ;;  %v588_v18 = vrot.slane %v4761_v35, %v4704_v39  ;;  %v4158_v39 = vld [vmem:[#allocation10 + $0x190] ss:$8 sps:$4 sm:$0xff]   ;;  %v4167_v35 = vld [vmem:[#allocation10 + $0x1c0] ss:$8 sps:$4 sm:$0xff]  }
 0x1ad   :  { %2641 = vmatprep.subr.bf16.mxu0 %v4109_v19  ;;  %v4146_v19 = vld [vmem:[#allocation10 + $0x150] ss:$8 sps:$4 sm:$0xff]  }
 0x1b0   :  { %2642 = vmatpush1.bf16.msra.mxu0 %v4107_v20  ;;  %v4151_v20 = vld [vmem:[#allocation10 + $0x164] ss:$8 sps:$4 sm:$0xff]  }
 0x1b1   :  { %2643 = vmatprep.subr.bf16.mxu0 %v4112_v21 }
 0x1b4   :  { %2644 = vmatpush1.bf16.msra.mxu0 %v4110_v22  ;;  %v4149_v22 = vld [vmem:[#allocation10 + $0x160] ss:$8 sps:$4 sm:$0xff]  }
 0x1b5   :  { %2645 = vmatprep.subr.bf16.mxu0 %v4115_v0  ;;  %v4154_v0 = vld [vmem:[#allocation10 + $0x174] ss:$8 sps:$4 sm:$0xff]  }
 0x1b8   :  { %2646 = vmatpush1.bf16.msra.mxu0 %v4113_v23 }
 0x1b9   :  { %2647 = vmatprep.subr.bf16.mxu0 %v4118_v24  ;;  %v4152_v24 = vld [vmem:[#allocation10 + $0x170] ss:$8 sps:$4 sm:$0xff]  }
 0x1bc   :  { %2648 = vmatpush1.bf16.msra.mxu0 %v4116_v25  ;;  %v4157_v25 = vld [vmem:[#allocation10 + $0x184] ss:$8 sps:$4 sm:$0xff]  }
 0x1bd   :  { %2649 = vmatprep.subr.bf16.mxu0 %v4121_v26  ;;  %v4155_v26 = vld [vmem:[#allocation10 + $0x180] ss:$8 sps:$4 sm:$0xff]  }
 0x1c0   :  { %2650 = vmatpush1.bf16.msra.mxu0 %v4119_v27  ;;  %v4160_v27 = vld [vmem:[#allocation10 + $0x194] ss:$8 sps:$4 sm:$0xff]  }
 0x1c1   :  { %2651 = vmatprep.subr.bf16.mxu0 %v4124_v28  ;;  %v4163_v28 = vld [vmem:[#allocation10 + $0x1a4] ss:$8 sps:$4 sm:$0xff]  }
 0x1c4   :  { %2652 = vmatpush1.bf16.msra.mxu0 %v4122_v29  ;;  %v4161_v29 = vld [vmem:[#allocation10 + $0x1a0] ss:$8 sps:$4 sm:$0xff]  }
 0x1c5   :  { %2653 = vmatprep.subr.bf16.mxu0 %v4127_v30 }
 0x1c8   :  { %2654 = vmatpush1.bf16.msra.mxu0 %v4125_v31  ;;  %v4166_v31 = vld [vmem:[#allocation10 + $0x1b4] ss:$8 sps:$4 sm:$0xff]  }
 0x1c9   :  { %2655 = vmatprep.subr.bf16.mxu0 %v4130_v32 }
 0x1cc   :  { %2656 = vmatpush1.bf16.msra.mxu0 %v4128_v33  ;;  %v4164_v33 = vld [vmem:[#allocation10 + $0x1b0] ss:$8 sps:$4 sm:$0xff]  }
 0x1cd   :  { %2666 = vmatprep.subr.bf16.mxu0 %v4133_v34  ;;  %v4169_v34 = vld [vmem:[#allocation10 + $0x1c4] ss:$8 sps:$4 sm:$0xff]  }
 0x262   :  { %v2021_v41 = vpop.f32.mrb[0].mxu0  ;;  %v2185_v43 = vpop.f32.mrb[0].mxu1 }
 0x263   :  { %v3658_v44 = vadd.f32 %v2021_v41, %v580_v37  ;;  %v2023_v45 = vpop.f32.mrb[1].mxu0  ;;  %v2187_v46 = vpop.f32.mrb[1].mxu1  ;;  %v3660_v21 = vadd.f32 %v2185_v43, %v588_v18  ;;  %v4172_v37 = vld [vmem:[#allocation10 + $0x1d4] ss:$8 sps:$4 sm:$0xff]   ;;  %v4173_v43 = vld [vmem:[#allocation10 + $0x1e0] ss:$8 sps:$4 sm:$0xff]  }
 0x264   :  { %v3659_v49 = vadd.f32 %v2023_v45, %v584_v38  ;;  %v3661_v50 = vadd.f32 %v2187_v46, %v592_v40  ;;  %v2025_v51 = vpop.f32.mrb[2].mxu0  ;;  %v2189_v52 = vpop.f32.mrb[2].mxu1  ;;  %v4170_v38 = vld [vmem:[#allocation10 + $0x1d0] ss:$8 sps:$4 sm:$0xff]   ;;  %v4175_v40 = vld [vmem:[#allocation10 + $0x1e4] ss:$8 sps:$4 sm:$0xff]  }
 0x265   :  { %v3468_v53 = vmul.f32 -1.442695, %v3658_v44  ;;  %v2026_v56 = vpop.f32.mrb[3].mxu0  ;;  %v2190_v57 = vpop.f32.mrb[3].mxu1  ;;  %v3470_v23 = vmul.f32 -1.442695, %v3660_v21 }
 0x266   :  { %v3469_v58 = vmul.f32 -1.442695, %v3659_v49  ;;  %v3471_v59 = vmul.f32 -1.442695, %v3661_v50  ;;  %v2254_v41 = vld [vmem:[#allocation10 + $0x1f0] sm:$0x33] }
 0x267   :  { %4240 = vpow2.f32 %v3468_v53  ;;  %v3534_v45 = vcombine.low %v2254_v41, %v2254_v41  ;;  %v4178_v52 = vld [vmem:[%s4908_s7 + $0x40] sm:$0xff]   ;;  %v4180_v56 = vld [vmem:[%s4908_s7 + $0x48] sm:$0xff]  }
 0x268   :  { %4242 = vpow2.f32 %v3469_v58  ;;  %v4179_v53 = vld [vmem:[%s4908_s7] sm:$0xff]   ;;  %3579 = vmatprep.subr.bf16.mxu1 %v4178_v52  ;;  %v4181_v57 = vld [vmem:[%s4908_s7 + $0x8] sm:$0xff]   ;;  %v4182_v58 = vld [vmem:[%s4908_s7 + $0x50] sm:$0xff]  }
 0x269   :  { %4244 = vpow2.f32 %v3471_v59  ;;  %3580 = vmatpush3.bf16.msra.mxu1 %v4179_v53  ;;  %v4183_v59 = vld [vmem:[%s4908_s7 + $0x10] sm:$0xff]  }
 0x26a   :  { %3581 = vmatprep.subr.bf16.mxu1 %v4180_v56 }
 0x26d   :  { %3582 = vmatpush3.bf16.msra.mxu1 %v4181_v57 }
 0x26e   :  { %3583 = vmatprep.subr.bf16.mxu1 %v4182_v58 }
 0x271   :  { %v4241_v60 = vpop.eup %4240  ;;  %3584 = vmatpush3.bf16.msra.mxu1 %v4183_v59 }
 0x272   :  { %v2268_v61 = vadd.f32 1.0, %v4241_v60  ;;  %v4243_v36 = vpop.eup %4242  ;;  %v4184_v60 = vld [vmem:[%s4908_s7 + $0x58] sm:$0xff]  }
 0x273   :  { %v4245_v62 = vpop.eup %4244  ;;  %v2269_v63 = vadd.f32 1.0, %v4243_v36  ;;  %3585 = vmatprep.subr.bf16.mxu1 %v4184_v60  ;;  %v4186_v36 = vld [vmem:[%s4908_s7 + $0x60] sm:$0xff]  }
 0x274   :  { %4246 = vrcp.f32 %v2268_v61  ;;  %v2271_v42 = vadd.f32 1.0, %v4245_v62  ;;  %v4185_v61 = vld [vmem:[%s4908_s7 + $0x18] sm:$0xff]   ;;  %v4187_v62 = vld [vmem:[%s4908_s7 + $0x20] sm:$0xff]  }
 0x275   :  { %4248 = vrcp.f32 %v2269_v63  ;;  %3586 = vmatpush3.bf16.msra.mxu1 %v4185_v61  ;;  %v4188_v63 = vld [vmem:[%s4908_s7 + $0x68] sm:$0xff]  }
 0x276   :  { %4250 = vrcp.f32 %v2271_v42  ;;  %3587 = vmatprep.subr.bf16.mxu1 %v4186_v36  ;;  %v4189_v42 = vld [vmem:[%s4908_s7 + $0x28] sm:$0xff]  }
 0x277   :  { %4252 = vpow2.f32 %v3470_v23  ;;  %v4195_v23 = vld [vmem:[%s4910_s9 + $0x8] sm:$0xff]  }
 0x279   :  { %3588 = vmatpush3.bf16.msra.mxu1 %v4187_v62 }
 0x27a   :  { %3589 = vmatprep.subr.bf16.mxu1 %v4188_v63 }
 0x27d   :  { %3590 = vmatpush3.bf16.msra.mxu1 %v4189_v42  ;;  %v4206_v42 = vld [vmem:[%s4914_s13] sm:$0xff]  }
 0x27e   :  { %v4247_v1 = vpop.eup %4246 }
 0x27f   :  { %v4249_v11 = vpop.eup %4248  ;;  %v2280_v2 = vmul.f32 %v4247_v1, %v3658_v44  ;;  %v3535_v44 = vcombine.high %v2254_v41, %v2254_v41  ;;  %v4190_v1 = vld [vmem:[%s4908_s7 + $0x70] sm:$0xff]  }
 0x280   :  { %v4251_v3 = vpop.eup %4250  ;;  %v2281_v4 = vmul.f32 %v4249_v11, %v3659_v49  ;;  %v4191_v11 = vld [vmem:[%s4908_s7 + $0x30] sm:$0xff]   ;;  %3591 = vmatprep.subr.bf16.mxu1 %v4190_v1  ;;  %v4207_v1 = vld [vmem:[%s4914_s13 + $0x8] sm:$0xff]   ;;  %s4500_s13 = smov [#allocation16]  }
 0x281   :  { %v2283_v5 = vmul.f32 %v4251_v3, %v3661_v50  ;;  %v2284_v54 = vpack.c.bf16 %v2280_v2, %v2280_v2  ;;  %v4253_v30 = vpop.eup %4252  ;;  %v2620_v50 = vsel %vm2618_vm3, %v3534_v45, 0  ;;  %3592 = vmatpush3.bf16.msra.mxu1 %v4191_v11  ;;  %v4192_v2 = vld [vmem:[%s4908_s7 + $0x78] sm:$0xff]   ;;  %v4202_v45 = vld [vmem:[%s4912_s11] sm:$0xff]   ;;  %s3191_s2 = sshll.u32 %s4500_s13, 4  ;;  %s3192_s2 = int_to_ptr.vmem [resolvable:$true] %s3191_s2 }
 0x282   :  { %v2285_v6 = vpack.c.bf16 %v2281_v4, %v2281_v4  ;;  %v2270_v32 = vadd.f32 1.0, %v4253_v30  ;;  %v4193_v3 = vld [vmem:[%s4908_s7 + $0x38] sm:$0xff]   ;;  %3593 = vmatprep.subr.bf16.mxu1 %v4192_v2  ;;  %v3540_v30 = vld [vmem:[%s4909_s8] ss:$0 sm:$0xff]  ;;  %s4452_s1 = scalar_lea.vmem %s3192_s2, 128  ;;  %p4457_p9 = scmp.lt.s32.totalorder %s3192_s2, %s3192_s2 }
 0x283   :  { %v2287_v8 = vpack.c.bf16 %v2283_v5, %v2283_v5  ;;  %v2255_v4 = vld [vmem:[#allocation11] sm:$0x3]  ;;  %v3568_v11 = vld [vmem:[#allocation14] ss:$0 sm:$0xff]  ;;  %p4453_p8 = scmp.ne.s32.totalorder %s3192_s2, %s4452_s1  ;;  %p4458_p10 = scmp.lt.s32.totalorder %s4452_s1, %s4452_s1 }
 0x284   :  { %2657 = vmatprep.mubr.bf16.mxu0 %v2285_v6  ;;  %4254 = vrcp.f32 %v2270_v32  ;;  %v2292_v5 = vrot.slane %v2255_v4, %v4683_v48  ;;  %v2296_v6 = vrot.slane %v2255_v4, %v4680_v47 }
 0x285   :  { %2658 = vmatmul.mubr.bf16.vlgmr.msra.gmra.mrb[4].mxu0 %v2284_v54  ;;  %3594 = vmatpush3.bf16.msra.mxu1 %v4193_v3  ;;  %p4459_p11 = por %p4458_p10, %p4457_p9 }
 0x286   :  { %2667 = vmatpush1.bf16.msra.mxu0 %v4131_v7  ;;  %3537 = vmatprep.mubr.msk.bf16.mxu0 %vm2614_vm2, %v2287_v8 }
 0x287   :  { %2668 = vmatprep.subr.bf16.mxu0 %v4136_v14  ;;  %p4460_p12 = pnand %p4459_p11, %p4453_p8 }
 0x28a   :  { %2669 = vmatpush1.bf16.msra.mxu0 %v4134_v9 }
 0x28b   :  { %2670 = vmatprep.subr.bf16.mxu0 %v4139_v10 }
 0x28e   :  { %2671 = vmatpush1.bf16.msra.mxu0 %v4137_v12  ;;  %v4255_v46 = vpop.eup %4254 }
 0x28f   :  { %2672 = vmatprep.subr.bf16.mxu0 %v4142_v13  ;;  %v2282_v49 = vmul.f32 %v4255_v46, %v3660_v21  ;;  %v4203_v46 = vld [vmem:[%s4912_s11 + $0x8] sm:$0xff]  }
 0x291   :  { %v2286_v51 = vpack.c.bf16 %v2282_v49, %v2282_v49  ;;  %v4204_v49 = vld [vmem:[%s4912_s11 + $0x10] sm:$0xff]  }
 0x292   :  { %2673 = vmatpush1.bf16.msra.mxu0 %v4140_v15 }
 0x293   :  { %2674 = vmatprep.subr.bf16.mxu0 %v4145_v55 }
 0x296   :  { %2675 = vmatpush1.bf16.msra.mxu0 %v4143_v16 }
 0x297   :  { %2676 = vmatprep.subr.bf16.mxu0 %v4148_v17 }
 0x29a   :  { %2677 = vmatpush1.bf16.msra.mxu0 %v4146_v19 }
 0x29b   :  { %2678 = vmatprep.subr.bf16.mxu0 %v4151_v20 }
 0x29e   :  { %2679 = vmatpush1.bf16.msra.mxu0 %v4149_v22  ;;  %v4194_v22 = vld [vmem:[%s4910_s9] sm:$0xff]  }
 0x29f   :  { %2680 = vmatprep.subr.bf16.mxu0 %v4154_v0  ;;  %v4498_v0 = vmov 0.0  }
 0x2a0   :  { %3618 = vmatprep.subr.bf16.mxu1 %v4498_v0 }
 0x2a2   :  { %2681 = vmatpush1.bf16.msra.mxu0 %v4152_v24  ;;  %v4196_v24 = vld [vmem:[%s4910_s9 + $0x10] sm:$0xff]  }
 0x2a3   :  { %2682 = vmatprep.subr.bf16.mxu0 %v4157_v25  ;;  %v4197_v25 = vld [vmem:[%s4910_s9 + $0x18] sm:$0xff]  }
 0x2a6   :  { %2683 = vmatpush1.bf16.msra.mxu0 %v4155_v26  ;;  %v4198_v26 = vld [vmem:[%s4910_s9 + $0x20] sm:$0xff]  }
 0x2a7   :  { %2684 = vmatprep.subr.bf16.mxu0 %v4160_v27  ;;  %v4199_v27 = vld [vmem:[%s4910_s9 + $0x28] sm:$0xff]  }
 0x2aa   :  { %2685 = vmatpush1.bf16.msra.mxu0 %v4158_v39  ;;  %v4200_v39 = vld [vmem:[%s4910_s9 + $0x30] sm:$0xff]  }
 0x2ab   :  { %2686 = vmatprep.subr.bf16.mxu0 %v4163_v28  ;;  %v4201_v28 = vld [vmem:[%s4910_s9 + $0x38] sm:$0xff]  }
 0x2ae   :  { %2687 = vmatpush1.bf16.msra.mxu0 %v4161_v29 }
 0x2af   :  { %2688 = vmatprep.subr.bf16.mxu0 %v4166_v31 }
 0x2b2   :  { %2689 = vmatpush1.bf16.msra.mxu0 %v4164_v33 }
 0x2b3   :  { %2690 = vmatprep.subr.bf16.mxu0 %v4169_v34 }
 0x2b6   :  { %2691 = vmatpush1.bf16.msra.mxu0 %v4167_v35 }
 0x2b7   :  { %2692 = vmatprep.subr.bf16.mxu0 %v4172_v37 }
 0x2ba   :  { %2693 = vmatpush1.bf16.msra.mxu0 %v4170_v38 }
 0x2bb   :  { %2694 = vmatprep.subr.bf16.mxu0 %v4175_v40 }
 0x2be   :  { %2695 = vmatpush1.bf16.msra.mxu0 %v4173_v43 }
 0x2bf   :  { %3536 = vmatprep.subr.msk.bf16.mxu0 %vm2618_vm3, %v3535_v44 }
 0x2c2   :  { %2697 = vmatpush1.bf16.msra.mxu0 %v2620_v50  ;;  %v4205_v50 = vld [vmem:[%s4912_s11 + $0x18] sm:$0xff]  }
 0x2c5   :  { %2699 = vmatmul.mubr.bf16.vlgmr.msra.gmra.mrb[4].mxu0 %v2286_v51  ;;  %v3558_v51 = vld [vmem:[#allocation13] ss:$0 sm:$0xff] }
 0x398   :  { %v2700_v7 = vpop.f32.mrb[4].mxu0 }
 0x399   :  { %v3662_v54 = vadd.f32 %v2700_v7, %v2292_v5  ;;  %v2702_v14 = vpop.f32.mrb[5].mxu0 }
 0x39a   :  { %v3663_v8 = vadd.f32 %v2702_v14, %v2296_v6  ;;  %v2704_v9 = vpop.f32.mrb[6].mxu0 }
 0x39b   :  { %v3538_v10 = vmul.f32 -1.442695, %v3662_v54  ;;  %v2705_v12 = vpop.f32.mrb[7].mxu0 }
 0x39c   :  { %v3539_v13 = vmul.f32 -1.442695, %v3663_v8  ;;  %v3575_v12 = vld [vmem:[%s4915_s14] ss:$0 sm:$0xff] }
 0x39d   :  { %4256 = vpow2.f32 %v3538_v10 }
 0x39e   :  { %4258 = vpow2.f32 %v3539_v13 }
 0x3a7   :  { %v4257_v15 = vpop.eup %4256 }
 0x3a8   :  { %v4259_v55 = vpop.eup %4258  ;;  %v2746_v16 = vadd.f32 1.0, %v4257_v15 }
 0x3a9   :  { %v2747_v17 = vadd.f32 1.0, %v4259_v55 }
 0x3aa   :  { %4260 = vrcp.f32 %v2746_v16 }
 0x3ab   :  { %4262 = vrcp.f32 %v2747_v17 }
 0x3b4   :  { %v4261_v18 = vpop.eup %4260 }
 0x3b5   :  { %v4263_v48 = vpop.eup %4262  ;;  %v2752_v19 = vmul.f32 %v4261_v18, %v3662_v54 }
 0x3b6   :  { %v2753_v47 = vmul.f32 %v4263_v48, %v3663_v8 }
 0x3b7   :  { %v2754_v21 = vpack.c.bf16 %v2752_v19, %v2752_v19 }
 0x3b8   :  { %v2755_v20 = vpack.c.bf16 %v2753_v47, %v2753_v47 }
 0x3ba   :  { %2890 = vmatprep.mubr.bf16.mxu1 %v2755_v20 }
 0x3bb   :  { %2891 = vmatmul.mubr.bf16.vlgmr.msra.gmra.mrb[4].mxu1 %v2754_v21 }
 0x3bc   :  { %3619 = vmatpush3.bf16.msra.mxu1 %v4194_v22  ;;  %3634 = vmatprep.mubr.msk.bf16.mxu1 %vm4499_vm4, %v4498_v0 }
 0x3bd   :  { %3620 = vmatprep.subr.bf16.mxu1 %v4498_v0 }
 0x3c0   :  { %3621 = vmatpush3.bf16.msra.mxu1 %v4195_v23 }
 0x3c1   :  { %3622 = vmatprep.subr.bf16.mxu1 %v4498_v0 }
 0x3c4   :  { %3623 = vmatpush3.bf16.msra.mxu1 %v4196_v24 }
 0x3c5   :  { %3624 = vmatprep.subr.bf16.mxu1 %v4498_v0 }
 0x3c8   :  { %3625 = vmatpush3.bf16.msra.mxu1 %v4197_v25 }
 0x3c9   :  { %3626 = vmatprep.subr.bf16.mxu1 %v4498_v0 }
 0x3cc   :  { %3627 = vmatpush3.bf16.msra.mxu1 %v4198_v26 }
 0x3cd   :  { %3628 = vmatprep.subr.bf16.mxu1 %v4498_v0 }
 0x3d0   :  { %3629 = vmatpush3.bf16.msra.mxu1 %v4199_v27 }
 0x3d1   :  { %3630 = vmatprep.subr.bf16.mxu1 %v4498_v0 }
 0x3d4   :  { %3631 = vmatpush3.bf16.msra.mxu1 %v4200_v39 }
 0x3d5   :  { %3632 = vmatprep.subr.bf16.mxu1 %v4498_v0 }
 0x3d8   :  { %3633 = vmatpush3.bf16.msra.mxu1 %v4201_v28 }
 0x3d9   :  { %3638 = vmatprep.subr.bf16.mxu1 %v4498_v0 }
 0x48e   :  { %v3595_v29 = vpop.f32.mrb[4].mxu1 }
 0x48f   :  { %v3596_v31 = vpop.f32.mrb[5].mxu1 }
 0x490   :  { %v3597_v32 = vadd.f32 %v3596_v31, %v3595_v29  ;;  %v3598_v33 = vpop.f32.mrb[6].mxu1 }
 0x491   :  { %v3599_v34 = vpop.f32.mrb[7].mxu1 }
 0x492   :  { %v2893_v35 = vadd.f32 %v3597_v32, %v3540_v30 }
 0x494   :  { %v3557_v37 = vmul.f32 -1.442695, %v2893_v35 }
 0x496   :  { %4264 = vpow2.f32 %v3557_v37 }
 0x4a0   :  { %v4265_v38 = vpop.eup %4264 }
 0x4a1   :  { %v2918_v40 = vadd.f32 1.0, %v4265_v38 }
 0x4a3   :  { %4266 = vrcp.f32 %v2918_v40 }
 0x4ad   :  { %v4267_v41 = vpop.eup %4266 }
 0x4ae   :  { %v2921_v43 = vmul.f32 %v4267_v41, %v2893_v35 }
 0x4b0   :  { %v2922_v44 = vpack.c.bf16 %v2921_v43, %v2921_v43 }
 0x4b2   :  { %3635 = vmatmul.mubr.bf16.vlgmr.msra.gmra.mrb[8].mxu1 %v2922_v44 }
 0x4b3   :  { %3646 = vmatprep.mubr.msk.bf16.mxu1 %vm4499_vm4, %v4498_v0  ;;  %3639 = vmatpush3.bf16.msra.mxu1 %v4202_v45 }
 0x4b4   :  { %3640 = vmatprep.subr.bf16.mxu1 %v4498_v0 }
 0x4b7   :  { %3641 = vmatpush3.bf16.msra.mxu1 %v4203_v46 }
 0x4b8   :  { %3642 = vmatprep.subr.bf16.mxu1 %v4498_v0 }
 0x4bb   :  { %3643 = vmatpush3.bf16.msra.mxu1 %v4204_v49 }
 0x4bc   :  { %3644 = vmatprep.subr.bf16.mxu1 %v4498_v0 }
 0x4bf   :  { %3645 = vmatpush3.bf16.msra.mxu1 %v4205_v50 }
 0x4c0   :  { %3650 = vmatprep.subr.bf16.mxu1 %v4498_v0 }
 0x585   :  { %v3011_v52 = vpop.f32.mrb[8].mxu1 }
 0x586   :  { %v3012_v53 = vadd.f32 %v3558_v51, %v3011_v52  ;;  %v3636_v56 = vpop.f32.mrb[9].mxu1 }
 0x587   :  { %v3014_v57 = vpop.f32.mrb[10].mxu1 }
 0x588   :  { %v3567_v58 = vmul.f32 -1.442695, %v3012_v53  ;;  %v3637_v59 = vpop.f32.mrb[11].mxu1 }
 0x58a   :  { %4268 = vpow2.f32 %v3567_v58 }
 0x594   :  { %v4269_v60 = vpop.eup %4268 }
 0x595   :  { %v3029_v61 = vadd.f32 1.0, %v4269_v60 }
 0x597   :  { %4270 = vrcp.f32 %v3029_v61 }
 0x5a1   :  { %v4271_v36 = vpop.eup %4270 }
 0x5a2   :  { %v3032_v62 = vmul.f32 %v4271_v36, %v3012_v53 }
 0x5a4   :  { %v3033_v63 = vpack.c.bf16 %v3032_v62, %v3032_v62 }
 0x5a6   :  { %3647 = vmatmul.mubr.msk.bf16.vlgmr.msra.gmra.mrb[12].mxu1 %vm3064_vm5, %v3033_v63 }
 0x5a7   :  { %3654 = vmatprep.mubr.msk.bf16.mxu1 %vm4499_vm4, %v4498_v0  ;;  %3651 = vmatpush3.bf16.msra.mxu1 %v4206_v42 }
 0x5a8   :  { %3652 = vmatprep.subr.bf16.mxu1 %v4498_v0 }
 0x5ab   :  { %3653 = vmatpush3.bf16.msra.mxu1 %v4207_v1 }
 0x679   :  { %v3102_v2 = vpop.f32.mrb[12].mxu1 }
 0x67a   :  { %v3103_v3 = vadd.f32 %v3568_v11, %v3102_v2  ;;  %v3648_v4 = vpop.f32.mrb[13].mxu1 }
 0x67b   :  { %v3105_v5 = vpop.f32.mrb[14].mxu1 }
 0x67c   :  { %v3574_v6 = vmul.f32 -1.442695, %v3103_v3  ;;  %v3649_v7 = vpop.f32.mrb[15].mxu1 }
 0x67e   :  { %4272 = vpow2.f32 %v3574_v6 }
 0x688   :  { %v4273_v54 = vpop.eup %4272 }
 0x689   :  { %v3116_v14 = vadd.f32 1.0, %v4273_v54 }
 0x68b   :  { %4274 = vrcp.f32 %v3116_v14 }
 0x695   :  { %v4275_v8 = vpop.eup %4274 }
 0x696   :  { %v3119_v9 = vmul.f32 %v4275_v8, %v3103_v3 }
 0x698   :  { %v3120_v10 = vpack.c.bf16 %v3119_v9, %v3119_v9 }
 0x69a   :  { %3655 = vmatmul.mubr.msk.bf16.vlgmr.msra.gmra.mrb[16].mxu1 %vm3139_vm6, %v3120_v10 }
 0x76d   :  { %v3177_v13 = vpop.f32.mrb[16].mxu1 }
 0x76e   :  { %v3178_v15 = vadd.f32 %v3575_v12, %v3177_v13  ;;  %v3656_v55 = vpop.f32.mrb[17].mxu1 }
 0x76f   :  { %v3180_v16 = vpop.f32.mrb[18].mxu1 }
 0x770   :  { %v3657_v17 = vpop.f32.mrb[19].mxu1  ;;  %3184 = vst.msk [vmem:[#allocation16] sm:$0xff] %vm3183_vm7, %v3178_v15 }
 0x771   :  { %4463 = shalt.err (!%p4460_p12)
}
 0x772   :  { %s4464_s14 = scalar_lea.hbm %s4916_s15, 128 }
 0x773   :  { %p4465_p13 = scmp.ne.s32.totalorder %s4916_s15, %s4464_s14  ;;  %p4468_p0 = scmp.lt.u32.totalorder %s4464_s14, %s4916_s15 }
 0x775   :  { %p4470_p1 = pnand %p4468_p0, %p4465_p13 }
 0x777   :  { %4473 = shalt.err (!%p4470_p1)
}
 0x778   :  { %3194 = dma.vmem_to_hbm [thread:$0]  %s3192_s2, 128, %s4916_s15, [#allocation4]  }
 0x779   :  { %4484 = dma.done.wait [#allocation4], 128  }
 0x77a   :  { %4485 = vsyncadd [#allocation4], 4294967168 }
 0x77b   :  { %3198 = vsyncpa [#allocation3], 1 }
 0x77c   :  { %3199 = vsyncpa [#allocation6], 1 }
 0x77d   :  { %3200 = vsyncpa [#allocation9], 1 }
 0x77e   :  { %3201 = vsyncpa [#allocation12], 1 }
 0x77f   :  { %3202 = vsyncpa [#allocation15], 1 }
 0x780   :  { %3203 = vsyncpa [#allocation4], 1 }

// kernel: tpu_custom_call.1
= control target key start
LH: loop header
LB: loop body
LE: loop exit
PB: predicated region body
PF: predicated region fallthrough
CT: control target
= control target key end

     0   :  { %20 = vsyncpa [#allocation3], 0  ;;  %s4901_s0 = inlined_call_operand.vmem [shape: bf16[8,1000], index: 0, kind: input, shape index: {}]   ;;  %s4902_s1 = inlined_call_operand.hbm [shape: f32[1,1000], index: 1, kind: input, shape index: {}]   ;;  %s4903_s2 = inlined_call_operand.hbm [shape: f32[1,1000], index: 2, kind: input, shape index: {}]   ;;  %s4904_s3 = inlined_call_operand.hbm [shape: bf16[1000,500], index: 3, kind: input, shape index: {}]   ;;  %s4905_s4 = inlined_call_operand.hbm [shape: f32[1,500], index: 4, kind: input, shape index: {}]   ;;  %s4906_s5 = inlined_call_operand.hbm [shape: bf16[500,256], index: 5, kind: input, shape index: {}]   ;;  %s4907_s6 = inlined_call_operand.hbm [shape: f32[1,256], index: 6, kind: input, shape index: {}]   ;;  %s4908_s7 = inlined_call_operand.vmem [shape: bf16[256,128], index: 7, kind: input, shape index: {}]   ;;  %s4909_s8 = inlined_call_operand.vmem [shape: f32[1,128], index: 8, kind: input, shape index: {}]   ;;  %s4910_s9 = inlined_call_operand.vmem [shape: bf16[128,64], index: 9, kind: input, shape index: {}]   ;;  %s4911_s10 = inlined_call_operand.hbm [shape: f32[1,64], index: 10, kind: input, shape index: {}]   ;;  %s4912_s11 = inlined_call_operand.vmem [shape: bf16[64,32], index: 11, kind: input, shape index: {}]   ;;  %s4913_s12 = inlined_call_operand.hbm [shape: f32[1,32], index: 12, kind: input, shape index: {}]   ;;  %s4914_s13 = inlined_call_operand.vmem [shape: bf16[32,18], index: 13, kind: input, shape index: {}]   ;;  %s4915_s14 = inlined_call_operand.vmem [shape: f32[1,18], index: 14, kind: input, shape index: {}]   ;;  %s4916_s15 = inlined_call_operand.hbm [shape: f32[8,18], index: 15, kind: output, shape index: {}]  }
   0x1   :  { %21 = vsyncpa [#allocation6], 0 }
   0x2   :  { %22 = vsyncpa [#allocation9], 0 }
   0x3   :  { %23 = vsyncpa [#allocation12], 0 }
   0x4   :  { %24 = vsyncpa [#allocation15], 0 }
   0x5   :  { %25 = vsyncpa [#allocation4], 0  ;;  %s4486_s18 = smov [#allocation5]   ;;  %s4487_s20 = smov [#allocation8]  }
   0x6   :  { %s44_s19 = sshll.u32 %s4486_s18, 4  ;;  %s66_s21 = sshll.u32 %s4487_s20, 4  ;;  %s45_s19 = int_to_ptr.vmem [resolvable:$true] %s44_s19  ;;  %s67_s21 = int_to_ptr.vmem [resolvable:$true] %s66_s21 }
   0x7   :  { %s4276_s24 = scalar_lea.hbm %s4903_s2, 128 }
   0x8   :  { %p4277_p0 = scmp.ne.s32.totalorder %s4903_s2, %s4276_s24  ;;  %p4280_p1 = scmp.lt.u32.totalorder %s4276_s24, %s4903_s2 }
   0xa   :  { %p4282_p2 = pnand %p4280_p1, %p4277_p0 }
   0xc   :  { %4285 = shalt.err (!%p4282_p2)
}
   0xd   :  { %s4286_s29 = scalar_lea.vmem %s45_s19, 128  ;;  %p4291_p4 = scmp.lt.s32.totalorder %s45_s19, %s45_s19 }
   0xe   :  { %p4287_p3 = scmp.ne.s32.totalorder %s45_s19, %s4286_s29  ;;  %p4292_p5 = scmp.lt.s32.totalorder %s4286_s29, %s4286_s29 }
  0x10   :  { %p4293_p6 = por %p4292_p5, %p4291_p4 }
  0x12   :  { %p4294_p7 = pnand %p4293_p6, %p4287_p3 }
  0x14   :  { %4297 = shalt.err (!%p4294_p7)
}
  0x15   :  { %47 = dma.hbm_to_vmem [thread:$0]  %s4903_s2, 128, %s45_s19, [#allocation6]  }
  0x16   :  { %s4298_s20 = scalar_lea.hbm %s4905_s4, 64 }
  0x17   :  { %p4299_p8 = scmp.ne.s32.totalorder %s4905_s4, %s4298_s20  ;;  %p4302_p9 = scmp.lt.u32.totalorder %s4298_s20, %s4905_s4 }
  0x19   :  { %p4304_p10 = pnand %p4302_p9, %p4299_p8 }
  0x1b   :  { %4307 = shalt.err (!%p4304_p10)
}
  0x1c   :  { %s4308_s26 = scalar_lea.vmem %s67_s21, 64  ;;  %p4313_p12 = scmp.lt.s32.totalorder %s67_s21, %s67_s21 }
  0x1d   :  { %p4309_p11 = scmp.ne.s32.totalorder %s67_s21, %s4308_s26  ;;  %p4314_p13 = scmp.lt.s32.totalorder %s4308_s26, %s4308_s26 }
  0x1f   :  { %p4315_p0 = por %p4314_p13, %p4313_p12 }
  0x21   :  { %p4316_p1 = pnand %p4315_p0, %p4309_p11 }
  0x23   :  { %4319 = shalt.err (!%p4316_p1)
}
  0x24   :  { %69 = dma.hbm_to_vmem [thread:$0]  %s4905_s4, 64, %s67_s21, [#allocation9]  }
  0x25   :  { %s4488_s27 = smov [#allocation11]   ;;  %s4489_s29 = smov [#allocation2]  }
  0x26   :  { %s88_s28 = sshll.u32 %s4488_s27, 4  ;;  %s34_s30 = sshll.u32 %s4489_s29, 4  ;;  %s89_s28 = int_to_ptr.vmem [resolvable:$true] %s88_s28  ;;  %s35_s30 = int_to_ptr.vmem [resolvable:$true] %s34_s30 }
  0x27   :  { %s4320_s18 = scalar_lea.hbm %s4907_s6, 32 }
  0x28   :  { %p4321_p2 = scmp.ne.s32.totalorder %s4907_s6, %s4320_s18  ;;  %p4324_p3 = scmp.lt.u32.totalorder %s4320_s18, %s4907_s6 }
  0x2a   :  { %p4326_p4 = pnand %p4324_p3, %p4321_p2 }
  0x2c   :  { %4329 = shalt.err (!%p4326_p4)
}
  0x2d   :  { %s4330_s4 = scalar_lea.vmem %s89_s28, 32  ;;  %p4335_p6 = scmp.lt.s32.totalorder %s89_s28, %s89_s28 }
  0x2e   :  { %p4331_p5 = scmp.ne.s32.totalorder %s89_s28, %s4330_s4  ;;  %p4336_p7 = scmp.lt.s32.totalorder %s4330_s4, %s4330_s4 }
  0x30   :  { %p4337_p8 = por %p4336_p7, %p4335_p6 }
  0x32   :  { %p4338_p9 = pnand %p4337_p8, %p4331_p5 }
  0x34   :  { %4341 = shalt.err (!%p4338_p9)
}
  0x35   :  { %91 = dma.hbm_to_vmem [thread:$0]  %s4907_s6, 32, %s89_s28, [#allocation12]  }
  0x36   :  { %s4342_s19 = scalar_lea.hbm %s4902_s1, 128 }
  0x37   :  { %p4343_p10 = scmp.ne.s32.totalorder %s4902_s1, %s4342_s19  ;;  %p4346_p11 = scmp.lt.u32.totalorder %s4342_s19, %s4902_s1 }
  0x39   :  { %p4348_p12 = pnand %p4346_p11, %p4343_p10 }
  0x3b   :  { %4351 = shalt.err (!%p4348_p12)
}
  0x3c   :  { %s4352_s18 = scalar_lea.vmem %s35_s30, 128  ;;  %p4357_p0 = scmp.lt.s32.totalorder %s35_s30, %s35_s30 }
  0x3d   :  { %p4353_p13 = scmp.ne.s32.totalorder %s35_s30, %s4352_s18  ;;  %p4358_p1 = scmp.lt.s32.totalorder %s4352_s18, %s4352_s18 }
  0x3f   :  { %p4359_p2 = por %p4358_p1, %p4357_p0 }
  0x41   :  { %p4360_p3 = pnand %p4359_p2, %p4353_p13 }
  0x43   :  { %4363 = shalt.err (!%p4360_p3)
}
  0x44   :  { %37 = dma.hbm_to_vmem [thread:$0]  %s4902_s1, 128, %s35_s30, [#allocation3]  }
  0x45   :  { %s4490_s20 = smov [#allocation7]   ;;  %s4364_s4 = scalar_lea.hbm %s4904_s3, 32000 }
  0x46   :  { %s53_s22 = sshll.u32 %s4490_s20, 4  ;;  %p4365_p4 = scmp.ne.s32.totalorder %s4904_s3, %s4364_s4  ;;  %s54_s22 = int_to_ptr.vmem [resolvable:$true] %s53_s22 }
  0x47   :  { %p4368_p5 = scmp.lt.u32.totalorder %s4364_s4, %s4904_s3 }
  0x49   :  { %p4370_p6 = pnand %p4368_p5, %p4365_p4 }
  0x4b   :  { %4373 = shalt.err (!%p4370_p6)
}
  0x4c   :  { %s4374_s19 = scalar_lea.vmem %s54_s22, 32000  ;;  %p4379_p8 = scmp.lt.s32.totalorder %s54_s22, %s54_s22 }
  0x4d   :  { %p4375_p7 = scmp.ne.s32.totalorder %s54_s22, %s4374_s19  ;;  %p4380_p9 = scmp.lt.s32.totalorder %s4374_s19, %s4374_s19 }
  0x4f   :  { %p4381_p10 = por %p4380_p9, %p4379_p8 }
  0x51   :  { %p4382_p11 = pnand %p4381_p10, %p4375_p7 }
  0x53   :  { %4385 = shalt.err (!%p4382_p11)
}
  0x54   :  { %s4491_s1 = smov 256   ;;  %s4492_s30 = smov 16  }
  0x55   :  { %59 = dma.hbm_to_vmem [thread:$0]  %s4904_s3, 32000, %s54_s22, [#allocation6], %s4491_s1, %s4491_s1, %s4492_s30  }
  0x56   :  { %s4493_s16 = smov [#allocation10]   ;;  %s4386_s28 = scalar_lea.hbm %s4906_s5, 8064 }
  0x57   :  { %s75_s17 = sshll.u32 %s4493_s16, 4  ;;  %p4387_p12 = scmp.ne.s32.totalorder %s4906_s5, %s4386_s28  ;;  %s76_s17 = int_to_ptr.vmem [resolvable:$true] %s75_s17 }
  0x58   :  { %p4390_p13 = scmp.lt.u32.totalorder %s4386_s28, %s4906_s5 }
  0x5a   :  { %p4392_p0 = pnand %p4390_p13, %p4387_p12 }
  0x5c   :  { %4395 = shalt.err (!%p4392_p0)
}
  0x5d   :  { %s4396_s21 = scalar_lea.vmem %s76_s17, 8064  ;;  %p4401_p2 = scmp.lt.s32.totalorder %s76_s17, %s76_s17 }
  0x5e   :  { %p4397_p1 = scmp.ne.s32.totalorder %s76_s17, %s4396_s21  ;;  %p4402_p3 = scmp.lt.s32.totalorder %s4396_s21, %s4396_s21 }
  0x60   :  { %p4403_p4 = por %p4402_p3, %p4401_p2 }
  0x62   :  { %p4404_p5 = pnand %p4403_p4, %p4397_p1 }
  0x64   :  { %4407 = shalt.err (!%p4404_p5)
}
  0x65   :  { %s4494_s3 = smov 128   ;;  %s4495_s22 = smov 8  }
  0x66   :  { %81 = dma.hbm_to_vmem [thread:$0]  %s4906_s5, 8064, %s76_s17, [#allocation9], %s4494_s3, %s4494_s3, %s4495_s22  }
  0x67   :  { %s4496_s2 = smov [#allocation13]   ;;  %s4497_s1 = smov [#allocation14]  }
  0x68   :  { %s104_s19 = sshll.u32 %s4496_s2, 4  ;;  %s116_s30 = sshll.u32 %s4497_s1, 4  ;;  %s105_s19 = int_to_ptr.vmem [resolvable:$true] %s104_s19  ;;  %s117_s30 = int_to_ptr.vmem [resolvable:$true] %s116_s30 }
  0x69   :  { %s4408_s16 = scalar_lea.hbm %s4911_s10, 16 }
  0x6a   :  { %p4409_p6 = scmp.ne.s32.totalorder %s4911_s10, %s4408_s16  ;;  %p4412_p7 = scmp.lt.u32.totalorder %s4408_s16, %s4911_s10 }
  0x6c   :  { %p4414_p8 = pnand %p4412_p7, %p4409_p6 }
  0x6e   :  { %4417 = shalt.err (!%p4414_p8)
}
  0x6f   :  { %s4418_s5 = scalar_lea.vmem %s105_s19, 16  ;;  %s4422_s17 = scalar_lea.vmem %s105_s19, 32 }
  0x70   :  { %p4419_p9 = scmp.ne.s32.totalorder %s105_s19, %s4418_s5  ;;  %p4423_p10 = scmp.lt.s32.totalorder %s105_s19, %s105_s19 }
  0x71   :  { %p4424_p11 = scmp.lt.s32.totalorder %s4422_s17, %s4418_s5 }
  0x73   :  { %p4425_p12 = por %p4424_p11, %p4423_p10 }
  0x75   :  { %p4426_p13 = pnand %p4425_p12, %p4419_p9 }
  0x77   :  { %4429 = shalt.err (!%p4426_p13)
}
  0x78   :  { %107 = dma.hbm_to_vmem [thread:$0]  %s4911_s10, 16, %s105_s19, [#allocation12]  }
  0x79   :  { %s4430_s3 = scalar_lea.hbm %s4913_s12, 16 }
  0x7a   :  { %p4431_p0 = scmp.ne.s32.totalorder %s4913_s12, %s4430_s3  ;;  %p4434_p1 = scmp.lt.u32.totalorder %s4430_s3, %s4913_s12 }
  0x7c   :  { %p4436_p2 = pnand %p4434_p1, %p4431_p0 }
  0x7e   :  { %4439 = shalt.err (!%p4436_p2)
}
  0x7f   :  { %s4440_s1 = scalar_lea.vmem %s117_s30, 16  ;;  %s4444_s27 = scalar_lea.vmem %s117_s30, 32 }
  0x80   :  { %p4441_p3 = scmp.ne.s32.totalorder %s117_s30, %s4440_s1  ;;  %p4445_p4 = scmp.lt.s32.totalorder %s117_s30, %s117_s30 }
  0x81   :  { %p4446_p5 = scmp.lt.s32.totalorder %s4444_s27, %s4440_s1 }
  0x83   :  { %p4447_p6 = por %p4446_p5, %p4445_p4 }
  0x85   :  { %p4448_p7 = pnand %p4447_p6, %p4441_p3 }
  0x87   :  { %4451 = shalt.err (!%p4448_p7)
}
  0x88   :  { %119 = dma.hbm_to_vmem [thread:$0]  %s4913_s12, 16, %s117_s30, [#allocation15]  }
  0x89   :  { %4474 = dma.done.wait [#allocation3], 128  }
  0x8a   :  { %4475 = vsyncadd [#allocation3], 4294967168 }
  0x8b   :  { %4476 = dma.done.wait [#allocation6], 32128  }
  0x8c   :  { %4477 = vsyncadd [#allocation6], 4294935168 }
  0x8d   :  { %4478 = dma.done.wait [#allocation9], 8128  }
  0x8e   :  { %4479 = vsyncadd [#allocation9], 4294959168 }
  0x8f   :  { %4480 = dma.done.wait [#allocation12], 48  }
  0x90   :  { %4481 = vsyncadd [#allocation12], 4294967248 }
  0x91   :  { %4482 = dma.done.wait [#allocation15], 16  }
  0x92   :  { %4483 = vsyncadd [#allocation15], 4294967280  ;;  %v3707_v0 = vld [vmem:[#allocation7 + $0x4] ss:$16 sps:$4 sm:$0xff]   ;;  %v3709_v1 = vld [vmem:[#allocation7 + $0xc] ss:$16 sps:$4 sm:$0xff]   ;;  %v163_v37 = vlaneseq }
  0x93   :  { %1864 = vmatprep.subr.bf16.mxu0 %v3707_v0  ;;  %v3711_v2 = vld [vmem:[#allocation7] ss:$16 sps:$4 sm:$0xff]   ;;  %v3712_v3 = vld [vmem:[#allocation7 + $0x8] ss:$16 sps:$4 sm:$0xff]   ;;  %2028 = vmatprep.subr.bf16.mxu1 %v3709_v1  ;;  %v3713_v4 = vld [vmem:[#allocation7 + $0x24] ss:$16 sps:$4 sm:$0xff]  }
  0x94   :  { %1865 = vmatpush1.bf16.msra.mxu0 %v3711_v2  ;;  %2029 = vmatpush1.bf16.msra.mxu1 %v3712_v3  ;;  %v3715_v5 = vld [vmem:[#allocation7 + $0x2c] ss:$16 sps:$4 sm:$0xff]   ;;  %v3717_v6 = vld [vmem:[#allocation7 + $0x20] ss:$16 sps:$4 sm:$0xff]   ;;  %v3718_v7 = vld [vmem:[#allocation7 + $0x28] ss:$16 sps:$4 sm:$0xff]  }
  0x95   :  { %1866 = vmatprep.subr.bf16.mxu0 %v3713_v4  ;;  %2030 = vmatprep.subr.bf16.mxu1 %v3715_v5  ;;  %v3719_v8 = vld [vmem:[#allocation7 + $0x44] ss:$16 sps:$4 sm:$0xff]   ;;  %v3721_v9 = vld [vmem:[#allocation7 + $0x4c] ss:$16 sps:$4 sm:$0xff]   ;;  %v3723_v10 = vld [vmem:[#allocation7 + $0x40] ss:$16 sps:$4 sm:$0xff]  }
  0x96   :  { %v3724_v11 = vld [vmem:[#allocation7 + $0x48] ss:$16 sps:$4 sm:$0xff]   ;;  %v3725_v12 = vld [vmem:[#allocation7 + $0x64] ss:$16 sps:$4 sm:$0xff]   ;;  %v3727_v13 = vld [vmem:[#allocation7 + $0x6c] ss:$16 sps:$4 sm:$0xff]  }
  0x97   :  { %v3729_v14 = vld [vmem:[#allocation7 + $0x60] ss:$16 sps:$4 sm:$0xff]   ;;  %v3730_v15 = vld [vmem:[#allocation7 + $0x68] ss:$16 sps:$4 sm:$0xff]   ;;  %v3731_v16 = vld [vmem:[#allocation7 + $0x84] ss:$16 sps:$4 sm:$0xff]  }
  0x98   :  { %1867 = vmatpush1.bf16.msra.mxu0 %v3717_v6  ;;  %2031 = vmatpush1.bf16.msra.mxu1 %v3718_v7  ;;  %v3733_v17 = vld [vmem:[#allocation7 + $0x8c] ss:$16 sps:$4 sm:$0xff]   ;;  %v3735_v18 = vld [vmem:[#allocation7 + $0x80] ss:$16 sps:$4 sm:$0xff]   ;;  %v3736_v19 = vld [vmem:[#allocation7 + $0x88] ss:$16 sps:$4 sm:$0xff]  }
  0x99   :  { %1868 = vmatprep.subr.bf16.mxu0 %v3719_v8  ;;  %2032 = vmatprep.subr.bf16.mxu1 %v3721_v9  ;;  %v3737_v20 = vld [vmem:[#allocation7 + $0xa4] ss:$16 sps:$4 sm:$0xff]   ;;  %v3739_v21 = vld [vmem:[#allocation7 + $0xac] ss:$16 sps:$4 sm:$0xff]   ;;  %v3741_v22 = vld [vmem:[#allocation7 + $0xa0] ss:$16 sps:$4 sm:$0xff]  }
  0x9a   :  { %v3742_v23 = vld [vmem:[#allocation7 + $0xa8] ss:$16 sps:$4 sm:$0xff]   ;;  %v3743_v24 = vld [vmem:[#allocation7 + $0xc4] ss:$16 sps:$4 sm:$0xff]   ;;  %v3745_v25 = vld [vmem:[#allocation7 + $0xcc] ss:$16 sps:$4 sm:$0xff]  }
  0x9b   :  { %v3747_v26 = vld [vmem:[#allocation7 + $0xc0] ss:$16 sps:$4 sm:$0xff]   ;;  %v3748_v27 = vld [vmem:[#allocation7 + $0xc8] ss:$16 sps:$4 sm:$0xff]   ;;  %v3749_v28 = vld [vmem:[#allocation7 + $0xe4] ss:$16 sps:$4 sm:$0xff]  }
  0x9c   :  { %1869 = vmatpush1.bf16.msra.mxu0 %v3723_v10  ;;  %2033 = vmatpush1.bf16.msra.mxu1 %v3724_v11  ;;  %v3751_v29 = vld [vmem:[#allocation7 + $0xec] ss:$16 sps:$4 sm:$0xff]   ;;  %v3753_v30 = vld [vmem:[#allocation7 + $0xe0] ss:$16 sps:$4 sm:$0xff]   ;;  %v3754_v31 = vld [vmem:[#allocation7 + $0xe8] ss:$16 sps:$4 sm:$0xff]  }
  0x9d   :  { %1870 = vmatprep.subr.bf16.mxu0 %v3725_v12  ;;  %2034 = vmatprep.subr.bf16.mxu1 %v3727_v13  ;;  %v3755_v32 = vld [vmem:[#allocation7 + $0x104] ss:$16 sps:$4 sm:$0xff]   ;;  %v3757_v33 = vld [vmem:[#allocation7 + $0x10c] ss:$16 sps:$4 sm:$0xff]   ;;  %v3759_v34 = vld [vmem:[#allocation7 + $0x100] ss:$16 sps:$4 sm:$0xff]  }
  0x9e   :  { %v3760_v35 = vld [vmem:[#allocation7 + $0x108] ss:$16 sps:$4 sm:$0xff]   ;;  %v3761_v36 = vld [vmem:[#allocation7 + $0x124] ss:$16 sps:$4 sm:$0xff]   ;;  %v3763_v38 = vld [vmem:[#allocation7 + $0x12c] ss:$16 sps:$4 sm:$0xff]  }
  0x9f   :  { %v3765_v39 = vld [vmem:[#allocation7 + $0x120] ss:$16 sps:$4 sm:$0xff]   ;;  %v3766_v40 = vld [vmem:[#allocation7 + $0x128] ss:$16 sps:$4 sm:$0xff]   ;;  %v3767_v41 = vld [vmem:[#allocation7 + $0x144] ss:$16 sps:$4 sm:$0xff]  }
  0xa0   :  { %1871 = vmatpush1.bf16.msra.mxu0 %v3729_v14  ;;  %2035 = vmatpush1.bf16.msra.mxu1 %v3730_v15  ;;  %v4677_v42 = vshrl.u32 %v163_v37, 7  ;;  %v3769_v43 = vld [vmem:[#allocation7 + $0x14c] ss:$16 sps:$4 sm:$0xff]   ;;  %v3771_v44 = vld [vmem:[#allocation7 + $0x140] ss:$16 sps:$4 sm:$0xff]   ;;  %vm1847_vm0 = vcmask 850944  }
  0xa1   :  { %1872 = vmatprep.subr.bf16.mxu0 %v3731_v16  ;;  %2036 = vmatprep.subr.bf16.mxu1 %v3733_v17  ;;  %v3772_v45 = vld [vmem:[#allocation7 + $0x148] ss:$16 sps:$4 sm:$0xff]   ;;  %v3773_v46 = vld [vmem:[#allocation7 + $0x164] ss:$16 sps:$4 sm:$0xff]   ;;  %v3775_v49 = vld [vmem:[#allocation7 + $0x16c] ss:$16 sps:$4 sm:$0xff]  }
  0xa2   :  { %v4680_v47 = vsub.s32 1, %v4677_v42  ;;  %v4683_v48 = vsub.s32 0, %v4677_v42  ;;  %v3777_v50 = vld [vmem:[#allocation7 + $0x160] ss:$16 sps:$4 sm:$0xff]   ;;  %v4690_v55 = vld [vmem:[#allocation5] sm:$0xff]  ;;  %vm1851_vm1 = vcmask 1043456  }
  0xa3   :  { %v149_v51 = vld [vmem:[%s4901_s0] sm:$0xff]  ;;  %v3778_v56 = vld [vmem:[#allocation7 + $0x168] ss:$16 sps:$4 sm:$0xff]   ;;  %v3781_v61 = vld [vmem:[#allocation7 + $0x18c] ss:$16 sps:$4 sm:$0xff]   ;;  %vm2614_vm2 = vcmask 949248  }
  0xa4   :  { %1873 = vmatpush1.bf16.msra.mxu0 %v3735_v18  ;;  %2037 = vmatpush1.bf16.msra.mxu1 %v3736_v19  ;;  %v153_v52 = vunpack.c.l.bf16 %v149_v51  ;;  %v154_v53 = vunpack.c.h.bf16 %v149_v51  ;;  %v4688_v54 = vld [vmem:[#allocation2] sm:$0xff]  ;;  %v220_v59 = vrot.slane %v4690_v55, %v4680_v47  ;;  %v216_v62 = vrot.slane %v4690_v55, %v4683_v48  ;;  %v3784_v2 = vld [vmem:[#allocation7 + $0x188] ss:$16 sps:$4 sm:$0xff]   ;;  %v3787_v6 = vld [vmem:[#allocation7 + $0x1ac] ss:$16 sps:$4 sm:$0xff]  }
  0xa5   :  { %1874 = vmatprep.subr.bf16.mxu0 %v3737_v20  ;;  %2038 = vmatprep.subr.bf16.mxu1 %v3739_v21  ;;  %v3779_v57 = vld [vmem:[#allocation7 + $0x184] ss:$16 sps:$4 sm:$0xff]   ;;  %v170_v58 = vrot.slane %v4688_v54, %v4680_v47  ;;  %v166_v60 = vrot.slane %v4688_v54, %v4683_v48  ;;  %v3783_v1 = vld [vmem:[#allocation7 + $0x180] ss:$16 sps:$4 sm:$0xff]   ;;  %v3790_v10 = vld [vmem:[#allocation7 + $0x1a8] ss:$16 sps:$4 sm:$0xff]  }
  0xa6   :  { %v3785_v3 = vld [vmem:[#allocation7 + $0x1a4] ss:$16 sps:$4 sm:$0xff]   ;;  %v3789_v9 = vld [vmem:[#allocation7 + $0x1a0] ss:$16 sps:$4 sm:$0xff]   ;;  %v3793_v12 = vld [vmem:[#allocation7 + $0x1cc] ss:$16 sps:$4 sm:$0xff]  }
  0xa7   :  { %v204_v63 = vmul.f32 %v170_v58, %v154_v53  ;;  %v203_v0 = vmul.f32 %v166_v60, %v153_v52  ;;  %v3791_v11 = vld [vmem:[#allocation7 + $0x1c4] ss:$16 sps:$4 sm:$0xff]   ;;  %v3795_v13 = vld [vmem:[#allocation7 + $0x1c0] ss:$16 sps:$4 sm:$0xff]   ;;  %v3796_v14 = vld [vmem:[#allocation7 + $0x1c8] ss:$16 sps:$4 sm:$0xff]  }
  0xa8   :  { %1875 = vmatpush1.bf16.msra.mxu0 %v3741_v22  ;;  %2039 = vmatpush1.bf16.msra.mxu1 %v3742_v23  ;;  %v3797_v15 = vld [vmem:[#allocation7 + $0x1e4] ss:$16 sps:$4 sm:$0xff]   ;;  %v3799_v16 = vld [vmem:[#allocation7 + $0x1ec] ss:$16 sps:$4 sm:$0xff]   ;;  %v3801_v17 = vld [vmem:[#allocation7 + $0x1e0] ss:$16 sps:$4 sm:$0xff]  }
  0xa9   :  { %1876 = vmatprep.subr.bf16.mxu0 %v3743_v24  ;;  %2040 = vmatprep.subr.bf16.mxu1 %v3745_v25  ;;  %v254_v4 = vadd.f32 %v220_v59, %v204_v63  ;;  %v253_v5 = vadd.f32 %v216_v62, %v203_v0  ;;  %v3802_v18 = vld [vmem:[#allocation7 + $0x1e8] ss:$16 sps:$4 sm:$0xff]   ;;  %v3805_v19 = vld [vmem:[#allocation7 + $0x204] ss:$16 sps:$4 sm:$0xff]   ;;  %v3808_v20 = vld [vmem:[#allocation7 + $0x20c] ss:$16 sps:$4 sm:$0xff]  }
  0xaa   :  { %v3812_v37 = vld [vmem:[#allocation7 + $0x228] ss:$16 sps:$4 sm:$0xff]   ;;  %v3829_v59 = vld [vmem:[#allocation7 + $0x284] ss:$16 sps:$4 sm:$0xff]   ;;  %v3832_v62 = vld [vmem:[#allocation7 + $0x28c] ss:$16 sps:$4 sm:$0xff]  }
  0xab   :  { %v3205_v7 = vmul.f32 -1.442695, %v254_v4  ;;  %v3204_v8 = vmul.f32 -1.442695, %v253_v5  ;;  %v3824_v58 = vld [vmem:[#allocation7 + $0x268] ss:$16 sps:$4 sm:$0xff]  }
  0xac   :  { %1877 = vmatpush1.bf16.msra.mxu0 %v3747_v26  ;;  %2041 = vmatpush1.bf16.msra.mxu1 %v3748_v27  ;;  %vm2618_vm3 = vcmask 1041408   ;;  %vm4499_vm4 = vmmov 0   ;;  %vm3064_vm5 = vcmask 523264   ;;  %vm3139_vm6 = vcmask 261120  }
  0xad   :  { %1878 = vmatprep.subr.bf16.mxu0 %v3749_v28  ;;  %2042 = vmatprep.subr.bf16.mxu1 %v3751_v29  ;;  %4208 = vpow2.f32 %v3205_v7  ;;  %v3803_v28 = vld [vmem:[#allocation7 + $0x200] ss:$16 sps:$4 sm:$0xff]   ;;  %v3836_v7 = vld [vmem:[#allocation7 + $0x2a8] ss:$16 sps:$4 sm:$0xff]   ;;  %vm3183_vm7 = vcmask 146432  }
  0xae   :  { %4210 = vpow2.f32 %v3204_v8  ;;  %v3841_v8 = vld [vmem:[#allocation7 + $0x2c4] ss:$16 sps:$4 sm:$0xff]  }
  0xb0   :  { %1879 = vmatpush1.bf16.msra.mxu0 %v3753_v30  ;;  %2043 = vmatpush1.bf16.msra.mxu1 %v3754_v31  ;;  %v3806_v31 = vld [vmem:[#allocation7 + $0x208] ss:$16 sps:$4 sm:$0xff]  }
  0xb1   :  { %1880 = vmatprep.subr.bf16.mxu0 %v3755_v32  ;;  %2044 = vmatprep.subr.bf16.mxu1 %v3757_v33  ;;  %v3811_v32 = vld [vmem:[#allocation7 + $0x224] ss:$16 sps:$4 sm:$0xff]  }
  0xb4   :  { %1881 = vmatpush1.bf16.msra.mxu0 %v3759_v34  ;;  %2045 = vmatpush1.bf16.msra.mxu1 %v3760_v35  ;;  %v3814_v34 = vld [vmem:[#allocation7 + $0x22c] ss:$16 sps:$4 sm:$0xff]   ;;  %v3809_v35 = vld [vmem:[#allocation7 + $0x220] ss:$16 sps:$4 sm:$0xff]  }
  0xb5   :  { %1882 = vmatprep.subr.bf16.mxu0 %v3761_v36  ;;  %2046 = vmatprep.subr.bf16.mxu1 %v3763_v38  ;;  %v4701_v36 = vsub.s32 3, %v4677_v42  ;;  %v3817_v38 = vld [vmem:[#allocation7 + $0x244] ss:$16 sps:$4 sm:$0xff]  }
  0xb7   :  { %v4209_v21 = vpop.eup %4208  ;;  %v228_v53 = vrot.slane %v4690_v55, %v4701_v36 }
  0xb8   :  { %1883 = vmatpush1.bf16.msra.mxu0 %v3765_v39  ;;  %2047 = vmatpush1.bf16.msra.mxu1 %v3766_v40  ;;  %v4211_v22 = vpop.eup %4210  ;;  %v537_v23 = vadd.f32 1.0, %v4209_v21  ;;  %v4704_v39 = vsub.s32 2, %v4677_v42  ;;  %v3820_v40 = vld [vmem:[#allocation7 + $0x24c] ss:$16 sps:$4 sm:$0xff]   ;;  %v3851_v21 = vld [vmem:[#allocation7 + $0x300] ss:$16 sps:$4 sm:$0xff]  }
  0xb9   :  { %1884 = vmatprep.subr.bf16.mxu0 %v3767_v41  ;;  %2048 = vmatprep.subr.bf16.mxu1 %v3769_v43  ;;  %v536_v24 = vadd.f32 1.0, %v4211_v22  ;;  %v3815_v41 = vld [vmem:[#allocation7 + $0x240] ss:$16 sps:$4 sm:$0xff]   ;;  %v3818_v43 = vld [vmem:[#allocation7 + $0x248] ss:$16 sps:$4 sm:$0xff]  }
  0xba   :  { %4212 = vrcp.f32 %v537_v23  ;;  %v3854_v22 = vld [vmem:[#allocation7 + $0x308] ss:$16 sps:$4 sm:$0xff]   ;;  %v3859_v23 = vld [vmem:[#allocation7 + $0x324] ss:$16 sps:$4 sm:$0xff]  }
  0xbb   :  { %4214 = vrcp.f32 %v536_v24  ;;  %v3862_v24 = vld [vmem:[#allocation7 + $0x32c] ss:$16 sps:$4 sm:$0xff]  }
  0xbc   :  { %1885 = vmatpush1.bf16.msra.mxu0 %v3771_v44  ;;  %2049 = vmatpush1.bf16.msra.mxu1 %v3772_v45  ;;  %v3823_v44 = vld [vmem:[#allocation7 + $0x264] ss:$16 sps:$4 sm:$0xff]   ;;  %v3826_v45 = vld [vmem:[#allocation7 + $0x26c] ss:$16 sps:$4 sm:$0xff]  }
  0xbd   :  { %1886 = vmatprep.subr.bf16.mxu0 %v3773_v46  ;;  %2050 = vmatprep.subr.bf16.mxu1 %v3775_v49  ;;  %v178_v46 = vrot.slane %v4688_v54, %v4701_v36  ;;  %v174_v49 = vrot.slane %v4688_v54, %v4704_v39 }
  0xc0   :  { %1887 = vmatpush1.bf16.msra.mxu0 %v3777_v50  ;;  %2051 = vmatpush1.bf16.msra.mxu1 %v3778_v56  ;;  %v150_v50 = vld [vmem:[%s4901_s0 + $0x8] sm:$0xff]  ;;  %v224_v56 = vrot.slane %v4690_v55, %v4704_v39 }
  0xc1   :  { %1888 = vmatprep.subr.bf16.mxu0 %v3779_v57  ;;  %2052 = vmatprep.subr.bf16.mxu1 %v3781_v61  ;;  %v155_v51 = vunpack.c.l.bf16 %v150_v50  ;;  %v156_v52 = vunpack.c.h.bf16 %v150_v50  ;;  %v3821_v57 = vld [vmem:[#allocation7 + $0x260] ss:$16 sps:$4 sm:$0xff]   ;;  %v3878_v50 = vld [vmem:[#allocation7 + $0x388] ss:$16 sps:$4 sm:$0xff]  }
  0xc3   :  { %v206_v60 = vmul.f32 %v178_v46, %v156_v52  ;;  %v205_v61 = vmul.f32 %v174_v49, %v155_v51  ;;  %v185_v46 = vsub.s32 5, %v4677_v42  ;;  %v181_v49 = vsub.s32 4, %v4677_v42  ;;  %v3883_v51 = vld [vmem:[#allocation7 + $0x3a4] ss:$16 sps:$4 sm:$0xff]   ;;  %v3886_v52 = vld [vmem:[#allocation7 + $0x3ac] ss:$16 sps:$4 sm:$0xff]  }
  0xc4   :  { %1889 = vmatpush1.bf16.msra.mxu0 %v3783_v1  ;;  %2053 = vmatpush1.bf16.msra.mxu1 %v3784_v2  ;;  %v4213_v25 = vpop.eup %4212  ;;  %v3827_v1 = vld [vmem:[#allocation7 + $0x280] ss:$16 sps:$4 sm:$0xff]   ;;  %v3830_v2 = vld [vmem:[#allocation7 + $0x288] ss:$16 sps:$4 sm:$0xff]  }
  0xc5   :  { %1890 = vmatprep.subr.bf16.mxu0 %v3785_v3  ;;  %2054 = vmatprep.subr.bf16.mxu1 %v3787_v6  ;;  %v4215_v26 = vpop.eup %4214  ;;  %v561_v27 = vmul.f32 %v4213_v25, %v254_v4  ;;  %v4717_v63 = vadd.f32 %v228_v53, %v206_v60  ;;  %v4719_v0 = vadd.f32 %v224_v56, %v205_v61  ;;  %v3835_v4 = vld [vmem:[#allocation7 + $0x2a4] ss:$16 sps:$4 sm:$0xff]   ;;  %v3833_v6 = vld [vmem:[#allocation7 + $0x2a0] ss:$16 sps:$4 sm:$0xff]   ;;  %v3892_v61 = vld [vmem:[#allocation7 + $0x3cc] ss:$16 sps:$4 sm:$0xff]  }
  0xc6   :  { %v560_v29 = vmul.f32 %v4215_v26, %v253_v5  ;;  %v3838_v5 = vld [vmem:[#allocation7 + $0x2ac] ss:$16 sps:$4 sm:$0xff]   ;;  %v3857_v25 = vld [vmem:[#allocation7 + $0x320] ss:$16 sps:$4 sm:$0xff]   ;;  %v3860_v26 = vld [vmem:[#allocation7 + $0x328] ss:$16 sps:$4 sm:$0xff]   ;;  %v186_v56 = vrot.slane %v4688_v54, %v185_v46 }
  0xc7   :  { %v569_v30 = vpack.c.bf16 %v561_v27, %v561_v27  ;;  %v3207_v3 = vmul.f32 -1.442695, %v4717_v63  ;;  %v3865_v27 = vld [vmem:[#allocation7 + $0x344] ss:$16 sps:$4 sm:$0xff]   ;;  %v3881_v53 = vld [vmem:[#allocation7 + $0x3a0] ss:$16 sps:$4 sm:$0xff]  }
  0xc8   :  { %1891 = vmatpush1.bf16.msra.mxu0 %v3789_v9  ;;  %2055 = vmatpush1.bf16.msra.mxu1 %v3790_v10  ;;  %v568_v33 = vpack.c.bf16 %v560_v29, %v560_v29  ;;  %v3844_v9 = vld [vmem:[#allocation7 + $0x2cc] ss:$16 sps:$4 sm:$0xff]   ;;  %v3839_v10 = vld [vmem:[#allocation7 + $0x2c0] ss:$16 sps:$4 sm:$0xff]   ;;  %v3889_v60 = vld [vmem:[#allocation7 + $0x3c4] ss:$16 sps:$4 sm:$0xff]  }
  0xc9   :  { %1892 = vmatprep.subr.bf16.mxu0 %v3791_v11  ;;  %2056 = vmatprep.subr.bf16.mxu1 %v3793_v12  ;;  %4216 = vpow2.f32 %v3207_v3  ;;  %v3842_v11 = vld [vmem:[#allocation7 + $0x2c8] ss:$16 sps:$4 sm:$0xff]   ;;  %v3847_v12 = vld [vmem:[#allocation7 + $0x2e4] ss:$16 sps:$4 sm:$0xff]  }
  0xca   :  { %1896 = vmatprep.mubr.bf16.mxu0 %v569_v30  ;;  %2060 = vmatprep.mubr.bf16.mxu1 %v569_v30  ;;  %v3863_v30 = vld [vmem:[#allocation7 + $0x340] ss:$16 sps:$4 sm:$0xff]  }
  0xcc   :  { %1893 = vmatpush1.bf16.msra.mxu0 %v3795_v13  ;;  %2057 = vmatpush1.bf16.msra.mxu1 %v3796_v14  ;;  %v3850_v13 = vld [vmem:[#allocation7 + $0x2ec] ss:$16 sps:$4 sm:$0xff]   ;;  %v3206_v14 = vmul.f32 -1.442695, %v4719_v0 }
  0xcd   :  { %1894 = vmatprep.subr.bf16.mxu0 %v3797_v15  ;;  %2058 = vmatprep.subr.bf16.mxu1 %v3799_v16  ;;  %v3845_v15 = vld [vmem:[#allocation7 + $0x2e0] ss:$16 sps:$4 sm:$0xff]  }
  0xce   :  { %4218 = vpow2.f32 %v3206_v14 }
  0xd0   :  { %1895 = vmatpush1.bf16.msra.mxu0 %v3801_v17  ;;  %2059 = vmatpush1.bf16.msra.mxu1 %v3802_v18  ;;  %v3848_v17 = vld [vmem:[#allocation7 + $0x2e8] ss:$16 sps:$4 sm:$0xff]   ;;  %v3853_v18 = vld [vmem:[#allocation7 + $0x304] ss:$16 sps:$4 sm:$0xff]  }
  0xd1   :  { %1905 = vmatprep.subr.bf16.mxu0 %v3805_v19  ;;  %2069 = vmatprep.subr.bf16.mxu1 %v3808_v20  ;;  %v3856_v19 = vld [vmem:[#allocation7 + $0x30c] ss:$16 sps:$4 sm:$0xff]  }
  0xd3   :  { %1897 = vmatmul.mubr.bf16.vlgmr.msra.gmra.mrb[0].mxu0 %v568_v33  ;;  %2061 = vmatmul.mubr.bf16.vlgmr.msra.gmra.mrb[0].mxu1 %v568_v33  ;;  %v4217_v16 = vpop.eup %4216  ;;  %v3871_v33 = vld [vmem:[#allocation7 + $0x364] ss:$16 sps:$4 sm:$0xff]  }
  0xd4   :  { %1906 = vmatpush1.bf16.msra.mxu0 %v3803_v28  ;;  %2070 = vmatpush1.bf16.msra.mxu1 %v3806_v31  ;;  %v539_v20 = vadd.f32 1.0, %v4217_v16  ;;  %v3868_v28 = vld [vmem:[#allocation7 + $0x34c] ss:$16 sps:$4 sm:$0xff]   ;;  %v3866_v31 = vld [vmem:[#allocation7 + $0x348] ss:$16 sps:$4 sm:$0xff]  }
  0xd5   :  { %1907 = vmatprep.subr.bf16.mxu0 %v3811_v32  ;;  %2071 = vmatprep.subr.bf16.mxu1 %v3814_v34  ;;  %v3874_v34 = vld [vmem:[#allocation7 + $0x36c] ss:$16 sps:$4 sm:$0xff]   ;;  %v3901_v16 = vld [vmem:[#allocation7 + $0x404] ss:$16 sps:$4 sm:$0xff]  }
  0xd6   :  { %4220 = vrcp.f32 %v539_v20 }
  0xd8   :  { %1908 = vmatpush1.bf16.msra.mxu0 %v3809_v35  ;;  %2072 = vmatpush1.bf16.msra.mxu1 %v3812_v37  ;;  %v4219_v29 = vpop.eup %4218 }
  0xd9   :  { %1909 = vmatprep.subr.bf16.mxu0 %v3817_v38  ;;  %2073 = vmatprep.subr.bf16.mxu1 %v3820_v40  ;;  %v538_v37 = vadd.f32 1.0, %v4219_v29  ;;  %v3869_v38 = vld [vmem:[#allocation7 + $0x360] ss:$16 sps:$4 sm:$0xff]   ;;  %v3872_v40 = vld [vmem:[#allocation7 + $0x368] ss:$16 sps:$4 sm:$0xff]  }
  0xda   :  { %v3919_v29 = vld [vmem:[#allocation7 + $0x464] ss:$16 sps:$4 sm:$0xff]  }
  0xdb   :  { %4222 = vrcp.f32 %v538_v37  ;;  %v3923_v37 = vld [vmem:[#allocation7 + $0x480] ss:$16 sps:$4 sm:$0xff]  }
  0xdc   :  { %1910 = vmatpush1.bf16.msra.mxu0 %v3815_v41  ;;  %2074 = vmatpush1.bf16.msra.mxu1 %v3818_v43  ;;  %v3877_v43 = vld [vmem:[#allocation7 + $0x384] ss:$16 sps:$4 sm:$0xff]  }
  0xdd   :  { %1911 = vmatprep.subr.bf16.mxu0 %v3823_v44  ;;  %2075 = vmatprep.subr.bf16.mxu1 %v3826_v45  ;;  %v3880_v44 = vld [vmem:[#allocation7 + $0x38c] ss:$16 sps:$4 sm:$0xff]   ;;  %v3875_v45 = vld [vmem:[#allocation7 + $0x380] ss:$16 sps:$4 sm:$0xff]  }
  0xe0   :  { %1912 = vmatpush1.bf16.msra.mxu0 %v3821_v57  ;;  %2076 = vmatpush1.bf16.msra.mxu1 %v3824_v58  ;;  %v4221_v32 = vpop.eup %4220  ;;  %v182_v57 = vrot.slane %v4688_v54, %v181_v49  ;;  %v3884_v58 = vld [vmem:[#allocation7 + $0x3a8] ss:$16 sps:$4 sm:$0xff]  }
  0xe1   :  { %1913 = vmatprep.subr.bf16.mxu0 %v3829_v59  ;;  %2077 = vmatprep.subr.bf16.mxu1 %v3832_v62  ;;  %v563_v35 = vmul.f32 %v4221_v32, %v4717_v63  ;;  %v151_v59 = vld [vmem:[%s4901_s0 + $0x10] sm:$0xff] }
  0xe2   :  { %v157_v62 = vunpack.c.l.bf16 %v151_v59  ;;  %v158_v63 = vunpack.c.h.bf16 %v151_v59  ;;  %v3917_v32 = vld [vmem:[#allocation7 + $0x460] ss:$16 sps:$4 sm:$0xff]   ;;  %v3946_v59 = vld [vmem:[#allocation7 + $0x4ec] ss:$16 sps:$4 sm:$0xff]  }
  0xe3   :  { %v571_v41 = vpack.c.bf16 %v563_v35, %v563_v35  ;;  %v3928_v35 = vld [vmem:[#allocation7 + $0x48c] ss:$16 sps:$4 sm:$0xff]  }
  0xe4   :  { %1914 = vmatpush1.bf16.msra.mxu0 %v3827_v1  ;;  %2078 = vmatpush1.bf16.msra.mxu1 %v3830_v2  ;;  %v236_v1 = vrot.slane %v4690_v55, %v185_v46  ;;  %v232_v2 = vrot.slane %v4690_v55, %v181_v49  ;;  %v208_v3 = vmul.f32 %v186_v56, %v158_v63  ;;  %v3937_v46 = vld [vmem:[#allocation7 + $0x4c4] ss:$16 sps:$4 sm:$0xff]   ;;  %v3940_v49 = vld [vmem:[#allocation7 + $0x4cc] ss:$16 sps:$4 sm:$0xff]   ;;  %v3938_v56 = vld [vmem:[#allocation7 + $0x4c8] ss:$16 sps:$4 sm:$0xff]  }
  0xe5   :  { %1915 = vmatprep.subr.bf16.mxu0 %v3835_v4  ;;  %2079 = vmatprep.subr.bf16.mxu1 %v3838_v5  ;;  %v207_v4 = vmul.f32 %v182_v57, %v157_v62  ;;  %v4223_v5 = vpop.eup %4222  ;;  %v3941_v63 = vld [vmem:[#allocation7 + $0x4e0] ss:$16 sps:$4 sm:$0xff]  }
  0xe6   :  { %1937 = vmatprep.mubr.bf16.mxu0 %v571_v41  ;;  %2101 = vmatprep.mubr.bf16.mxu1 %v571_v41  ;;  %v562_v14 = vmul.f32 %v4223_v5, %v4719_v0  ;;  %v3905_v0 = vld [vmem:[#allocation7 + $0x420] ss:$16 sps:$4 sm:$0xff]   ;;  %v3934_v41 = vld [vmem:[#allocation7 + $0x4ac] ss:$16 sps:$4 sm:$0xff]  }
  0xe8   :  { %1916 = vmatpush1.bf16.msra.mxu0 %v3833_v6  ;;  %2080 = vmatpush1.bf16.msra.mxu1 %v3836_v7  ;;  %v3887_v6 = vld [vmem:[#allocation7 + $0x3c0] ss:$16 sps:$4 sm:$0xff]   ;;  %v3890_v7 = vld [vmem:[#allocation7 + $0x3c8] ss:$16 sps:$4 sm:$0xff]   ;;  %v570_v20 = vpack.c.bf16 %v562_v14, %v562_v14 }
  0xe9   :  { %1917 = vmatprep.subr.bf16.mxu0 %v3841_v8  ;;  %2081 = vmatprep.subr.bf16.mxu1 %v3844_v9  ;;  %v3895_v8 = vld [vmem:[#allocation7 + $0x3e4] ss:$16 sps:$4 sm:$0xff]   ;;  %v3898_v9 = vld [vmem:[#allocation7 + $0x3ec] ss:$16 sps:$4 sm:$0xff]  }
  0xec   :  { %1918 = vmatpush1.bf16.msra.mxu0 %v3839_v10  ;;  %2082 = vmatpush1.bf16.msra.mxu1 %v3842_v11  ;;  %v4733_v10 = vadd.f32 %v236_v1, %v208_v3  ;;  %v4735_v11 = vadd.f32 %v232_v2, %v207_v4  ;;  %v3944_v1 = vld [vmem:[#allocation7 + $0x4e8] ss:$16 sps:$4 sm:$0xff]   ;;  %v3949_v2 = vld [vmem:[#allocation7 + $0x504] ss:$16 sps:$4 sm:$0xff]  }
  0xed   :  { %1919 = vmatprep.subr.bf16.mxu0 %v3847_v12  ;;  %2083 = vmatprep.subr.bf16.mxu1 %v3850_v13  ;;  %v3893_v12 = vld [vmem:[#allocation7 + $0x3e0] ss:$16 sps:$4 sm:$0xff]   ;;  %v3896_v13 = vld [vmem:[#allocation7 + $0x3e8] ss:$16 sps:$4 sm:$0xff]  }
  0xf0   :  { %1920 = vmatpush1.bf16.msra.mxu0 %v3845_v15  ;;  %2084 = vmatpush1.bf16.msra.mxu1 %v3848_v17  ;;  %v3209_v15 = vmul.f32 -1.442695, %v4733_v10  ;;  %v3904_v17 = vld [vmem:[#allocation7 + $0x40c] ss:$16 sps:$4 sm:$0xff]  }
  0xf1   :  { %1921 = vmatprep.subr.bf16.mxu0 %v3853_v18  ;;  %2085 = vmatprep.subr.bf16.mxu1 %v3856_v19  ;;  %v3899_v18 = vld [vmem:[#allocation7 + $0x400] ss:$16 sps:$4 sm:$0xff]   ;;  %v3902_v19 = vld [vmem:[#allocation7 + $0x408] ss:$16 sps:$4 sm:$0xff]  }
  0xf2   :  { %4224 = vpow2.f32 %v3209_v15  ;;  %v3958_v15 = vld [vmem:[#allocation7 + $0x52c] ss:$16 sps:$4 sm:$0xff]  }
  0xf4   :  { %1922 = vmatpush1.bf16.msra.mxu0 %v3851_v21  ;;  %2086 = vmatpush1.bf16.msra.mxu1 %v3854_v22  ;;  %v3907_v21 = vld [vmem:[#allocation7 + $0x424] ss:$16 sps:$4 sm:$0xff]   ;;  %v3910_v22 = vld [vmem:[#allocation7 + $0x42c] ss:$16 sps:$4 sm:$0xff]  }
  0xf5   :  { %1923 = vmatprep.subr.bf16.mxu0 %v3859_v23  ;;  %2087 = vmatprep.subr.bf16.mxu1 %v3862_v24  ;;  %v3908_v23 = vld [vmem:[#allocation7 + $0x428] ss:$16 sps:$4 sm:$0xff]   ;;  %v3913_v24 = vld [vmem:[#allocation7 + $0x444] ss:$16 sps:$4 sm:$0xff]  }
  0xf8   :  { %1924 = vmatpush1.bf16.msra.mxu0 %v3857_v25  ;;  %2088 = vmatpush1.bf16.msra.mxu1 %v3860_v26  ;;  %v3916_v25 = vld [vmem:[#allocation7 + $0x44c] ss:$16 sps:$4 sm:$0xff]  }
  0xf9   :  { %1925 = vmatprep.subr.bf16.mxu0 %v3865_v27  ;;  %2089 = vmatprep.subr.bf16.mxu1 %v3868_v28  ;;  %v3911_v27 = vld [vmem:[#allocation7 + $0x440] ss:$16 sps:$4 sm:$0xff]   ;;  %v3914_v28 = vld [vmem:[#allocation7 + $0x448] ss:$16 sps:$4 sm:$0xff]  }
  0xfc   :  { %1926 = vmatpush1.bf16.msra.mxu0 %v3863_v30  ;;  %2090 = vmatpush1.bf16.msra.mxu1 %v3866_v31  ;;  %v4225_v26 = vpop.eup %4224  ;;  %v3922_v31 = vld [vmem:[#allocation7 + $0x46c] ss:$16 sps:$4 sm:$0xff]  }
  0xfd   :  { %1927 = vmatprep.subr.bf16.mxu0 %v3871_v33  ;;  %2091 = vmatprep.subr.bf16.mxu1 %v3874_v34  ;;  %v541_v30 = vadd.f32 1.0, %v4225_v26  ;;  %v3920_v33 = vld [vmem:[#allocation7 + $0x468] ss:$16 sps:$4 sm:$0xff]   ;;  %v3925_v34 = vld [vmem:[#allocation7 + $0x484] ss:$16 sps:$4 sm:$0xff]  }
  0xff   :  { %4226 = vrcp.f32 %v541_v30  ;;  %v3971_v30 = vld [vmem:[#allocation7 + $0x580] ss:$16 sps:$4 sm:$0xff]  }
 0x100   :  { %1928 = vmatpush1.bf16.msra.mxu0 %v3869_v38  ;;  %2092 = vmatpush1.bf16.msra.mxu1 %v3872_v40  ;;  %v3926_v38 = vld [vmem:[#allocation7 + $0x488] ss:$16 sps:$4 sm:$0xff]   ;;  %v3931_v40 = vld [vmem:[#allocation7 + $0x4a4] ss:$16 sps:$4 sm:$0xff]  }
 0x101   :  { %1929 = vmatprep.subr.bf16.mxu0 %v3877_v43  ;;  %2093 = vmatprep.subr.bf16.mxu1 %v3880_v44  ;;  %v3929_v43 = vld [vmem:[#allocation7 + $0x4a0] ss:$16 sps:$4 sm:$0xff]   ;;  %v3932_v44 = vld [vmem:[#allocation7 + $0x4a8] ss:$16 sps:$4 sm:$0xff]  }
 0x104   :  { %1930 = vmatpush1.bf16.msra.mxu0 %v3875_v45  ;;  %2094 = vmatpush1.bf16.msra.mxu1 %v3878_v50 }
 0x105   :  { %1931 = vmatprep.subr.bf16.mxu0 %v3883_v51  ;;  %2095 = vmatprep.subr.bf16.mxu1 %v3886_v52  ;;  %v193_v51 = vsub.s32 7, %v4677_v42  ;;  %v189_v52 = vsub.s32 6, %v4677_v42  ;;  %v152_v42 = vld [vmem:[%s4901_s0 + $0x18] sm:$0xff] }
 0x106   :  { %v160_v3 = vunpack.c.h.bf16 %v152_v42  ;;  %v159_v5 = vunpack.c.l.bf16 %v152_v42  ;;  %v4004_v42 = vld [vmem:[#allocation7 + $0x628] ss:$16 sps:$4 sm:$0xff]  }
 0x107   :  { %v190_v62 = vrot.slane %v4688_v54, %v189_v52  ;;  %v244_v4 = vrot.slane %v4690_v55, %v193_v51 }
 0x108   :  { %1932 = vmatpush1.bf16.msra.mxu0 %v3881_v53  ;;  %2096 = vmatpush1.bf16.msra.mxu1 %v3884_v58  ;;  %v3935_v53 = vld [vmem:[#allocation7 + $0x4c0] ss:$16 sps:$4 sm:$0xff]   ;;  %v3943_v58 = vld [vmem:[#allocation7 + $0x4e4] ss:$16 sps:$4 sm:$0xff]  }
 0x109   :  { %1933 = vmatprep.subr.bf16.mxu0 %v3889_v60  ;;  %2097 = vmatprep.subr.bf16.mxu1 %v3892_v61  ;;  %v4227_v45 = vpop.eup %4226  ;;  %v3208_v60 = vmul.f32 -1.442695, %v4735_v11  ;;  %v194_v61 = vrot.slane %v4688_v54, %v193_v51 }
 0x10a   :  { %v565_v50 = vmul.f32 %v4227_v45, %v4733_v10  ;;  %v3950_v10 = vld [vmem:[#allocation7 + $0x508] ss:$16 sps:$4 sm:$0xff]   ;;  %v3994_v45 = vld [vmem:[#allocation7 + $0x5ec] ss:$16 sps:$4 sm:$0xff]  }
 0x10b   :  { %4228 = vpow2.f32 %v3208_v60  ;;  %v210_v54 = vmul.f32 %v194_v61, %v160_v3  ;;  %v4003_v61 = vld [vmem:[#allocation7 + $0x624] ss:$16 sps:$4 sm:$0xff]   ;;  %v4007_v3 = vld [vmem:[#allocation7 + $0x640] ss:$16 sps:$4 sm:$0xff]  }
 0x10c   :  { %1934 = vmatpush1.bf16.msra.mxu0 %v3887_v6  ;;  %2098 = vmatpush1.bf16.msra.mxu1 %v3890_v7  ;;  %v573_v57 = vpack.c.bf16 %v565_v50, %v565_v50  ;;  %v240_v6 = vrot.slane %v4690_v55, %v189_v52  ;;  %v3952_v7 = vld [vmem:[#allocation7 + $0x50c] ss:$16 sps:$4 sm:$0xff]   ;;  %v3992_v50 = vld [vmem:[#allocation7 + $0x5e8] ss:$16 sps:$4 sm:$0xff]   ;;  %v3997_v52 = vld [vmem:[#allocation7 + $0x604] ss:$16 sps:$4 sm:$0xff]  }
 0x10d   :  { %1935 = vmatprep.subr.bf16.mxu0 %v3895_v8  ;;  %2099 = vmatprep.subr.bf16.mxu1 %v3898_v9  ;;  %v209_v8 = vmul.f32 %v190_v62, %v159_v5  ;;  %v3947_v9 = vld [vmem:[#allocation7 + $0x500] ss:$16 sps:$4 sm:$0xff]   ;;  %v4006_v62 = vld [vmem:[#allocation7 + $0x62c] ss:$16 sps:$4 sm:$0xff]   ;;  %v4015_v5 = vld [vmem:[#allocation7 + $0x664] ss:$16 sps:$4 sm:$0xff]  }
 0x10f   :  { %v4752_v14 = vadd.f32 %v240_v6, %v209_v8  ;;  %v4018_v6 = vld [vmem:[#allocation7 + $0x66c] ss:$16 sps:$4 sm:$0xff]   ;;  %v4021_v8 = vld [vmem:[#allocation7 + $0x684] ss:$16 sps:$4 sm:$0xff]  }
 0x110   :  { %1936 = vmatpush1.bf16.msra.mxu0 %v3893_v12  ;;  %2100 = vmatpush1.bf16.msra.mxu1 %v3896_v13  ;;  %v3955_v12 = vld [vmem:[#allocation7 + $0x524] ss:$16 sps:$4 sm:$0xff]   ;;  %v4750_v13 = vadd.f32 %v244_v4, %v210_v54  ;;  %v4010_v4 = vld [vmem:[#allocation7 + $0x648] ss:$16 sps:$4 sm:$0xff]  }
 0x111   :  { %1946 = vmatprep.subr.bf16.mxu0 %v3901_v16  ;;  %2110 = vmatprep.subr.bf16.mxu1 %v3904_v17  ;;  %v3953_v16 = vld [vmem:[#allocation7 + $0x520] ss:$16 sps:$4 sm:$0xff]   ;;  %v3956_v17 = vld [vmem:[#allocation7 + $0x528] ss:$16 sps:$4 sm:$0xff]  }
 0x112   :  { %v3211_v55 = vmul.f32 -1.442695, %v4750_v13  ;;  %v4016_v54 = vld [vmem:[#allocation7 + $0x668] ss:$16 sps:$4 sm:$0xff]  }
 0x113   :  { %1938 = vmatmul.mubr.bf16.vlgmr.msra.gmra.mrb[0].mxu0 %v570_v20  ;;  %2102 = vmatmul.mubr.bf16.vlgmr.msra.gmra.mrb[0].mxu1 %v570_v20  ;;  %v3959_v20 = vld [vmem:[#allocation7 + $0x540] ss:$16 sps:$4 sm:$0xff]  }
 0x114   :  { %1947 = vmatpush1.bf16.msra.mxu0 %v3899_v18  ;;  %2111 = vmatpush1.bf16.msra.mxu1 %v3902_v19  ;;  %4230 = vpow2.f32 %v3211_v55  ;;  %v3961_v18 = vld [vmem:[#allocation7 + $0x544] ss:$16 sps:$4 sm:$0xff]   ;;  %v3964_v19 = vld [vmem:[#allocation7 + $0x54c] ss:$16 sps:$4 sm:$0xff]   ;;  %v4025_v55 = vld [vmem:[#allocation7 + $0x6a0] ss:$16 sps:$4 sm:$0xff]  }
 0x115   :  { %1948 = vmatprep.subr.bf16.mxu0 %v3907_v21  ;;  %2112 = vmatprep.subr.bf16.mxu1 %v3910_v22  ;;  %v3962_v21 = vld [vmem:[#allocation7 + $0x548] ss:$16 sps:$4 sm:$0xff]   ;;  %v4229_v22 = vpop.eup %4228 }
 0x116   :  { %1978 = vmatprep.mubr.bf16.mxu0 %v573_v57  ;;  %2142 = vmatprep.mubr.bf16.mxu1 %v573_v57  ;;  %v540_v26 = vadd.f32 1.0, %v4229_v22  ;;  %v3995_v57 = vld [vmem:[#allocation7 + $0x600] ss:$16 sps:$4 sm:$0xff]   ;;  %v4039_v22 = vld [vmem:[#allocation7 + $0x6e4] ss:$16 sps:$4 sm:$0xff]  }
 0x118   :  { %1949 = vmatpush1.bf16.msra.mxu0 %v3905_v0  ;;  %2113 = vmatpush1.bf16.msra.mxu1 %v3908_v23  ;;  %v3967_v0 = vld [vmem:[#allocation7 + $0x564] ss:$16 sps:$4 sm:$0xff]   ;;  %v3970_v23 = vld [vmem:[#allocation7 + $0x56c] ss:$16 sps:$4 sm:$0xff]   ;;  %4232 = vrcp.f32 %v540_v26 }
 0x119   :  { %1950 = vmatprep.subr.bf16.mxu0 %v3913_v24  ;;  %2114 = vmatprep.subr.bf16.mxu1 %v3916_v25  ;;  %v3965_v24 = vld [vmem:[#allocation7 + $0x560] ss:$16 sps:$4 sm:$0xff]   ;;  %v3968_v25 = vld [vmem:[#allocation7 + $0x568] ss:$16 sps:$4 sm:$0xff]   ;;  %v4048_v26 = vld [vmem:[#allocation7 + $0x70c] ss:$16 sps:$4 sm:$0xff]  }
 0x11c   :  { %1951 = vmatpush1.bf16.msra.mxu0 %v3911_v27  ;;  %2115 = vmatpush1.bf16.msra.mxu1 %v3914_v28  ;;  %v3973_v27 = vld [vmem:[#allocation7 + $0x584] ss:$16 sps:$4 sm:$0xff]   ;;  %v3976_v28 = vld [vmem:[#allocation7 + $0x58c] ss:$16 sps:$4 sm:$0xff]  }
 0x11d   :  { %1952 = vmatprep.subr.bf16.mxu0 %v3919_v29  ;;  %2116 = vmatprep.subr.bf16.mxu1 %v3922_v31  ;;  %v3974_v31 = vld [vmem:[#allocation7 + $0x588] ss:$16 sps:$4 sm:$0xff]  }
 0x11e   :  { %v4231_v29 = vpop.eup %4230 }
 0x120   :  { %1953 = vmatpush1.bf16.msra.mxu0 %v3917_v32  ;;  %2117 = vmatpush1.bf16.msra.mxu1 %v3920_v33  ;;  %v3979_v32 = vld [vmem:[#allocation7 + $0x5a4] ss:$16 sps:$4 sm:$0xff]   ;;  %v3982_v33 = vld [vmem:[#allocation7 + $0x5ac] ss:$16 sps:$4 sm:$0xff]  }
 0x121   :  { %1954 = vmatprep.subr.bf16.mxu0 %v3925_v34  ;;  %2118 = vmatprep.subr.bf16.mxu1 %v3928_v35  ;;  %v543_v34 = vadd.f32 1.0, %v4231_v29  ;;  %v3977_v35 = vld [vmem:[#allocation7 + $0x5a0] ss:$16 sps:$4 sm:$0xff]   ;;  %v4051_v29 = vld [vmem:[#allocation7 + $0x724] ss:$16 sps:$4 sm:$0xff]  }
 0x123   :  { %4234 = vrcp.f32 %v543_v34  ;;  %v4057_v34 = vld [vmem:[#allocation7 + $0x744] ss:$16 sps:$4 sm:$0xff]  }
 0x124   :  { %1955 = vmatpush1.bf16.msra.mxu0 %v3923_v37  ;;  %2119 = vmatpush1.bf16.msra.mxu1 %v3926_v38  ;;  %v3980_v37 = vld [vmem:[#allocation7 + $0x5a8] ss:$16 sps:$4 sm:$0xff]   ;;  %v3985_v38 = vld [vmem:[#allocation7 + $0x5c4] ss:$16 sps:$4 sm:$0xff]  }
 0x125   :  { %1956 = vmatprep.subr.bf16.mxu0 %v3931_v40  ;;  %2120 = vmatprep.subr.bf16.mxu1 %v3934_v41  ;;  %v3988_v40 = vld [vmem:[#allocation7 + $0x5cc] ss:$16 sps:$4 sm:$0xff]   ;;  %v3983_v41 = vld [vmem:[#allocation7 + $0x5c0] ss:$16 sps:$4 sm:$0xff]  }
 0x128   :  { %1957 = vmatpush1.bf16.msra.mxu0 %v3929_v43  ;;  %2121 = vmatpush1.bf16.msra.mxu1 %v3932_v44  ;;  %v3986_v43 = vld [vmem:[#allocation7 + $0x5c8] ss:$16 sps:$4 sm:$0xff]   ;;  %v3991_v44 = vld [vmem:[#allocation7 + $0x5e4] ss:$16 sps:$4 sm:$0xff]  }
 0x129   :  { %1958 = vmatprep.subr.bf16.mxu0 %v3937_v46  ;;  %2122 = vmatprep.subr.bf16.mxu1 %v3940_v49  ;;  %v4233_v46 = vpop.eup %4232  ;;  %v3989_v49 = vld [vmem:[#allocation7 + $0x5e0] ss:$16 sps:$4 sm:$0xff]  }
 0x12c   :  { %1959 = vmatpush1.bf16.msra.mxu0 %v3935_v53  ;;  %2123 = vmatpush1.bf16.msra.mxu1 %v3938_v56  ;;  %v4000_v53 = vld [vmem:[#allocation7 + $0x60c] ss:$16 sps:$4 sm:$0xff]   ;;  %v564_v56 = vmul.f32 %v4233_v46, %v4735_v11  ;;  %v4009_v11 = vld [vmem:[#allocation7 + $0x644] ss:$16 sps:$4 sm:$0xff]  }
 0x12d   :  { %1960 = vmatprep.subr.bf16.mxu0 %v3943_v58  ;;  %2124 = vmatprep.subr.bf16.mxu1 %v3946_v59  ;;  %v4235_v51 = vpop.eup %4234  ;;  %v3998_v58 = vld [vmem:[#allocation7 + $0x608] ss:$16 sps:$4 sm:$0xff]   ;;  %v4069_v46 = vld [vmem:[#allocation7 + $0x784] ss:$16 sps:$4 sm:$0xff]  }
 0x12e   :  { %v567_v59 = vmul.f32 %v4235_v51, %v4750_v13  ;;  %v572_v60 = vpack.c.bf16 %v564_v56, %v564_v56  ;;  %v4027_v13 = vld [vmem:[#allocation7 + $0x6a4] ss:$16 sps:$4 sm:$0xff]   ;;  %v4070_v51 = vld [vmem:[#allocation7 + $0x788] ss:$16 sps:$4 sm:$0xff]  }
 0x12f   :  { %v509_v56 = vld [vmem:[#allocation7 + $0x7c0] sm:$0xff] }
 0x130   :  { %1961 = vmatpush1.bf16.msra.mxu0 %v3941_v63  ;;  %2125 = vmatpush1.bf16.msra.mxu1 %v3944_v1  ;;  %v4001_v63 = vld [vmem:[#allocation7 + $0x620] ss:$16 sps:$4 sm:$0xff]   ;;  %v575_v1 = vpack.c.bf16 %v567_v59, %v567_v59 }
 0x131   :  { %1962 = vmatprep.subr.bf16.mxu0 %v3949_v2  ;;  %2126 = vmatprep.subr.bf16.mxu1 %v3952_v7  ;;  %v4012_v2 = vld [vmem:[#allocation7 + $0x64c] ss:$16 sps:$4 sm:$0xff]   ;;  %v4013_v7 = vld [vmem:[#allocation7 + $0x660] ss:$16 sps:$4 sm:$0xff]  }
 0x132   :  { %v4073_v59 = vld [vmem:[#allocation7 + $0x7a0] ss:$16 sps:$4 sm:$0xff]  }
 0x134   :  { %1963 = vmatpush1.bf16.msra.mxu0 %v3947_v9  ;;  %2127 = vmatpush1.bf16.msra.mxu1 %v3950_v10  ;;  %v4024_v9 = vld [vmem:[#allocation7 + $0x68c] ss:$16 sps:$4 sm:$0xff]   ;;  %v4019_v10 = vld [vmem:[#allocation7 + $0x680] ss:$16 sps:$4 sm:$0xff]  }
 0x135   :  { %1964 = vmatprep.subr.bf16.mxu0 %v3955_v12  ;;  %2128 = vmatprep.subr.bf16.mxu1 %v3958_v15  ;;  %v4022_v12 = vld [vmem:[#allocation7 + $0x688] ss:$16 sps:$4 sm:$0xff]   ;;  %v4030_v15 = vld [vmem:[#allocation7 + $0x6ac] ss:$16 sps:$4 sm:$0xff]  }
 0x138   :  { %1965 = vmatpush1.bf16.msra.mxu0 %v3953_v16  ;;  %2129 = vmatpush1.bf16.msra.mxu1 %v3956_v17  ;;  %v4028_v16 = vld [vmem:[#allocation7 + $0x6a8] ss:$16 sps:$4 sm:$0xff]   ;;  %v4033_v17 = vld [vmem:[#allocation7 + $0x6c4] ss:$16 sps:$4 sm:$0xff]  }
 0x139   :  { %1966 = vmatprep.subr.bf16.mxu0 %v3961_v18  ;;  %2130 = vmatprep.subr.bf16.mxu1 %v3964_v19  ;;  %v4036_v18 = vld [vmem:[#allocation7 + $0x6cc] ss:$16 sps:$4 sm:$0xff]   ;;  %v3210_v19 = vmul.f32 -1.442695, %v4752_v14 }
 0x13b   :  { %4236 = vpow2.f32 %v3210_v19  ;;  %v4109_v19 = vld [vmem:[#allocation10 + $0x84] ss:$8 sps:$4 sm:$0xff]  }
 0x13c   :  { %1967 = vmatpush1.bf16.msra.mxu0 %v3959_v20  ;;  %2131 = vmatpush1.bf16.msra.mxu1 %v3962_v21  ;;  %v4031_v20 = vld [vmem:[#allocation7 + $0x6c0] ss:$16 sps:$4 sm:$0xff]   ;;  %v4034_v21 = vld [vmem:[#allocation7 + $0x6c8] ss:$16 sps:$4 sm:$0xff]  }
 0x13d   :  { %1968 = vmatprep.subr.bf16.mxu0 %v3967_v0  ;;  %2132 = vmatprep.subr.bf16.mxu1 %v3970_v23  ;;  %v4042_v0 = vld [vmem:[#allocation7 + $0x6ec] ss:$16 sps:$4 sm:$0xff]   ;;  %v4037_v23 = vld [vmem:[#allocation7 + $0x6e0] ss:$16 sps:$4 sm:$0xff]  }
 0x140   :  { %1969 = vmatpush1.bf16.msra.mxu0 %v3965_v24  ;;  %2133 = vmatpush1.bf16.msra.mxu1 %v3968_v25  ;;  %v4040_v24 = vld [vmem:[#allocation7 + $0x6e8] ss:$16 sps:$4 sm:$0xff]   ;;  %v4045_v25 = vld [vmem:[#allocation7 + $0x704] ss:$16 sps:$4 sm:$0xff]  }
 0x141   :  { %1970 = vmatprep.subr.bf16.mxu0 %v3973_v27  ;;  %2134 = vmatprep.subr.bf16.mxu1 %v3976_v28  ;;  %v4043_v27 = vld [vmem:[#allocation7 + $0x700] ss:$16 sps:$4 sm:$0xff]   ;;  %v4046_v28 = vld [vmem:[#allocation7 + $0x708] ss:$16 sps:$4 sm:$0xff]  }
 0x144   :  { %1971 = vmatpush1.bf16.msra.mxu0 %v3971_v30  ;;  %2135 = vmatpush1.bf16.msra.mxu1 %v3974_v31  ;;  %v4054_v30 = vld [vmem:[#allocation7 + $0x72c] ss:$16 sps:$4 sm:$0xff]  }
 0x145   :  { %1972 = vmatprep.subr.bf16.mxu0 %v3979_v32  ;;  %2136 = vmatprep.subr.bf16.mxu1 %v3982_v33  ;;  %v4237_v31 = vpop.eup %4236  ;;  %v4049_v32 = vld [vmem:[#allocation7 + $0x720] ss:$16 sps:$4 sm:$0xff]   ;;  %v4052_v33 = vld [vmem:[#allocation7 + $0x728] ss:$16 sps:$4 sm:$0xff]  }
 0x148   :  { %1973 = vmatpush1.bf16.msra.mxu0 %v3977_v35  ;;  %2137 = vmatpush1.bf16.msra.mxu1 %v3980_v37  ;;  %v4060_v35 = vld [vmem:[#allocation7 + $0x74c] ss:$16 sps:$4 sm:$0xff]   ;;  %v542_v37 = vadd.f32 1.0, %v4237_v31 }
 0x149   :  { %1974 = vmatprep.subr.bf16.mxu0 %v3985_v38  ;;  %2138 = vmatprep.subr.bf16.mxu1 %v3988_v40  ;;  %v4055_v38 = vld [vmem:[#allocation7 + $0x740] ss:$16 sps:$4 sm:$0xff]   ;;  %v4058_v40 = vld [vmem:[#allocation7 + $0x748] ss:$16 sps:$4 sm:$0xff]   ;;  %v4125_v31 = vld [vmem:[#allocation10 + $0xe0] ss:$8 sps:$4 sm:$0xff]  }
 0x14a   :  { %4238 = vrcp.f32 %v542_v37 }
 0x14c   :  { %1975 = vmatpush1.bf16.msra.mxu0 %v3983_v41  ;;  %2139 = vmatpush1.bf16.msra.mxu1 %v3986_v43  ;;  %v4063_v41 = vld [vmem:[#allocation7 + $0x764] ss:$16 sps:$4 sm:$0xff]   ;;  %v4066_v43 = vld [vmem:[#allocation7 + $0x76c] ss:$16 sps:$4 sm:$0xff]  }
 0x14d   :  { %1976 = vmatprep.subr.bf16.mxu0 %v3991_v44  ;;  %2140 = vmatprep.subr.bf16.mxu1 %v3994_v45  ;;  %v4061_v44 = vld [vmem:[#allocation7 + $0x760] ss:$16 sps:$4 sm:$0xff]   ;;  %v4064_v45 = vld [vmem:[#allocation7 + $0x768] ss:$16 sps:$4 sm:$0xff]  }
 0x150   :  { %1977 = vmatpush1.bf16.msra.mxu0 %v3989_v49  ;;  %2141 = vmatpush1.bf16.msra.mxu1 %v3992_v50  ;;  %v4072_v49 = vld [vmem:[#allocation7 + $0x78c] ss:$16 sps:$4 sm:$0xff]   ;;  %v4067_v50 = vld [vmem:[#allocation7 + $0x780] ss:$16 sps:$4 sm:$0xff]  }
 0x151   :  { %1987 = vmatprep.subr.bf16.mxu0 %v3997_v52  ;;  %2151 = vmatprep.subr.bf16.mxu1 %v4000_v53  ;;  %v4075_v52 = vld [vmem:[#allocation7 + $0x7a4] ss:$16 sps:$4 sm:$0xff]   ;;  %v4078_v53 = vld [vmem:[#allocation7 + $0x7ac] ss:$16 sps:$4 sm:$0xff]  }
 0x153   :  { %1979 = vmatmul.mubr.bf16.vlgmr.msra.gmra.mrb[0].mxu0 %v572_v60  ;;  %2143 = vmatmul.mubr.bf16.vlgmr.msra.gmra.mrb[0].mxu1 %v572_v60  ;;  %v4076_v60 = vld [vmem:[#allocation7 + $0x7a8] ss:$16 sps:$4 sm:$0xff]  }
 0x154   :  { %1988 = vmatpush1.bf16.msra.mxu0 %v3995_v57  ;;  %2152 = vmatpush1.bf16.msra.mxu1 %v3998_v58  ;;  %v510_v57 = vld [vmem:[#allocation7 + $0x7c8] sm:$0xff]  ;;  %v4239_v58 = vpop.eup %4238 }
 0x155   :  { %1989 = vmatprep.subr.bf16.mxu0 %v4003_v61  ;;  %2153 = vmatprep.subr.bf16.mxu1 %v4006_v62  ;;  %v3461_v61 = vcombine.high %v509_v56, %v509_v56  ;;  %v3463_v62 = vcombine.high %v510_v57, %v510_v57 }
 0x156   :  { %3465 = vmatprep.mubr.msk.bf16.mxu0 %vm1847_vm0, %v575_v1  ;;  %3467 = vmatprep.mubr.msk.bf16.mxu1 %vm1847_vm0, %v575_v1  ;;  %v566_v1 = vmul.f32 %v4239_v58, %v4752_v14  ;;  %v4089_v14 = vld [vmem:[#allocation10 + $0x20] ss:$8 sps:$4 sm:$0xff]  }
 0x158   :  { %1990 = vmatpush1.bf16.msra.mxu0 %v4001_v63  ;;  %2154 = vmatpush1.bf16.msra.mxu1 %v4004_v42  ;;  %v3460_v63 = vcombine.low %v509_v56, %v509_v56  ;;  %v3462_v42 = vcombine.low %v510_v57, %v510_v57 }
 0x159   :  { %1991 = vmatprep.subr.bf16.mxu0 %v4009_v11  ;;  %2155 = vmatprep.subr.bf16.mxu1 %v4012_v2 }
 0x15a   :  { %v1853_v11 = vsel %vm1851_vm1, %v3460_v63, 0  ;;  %v1859_v2 = vsel %vm1851_vm1, %v3462_v42, 0 }
 0x15c   :  { %1992 = vmatpush1.bf16.msra.mxu0 %v4007_v3  ;;  %2156 = vmatpush1.bf16.msra.mxu1 %v4010_v4  ;;  %v4085_v3 = vld [vmem:[#allocation10 + $0x4] ss:$8 sps:$4 sm:$0xff]   ;;  %v574_v4 = vpack.c.bf16 %v566_v1, %v566_v1 }
 0x15d   :  { %1993 = vmatprep.subr.bf16.mxu0 %v4015_v5  ;;  %2157 = vmatprep.subr.bf16.mxu1 %v4018_v6  ;;  %v4083_v5 = vld [vmem:[#allocation10] ss:$8 sps:$4 sm:$0xff]   ;;  %v4088_v6 = vld [vmem:[#allocation10 + $0x14] ss:$8 sps:$4 sm:$0xff]  }
 0x160   :  { %1994 = vmatpush1.bf16.msra.mxu0 %v4013_v7  ;;  %2158 = vmatpush1.bf16.msra.mxu1 %v4016_v54  ;;  %v4086_v7 = vld [vmem:[#allocation10 + $0x10] ss:$8 sps:$4 sm:$0xff]   ;;  %v4091_v54 = vld [vmem:[#allocation10 + $0x24] ss:$8 sps:$4 sm:$0xff]  }
 0x161   :  { %1995 = vmatprep.subr.bf16.mxu0 %v4021_v8  ;;  %2159 = vmatprep.subr.bf16.mxu1 %v4024_v9  ;;  %v4094_v8 = vld [vmem:[#allocation10 + $0x34] ss:$8 sps:$4 sm:$0xff]   ;;  %v4092_v9 = vld [vmem:[#allocation10 + $0x30] ss:$8 sps:$4 sm:$0xff]  }
 0x164   :  { %1996 = vmatpush1.bf16.msra.mxu0 %v4019_v10  ;;  %2160 = vmatpush1.bf16.msra.mxu1 %v4022_v12  ;;  %v4097_v10 = vld [vmem:[#allocation10 + $0x44] ss:$8 sps:$4 sm:$0xff]   ;;  %v4095_v12 = vld [vmem:[#allocation10 + $0x40] ss:$8 sps:$4 sm:$0xff]  }
 0x165   :  { %1997 = vmatprep.subr.bf16.mxu0 %v4027_v13  ;;  %2161 = vmatprep.subr.bf16.mxu1 %v4030_v15  ;;  %v4100_v13 = vld [vmem:[#allocation10 + $0x54] ss:$8 sps:$4 sm:$0xff]   ;;  %v4098_v15 = vld [vmem:[#allocation10 + $0x50] ss:$8 sps:$4 sm:$0xff]  }
 0x168   :  { %1998 = vmatpush1.bf16.msra.mxu0 %v4025_v55  ;;  %2162 = vmatpush1.bf16.msra.mxu1 %v4028_v16  ;;  %v4103_v55 = vld [vmem:[#allocation10 + $0x64] ss:$8 sps:$4 sm:$0xff]   ;;  %v4101_v16 = vld [vmem:[#allocation10 + $0x60] ss:$8 sps:$4 sm:$0xff]  }
 0x169   :  { %1999 = vmatprep.subr.bf16.mxu0 %v4033_v17  ;;  %2163 = vmatprep.subr.bf16.mxu1 %v4036_v18  ;;  %v4106_v17 = vld [vmem:[#allocation10 + $0x74] ss:$8 sps:$4 sm:$0xff]   ;;  %v4104_v18 = vld [vmem:[#allocation10 + $0x70] ss:$8 sps:$4 sm:$0xff]  }
 0x16c   :  { %2000 = vmatpush1.bf16.msra.mxu0 %v4031_v20  ;;  %2164 = vmatpush1.bf16.msra.mxu1 %v4034_v21  ;;  %v4107_v20 = vld [vmem:[#allocation10 + $0x80] ss:$8 sps:$4 sm:$0xff]   ;;  %v4112_v21 = vld [vmem:[#allocation10 + $0x94] ss:$8 sps:$4 sm:$0xff]  }
 0x16d   :  { %2001 = vmatprep.subr.bf16.mxu0 %v4039_v22  ;;  %2165 = vmatprep.subr.bf16.mxu1 %v4042_v0  ;;  %v4110_v22 = vld [vmem:[#allocation10 + $0x90] ss:$8 sps:$4 sm:$0xff]   ;;  %v4115_v0 = vld [vmem:[#allocation10 + $0xa4] ss:$8 sps:$4 sm:$0xff]  }
 0x170   :  { %2002 = vmatpush1.bf16.msra.mxu0 %v4037_v23  ;;  %2166 = vmatpush1.bf16.msra.mxu1 %v4040_v24  ;;  %v4113_v23 = vld [vmem:[#allocation10 + $0xa0] ss:$8 sps:$4 sm:$0xff]   ;;  %v4118_v24 = vld [vmem:[#allocation10 + $0xb4] ss:$8 sps:$4 sm:$0xff]  }
 0x171   :  { %2003 = vmatprep.subr.bf16.mxu0 %v4045_v25  ;;  %2167 = vmatprep.subr.bf16.mxu1 %v4048_v26  ;;  %v4116_v25 = vld [vmem:[#allocation10 + $0xb0] ss:$8 sps:$4 sm:$0xff]   ;;  %v4121_v26 = vld [vmem:[#allocation10 + $0xc4] ss:$8 sps:$4 sm:$0xff]  }
 0x174   :  { %2004 = vmatpush1.bf16.msra.mxu0 %v4043_v27  ;;  %2168 = vmatpush1.bf16.msra.mxu1 %v4046_v28  ;;  %v4119_v27 = vld [vmem:[#allocation10 + $0xc0] ss:$8 sps:$4 sm:$0xff]   ;;  %v4124_v28 = vld [vmem:[#allocation10 + $0xd4] ss:$8 sps:$4 sm:$0xff]  }
 0x175   :  { %2005 = vmatprep.subr.bf16.mxu0 %v4051_v29  ;;  %2169 = vmatprep.subr.bf16.mxu1 %v4054_v30  ;;  %v4122_v29 = vld [vmem:[#allocation10 + $0xd0] ss:$8 sps:$4 sm:$0xff]   ;;  %v4127_v30 = vld [vmem:[#allocation10 + $0xe4] ss:$8 sps:$4 sm:$0xff]  }
 0x178   :  { %2006 = vmatpush1.bf16.msra.mxu0 %v4049_v32  ;;  %2170 = vmatpush1.bf16.msra.mxu1 %v4052_v33  ;;  %v4130_v32 = vld [vmem:[#allocation10 + $0xf4] ss:$8 sps:$4 sm:$0xff]   ;;  %v4128_v33 = vld [vmem:[#allocation10 + $0xf0] ss:$8 sps:$4 sm:$0xff]  }
 0x179   :  { %2007 = vmatprep.subr.bf16.mxu0 %v4057_v34  ;;  %2171 = vmatprep.subr.bf16.mxu1 %v4060_v35  ;;  %v4133_v34 = vld [vmem:[#allocation10 + $0x104] ss:$8 sps:$4 sm:$0xff]   ;;  %v4761_v35 = vld [vmem:[#allocation8] sm:$0xf] }
 0x17a   :  { %v580_v37 = vrot.slane %v4761_v35, %v4683_v48 }
 0x17c   :  { %2008 = vmatpush1.bf16.msra.mxu0 %v4055_v38  ;;  %2172 = vmatpush1.bf16.msra.mxu1 %v4058_v40  ;;  %v584_v38 = vrot.slane %v4761_v35, %v4680_v47  ;;  %v592_v40 = vrot.slane %v4761_v35, %v4701_v36 }
 0x17d   :  { %2009 = vmatprep.subr.bf16.mxu0 %v4063_v41  ;;  %2173 = vmatprep.subr.bf16.mxu1 %v4066_v43 }
 0x180   :  { %2010 = vmatpush1.bf16.msra.mxu0 %v4061_v44  ;;  %2174 = vmatpush1.bf16.msra.mxu1 %v4064_v45 }
 0x181   :  { %2011 = vmatprep.subr.bf16.mxu0 %v4069_v46  ;;  %2175 = vmatprep.subr.bf16.mxu1 %v4072_v49 }
 0x184   :  { %2012 = vmatpush1.bf16.msra.mxu0 %v4067_v50  ;;  %2176 = vmatpush1.bf16.msra.mxu1 %v4070_v51 }
 0x185   :  { %2013 = vmatprep.subr.bf16.mxu0 %v4075_v52  ;;  %2177 = vmatprep.subr.bf16.mxu1 %v4078_v53 }
 0x188   :  { %2014 = vmatpush1.bf16.msra.mxu0 %v4073_v59  ;;  %2178 = vmatpush1.bf16.msra.mxu1 %v4076_v60 }
 0x189   :  { %3464 = vmatprep.subr.msk.bf16.mxu0 %vm1851_vm1, %v3461_v61  ;;  %3466 = vmatprep.subr.msk.bf16.mxu1 %vm1851_vm1, %v3463_v62 }
 0x18c   :  { %2016 = vmatpush1.bf16.msra.mxu0 %v1853_v11  ;;  %2180 = vmatpush1.bf16.msra.mxu1 %v1859_v2 }
 0x18d   :  { %2625 = vmatprep.subr.bf16.mxu0 %v4085_v3 }
 0x18f   :  { %2020 = vmatmul.mubr.bf16.vlgmr.msra.gmra.mrb[0].mxu0 %v574_v4  ;;  %2184 = vmatmul.mubr.bf16.vlgmr.msra.gmra.mrb[0].mxu1 %v574_v4 }
 0x190   :  { %2626 = vmatpush1.bf16.msra.mxu0 %v4083_v5 }
 0x191   :  { %2627 = vmatprep.subr.bf16.mxu0 %v4088_v6 }
 0x194   :  { %2628 = vmatpush1.bf16.msra.mxu0 %v4086_v7  ;;  %v4131_v7 = vld [vmem:[#allocation10 + $0x100] ss:$8 sps:$4 sm:$0xff]  }
 0x195   :  { %2629 = vmatprep.subr.bf16.mxu0 %v4091_v54 }
 0x198   :  { %2630 = vmatpush1.bf16.msra.mxu0 %v4089_v14  ;;  %v4136_v14 = vld [vmem:[#allocation10 + $0x114] ss:$8 sps:$4 sm:$0xff]  }
 0x199   :  { %2631 = vmatprep.subr.bf16.mxu0 %v4094_v8 }
 0x19c   :  { %2632 = vmatpush1.bf16.msra.mxu0 %v4092_v9  ;;  %v4134_v9 = vld [vmem:[#allocation10 + $0x110] ss:$8 sps:$4 sm:$0xff]  }
 0x19d   :  { %2633 = vmatprep.subr.bf16.mxu0 %v4097_v10  ;;  %v4139_v10 = vld [vmem:[#allocation10 + $0x124] ss:$8 sps:$4 sm:$0xff]  }
 0x1a0   :  { %2634 = vmatpush1.bf16.msra.mxu0 %v4095_v12  ;;  %v4137_v12 = vld [vmem:[#allocation10 + $0x120] ss:$8 sps:$4 sm:$0xff]  }
 0x1a1   :  { %2635 = vmatprep.subr.bf16.mxu0 %v4100_v13  ;;  %v4142_v13 = vld [vmem:[#allocation10 + $0x134] ss:$8 sps:$4 sm:$0xff]  }
 0x1a4   :  { %2636 = vmatpush1.bf16.msra.mxu0 %v4098_v15  ;;  %v4140_v15 = vld [vmem:[#allocation10 + $0x130] ss:$8 sps:$4 sm:$0xff]  }
 0x1a5   :  { %2637 = vmatprep.subr.bf16.mxu0 %v4103_v55  ;;  %v4145_v55 = vld [vmem:[#allocation10 + $0x144] ss:$8 sps:$4 sm:$0xff]  }
 0x1a8   :  { %2638 = vmatpush1.bf16.msra.mxu0 %v4101_v16  ;;  %v4143_v16 = vld [vmem:[#allocation10 + $0x140] ss:$8 sps:$4 sm:$0xff]  }
 0x1a9   :  { %2639 = vmatprep.subr.bf16.mxu0 %v4106_v17  ;;  %v4148_v17 = vld [vmem:[#allocation10 + $0x154] ss:$8 sps:$4 sm:$0xff]  }
 0x1ac   :  { %2640 = vmatpush1.bf16.msra.mxu0 %v4104_v18  ;;  %v588_v18 = vrot.slane %v4761_v35, %v4704_v39  ;;  %v4158_v39 = vld [vmem:[#allocation10 + $0x190] ss:$8 sps:$4 sm:$0xff]   ;;  %v4167_v35 = vld [vmem:[#allocation10 + $0x1c0] ss:$8 sps:$4 sm:$0xff]  }
 0x1ad   :  { %2641 = vmatprep.subr.bf16.mxu0 %v4109_v19  ;;  %v4146_v19 = vld [vmem:[#allocation10 + $0x150] ss:$8 sps:$4 sm:$0xff]  }
 0x1b0   :  { %2642 = vmatpush1.bf16.msra.mxu0 %v4107_v20  ;;  %v4151_v20 = vld [vmem:[#allocation10 + $0x164] ss:$8 sps:$4 sm:$0xff]  }
 0x1b1   :  { %2643 = vmatprep.subr.bf16.mxu0 %v4112_v21 }
 0x1b4   :  { %2644 = vmatpush1.bf16.msra.mxu0 %v4110_v22  ;;  %v4149_v22 = vld [vmem:[#allocation10 + $0x160] ss:$8 sps:$4 sm:$0xff]  }
 0x1b5   :  { %2645 = vmatprep.subr.bf16.mxu0 %v4115_v0  ;;  %v4154_v0 = vld [vmem:[#allocation10 + $0x174] ss:$8 sps:$4 sm:$0xff]  }
 0x1b8   :  { %2646 = vmatpush1.bf16.msra.mxu0 %v4113_v23 }
 0x1b9   :  { %2647 = vmatprep.subr.bf16.mxu0 %v4118_v24  ;;  %v4152_v24 = vld [vmem:[#allocation10 + $0x170] ss:$8 sps:$4 sm:$0xff]  }
 0x1bc   :  { %2648 = vmatpush1.bf16.msra.mxu0 %v4116_v25  ;;  %v4157_v25 = vld [vmem:[#allocation10 + $0x184] ss:$8 sps:$4 sm:$0xff]  }
 0x1bd   :  { %2649 = vmatprep.subr.bf16.mxu0 %v4121_v26  ;;  %v4155_v26 = vld [vmem:[#allocation10 + $0x180] ss:$8 sps:$4 sm:$0xff]  }
 0x1c0   :  { %2650 = vmatpush1.bf16.msra.mxu0 %v4119_v27  ;;  %v4160_v27 = vld [vmem:[#allocation10 + $0x194] ss:$8 sps:$4 sm:$0xff]  }
 0x1c1   :  { %2651 = vmatprep.subr.bf16.mxu0 %v4124_v28  ;;  %v4163_v28 = vld [vmem:[#allocation10 + $0x1a4] ss:$8 sps:$4 sm:$0xff]  }
 0x1c4   :  { %2652 = vmatpush1.bf16.msra.mxu0 %v4122_v29  ;;  %v4161_v29 = vld [vmem:[#allocation10 + $0x1a0] ss:$8 sps:$4 sm:$0xff]  }
 0x1c5   :  { %2653 = vmatprep.subr.bf16.mxu0 %v4127_v30 }
 0x1c8   :  { %2654 = vmatpush1.bf16.msra.mxu0 %v4125_v31  ;;  %v4166_v31 = vld [vmem:[#allocation10 + $0x1b4] ss:$8 sps:$4 sm:$0xff]  }
 0x1c9   :  { %2655 = vmatprep.subr.bf16.mxu0 %v4130_v32 }
 0x1cc   :  { %2656 = vmatpush1.bf16.msra.mxu0 %v4128_v33  ;;  %v4164_v33 = vld [vmem:[#allocation10 + $0x1b0] ss:$8 sps:$4 sm:$0xff]  }
 0x1cd   :  { %2666 = vmatprep.subr.bf16.mxu0 %v4133_v34  ;;  %v4169_v34 = vld [vmem:[#allocation10 + $0x1c4] ss:$8 sps:$4 sm:$0xff]  }
 0x262   :  { %v2021_v41 = vpop.f32.mrb[0].mxu0  ;;  %v2185_v43 = vpop.f32.mrb[0].mxu1 }
 0x263   :  { %v3658_v44 = vadd.f32 %v2021_v41, %v580_v37  ;;  %v2023_v45 = vpop.f32.mrb[1].mxu0  ;;  %v2187_v46 = vpop.f32.mrb[1].mxu1  ;;  %v3660_v21 = vadd.f32 %v2185_v43, %v588_v18  ;;  %v4172_v37 = vld [vmem:[#allocation10 + $0x1d4] ss:$8 sps:$4 sm:$0xff]   ;;  %v4173_v43 = vld [vmem:[#allocation10 + $0x1e0] ss:$8 sps:$4 sm:$0xff]  }
 0x264   :  { %v3659_v49 = vadd.f32 %v2023_v45, %v584_v38  ;;  %v3661_v50 = vadd.f32 %v2187_v46, %v592_v40  ;;  %v2025_v51 = vpop.f32.mrb[2].mxu0  ;;  %v2189_v52 = vpop.f32.mrb[2].mxu1  ;;  %v4170_v38 = vld [vmem:[#allocation10 + $0x1d0] ss:$8 sps:$4 sm:$0xff]   ;;  %v4175_v40 = vld [vmem:[#allocation10 + $0x1e4] ss:$8 sps:$4 sm:$0xff]  }
 0x265   :  { %v3468_v53 = vmul.f32 -1.442695, %v3658_v44  ;;  %v2026_v56 = vpop.f32.mrb[3].mxu0  ;;  %v2190_v57 = vpop.f32.mrb[3].mxu1  ;;  %v3470_v23 = vmul.f32 -1.442695, %v3660_v21 }
 0x266   :  { %v3469_v58 = vmul.f32 -1.442695, %v3659_v49  ;;  %v3471_v59 = vmul.f32 -1.442695, %v3661_v50  ;;  %v2254_v41 = vld [vmem:[#allocation10 + $0x1f0] sm:$0x33] }
 0x267   :  { %4240 = vpow2.f32 %v3468_v53  ;;  %v3534_v45 = vcombine.low %v2254_v41, %v2254_v41  ;;  %v4178_v52 = vld [vmem:[%s4908_s7 + $0x40] sm:$0xff]   ;;  %v4180_v56 = vld [vmem:[%s4908_s7 + $0x48] sm:$0xff]  }
 0x268   :  { %4242 = vpow2.f32 %v3469_v58  ;;  %v4179_v53 = vld [vmem:[%s4908_s7] sm:$0xff]   ;;  %3579 = vmatprep.subr.bf16.mxu1 %v4178_v52  ;;  %v4181_v57 = vld [vmem:[%s4908_s7 + $0x8] sm:$0xff]   ;;  %v4182_v58 = vld [vmem:[%s4908_s7 + $0x50] sm:$0xff]  }
 0x269   :  { %4244 = vpow2.f32 %v3471_v59  ;;  %3580 = vmatpush3.bf16.msra.mxu1 %v4179_v53  ;;  %v4183_v59 = vld [vmem:[%s4908_s7 + $0x10] sm:$0xff]  }
 0x26a   :  { %3581 = vmatprep.subr.bf16.mxu1 %v4180_v56 }
 0x26d   :  { %3582 = vmatpush3.bf16.msra.mxu1 %v4181_v57 }
 0x26e   :  { %3583 = vmatprep.subr.bf16.mxu1 %v4182_v58 }
 0x271   :  { %v4241_v60 = vpop.eup %4240  ;;  %3584 = vmatpush3.bf16.msra.mxu1 %v4183_v59 }
 0x272   :  { %v2268_v61 = vadd.f32 1.0, %v4241_v60  ;;  %v4243_v36 = vpop.eup %4242  ;;  %v4184_v60 = vld [vmem:[%s4908_s7 + $0x58] sm:$0xff]  }
 0x273   :  { %v4245_v62 = vpop.eup %4244  ;;  %v2269_v63 = vadd.f32 1.0, %v4243_v36  ;;  %3585 = vmatprep.subr.bf16.mxu1 %v4184_v60  ;;  %v4186_v36 = vld [vmem:[%s4908_s7 + $0x60] sm:$0xff]  }
 0x274   :  { %4246 = vrcp.f32 %v2268_v61  ;;  %v2271_v42 = vadd.f32 1.0, %v4245_v62  ;;  %v4185_v61 = vld [vmem:[%s4908_s7 + $0x18] sm:$0xff]   ;;  %v4187_v62 = vld [vmem:[%s4908_s7 + $0x20] sm:$0xff]  }
 0x275   :  { %4248 = vrcp.f32 %v2269_v63  ;;  %3586 = vmatpush3.bf16.msra.mxu1 %v4185_v61  ;;  %v4188_v63 = vld [vmem:[%s4908_s7 + $0x68] sm:$0xff]  }
 0x276   :  { %4250 = vrcp.f32 %v2271_v42  ;;  %3587 = vmatprep.subr.bf16.mxu1 %v4186_v36  ;;  %v4189_v42 = vld [vmem:[%s4908_s7 + $0x28] sm:$0xff]  }
 0x277   :  { %4252 = vpow2.f32 %v3470_v23  ;;  %v4195_v23 = vld [vmem:[%s4910_s9 + $0x8] sm:$0xff]  }
 0x279   :  { %3588 = vmatpush3.bf16.msra.mxu1 %v4187_v62 }
 0x27a   :  { %3589 = vmatprep.subr.bf16.mxu1 %v4188_v63 }
 0x27d   :  { %3590 = vmatpush3.bf16.msra.mxu1 %v4189_v42  ;;  %v4206_v42 = vld [vmem:[%s4914_s13] sm:$0xff]  }
 0x27e   :  { %v4247_v1 = vpop.eup %4246 }
 0x27f   :  { %v4249_v11 = vpop.eup %4248  ;;  %v2280_v2 = vmul.f32 %v4247_v1, %v3658_v44  ;;  %v3535_v44 = vcombine.high %v2254_v41, %v2254_v41  ;;  %v4190_v1 = vld [vmem:[%s4908_s7 + $0x70] sm:$0xff]  }
 0x280   :  { %v4251_v3 = vpop.eup %4250  ;;  %v2281_v4 = vmul.f32 %v4249_v11, %v3659_v49  ;;  %v4191_v11 = vld [vmem:[%s4908_s7 + $0x30] sm:$0xff]   ;;  %3591 = vmatprep.subr.bf16.mxu1 %v4190_v1  ;;  %v4207_v1 = vld [vmem:[%s4914_s13 + $0x8] sm:$0xff]   ;;  %s4500_s13 = smov [#allocation16]  }
 0x281   :  { %v2283_v5 = vmul.f32 %v4251_v3, %v3661_v50  ;;  %v2284_v54 = vpack.c.bf16 %v2280_v2, %v2280_v2  ;;  %v4253_v30 = vpop.eup %4252  ;;  %v2620_v50 = vsel %vm2618_vm3, %v3534_v45, 0  ;;  %3592 = vmatpush3.bf16.msra.mxu1 %v4191_v11  ;;  %v4192_v2 = vld [vmem:[%s4908_s7 + $0x78] sm:$0xff]   ;;  %v4202_v45 = vld [vmem:[%s4912_s11] sm:$0xff]   ;;  %s3191_s2 = sshll.u32 %s4500_s13, 4  ;;  %s3192_s2 = int_to_ptr.vmem [resolvable:$true] %s3191_s2 }
 0x282   :  { %v2285_v6 = vpack.c.bf16 %v2281_v4, %v2281_v4  ;;  %v2270_v32 = vadd.f32 1.0, %v4253_v30  ;;  %v4193_v3 = vld [vmem:[%s4908_s7 + $0x38] sm:$0xff]   ;;  %3593 = vmatprep.subr.bf16.mxu1 %v4192_v2  ;;  %v3540_v30 = vld [vmem:[%s4909_s8] ss:$0 sm:$0xff]  ;;  %s4452_s1 = scalar_lea.vmem %s3192_s2, 128  ;;  %p4457_p9 = scmp.lt.s32.totalorder %s3192_s2, %s3192_s2 }
 0x283   :  { %v2287_v8 = vpack.c.bf16 %v2283_v5, %v2283_v5  ;;  %v2255_v4 = vld [vmem:[#allocation11] sm:$0x3]  ;;  %v3568_v11 = vld [vmem:[#allocation14] ss:$0 sm:$0xff]  ;;  %p4453_p8 = scmp.ne.s32.totalorder %s3192_s2, %s4452_s1  ;;  %p4458_p10 = scmp.lt.s32.totalorder %s4452_s1, %s4452_s1 }
 0x284   :  { %2657 = vmatprep.mubr.bf16.mxu0 %v2285_v6  ;;  %4254 = vrcp.f32 %v2270_v32  ;;  %v2292_v5 = vrot.slane %v2255_v4, %v4683_v48  ;;  %v2296_v6 = vrot.slane %v2255_v4, %v4680_v47 }
 0x285   :  { %2658 = vmatmul.mubr.bf16.vlgmr.msra.gmra.mrb[4].mxu0 %v2284_v54  ;;  %3594 = vmatpush3.bf16.msra.mxu1 %v4193_v3  ;;  %p4459_p11 = por %p4458_p10, %p4457_p9 }
 0x286   :  { %2667 = vmatpush1.bf16.msra.mxu0 %v4131_v7  ;;  %3537 = vmatprep.mubr.msk.bf16.mxu0 %vm2614_vm2, %v2287_v8 }
 0x287   :  { %2668 = vmatprep.subr.bf16.mxu0 %v4136_v14  ;;  %p4460_p12 = pnand %p4459_p11, %p4453_p8 }
 0x28a   :  { %2669 = vmatpush1.bf16.msra.mxu0 %v4134_v9 }
 0x28b   :  { %2670 = vmatprep.subr.bf16.mxu0 %v4139_v10 }
 0x28e   :  { %2671 = vmatpush1.bf16.msra.mxu0 %v4137_v12  ;;  %v4255_v46 = vpop.eup %4254 }
 0x28f   :  { %2672 = vmatprep.subr.bf16.mxu0 %v4142_v13  ;;  %v2282_v49 = vmul.f32 %v4255_v46, %v3660_v21  ;;  %v4203_v46 = vld [vmem:[%s4912_s11 + $0x8] sm:$0xff]  }
 0x291   :  { %v2286_v51 = vpack.c.bf16 %v2282_v49, %v2282_v49  ;;  %v4204_v49 = vld [vmem:[%s4912_s11 + $0x10] sm:$0xff]  }
 0x292   :  { %2673 = vmatpush1.bf16.msra.mxu0 %v4140_v15 }
 0x293   :  { %2674 = vmatprep.subr.bf16.mxu0 %v4145_v55 }
 0x296   :  { %2675 = vmatpush1.bf16.msra.mxu0 %v4143_v16 }
 0x297   :  { %2676 = vmatprep.subr.bf16.mxu0 %v4148_v17 }
 0x29a   :  { %2677 = vmatpush1.bf16.msra.mxu0 %v4146_v19 }
 0x29b   :  { %2678 = vmatprep.subr.bf16.mxu0 %v4151_v20 }
 0x29e   :  { %2679 = vmatpush1.bf16.msra.mxu0 %v4149_v22  ;;  %v4194_v22 = vld [vmem:[%s4910_s9] sm:$0xff]  }
 0x29f   :  { %2680 = vmatprep.subr.bf16.mxu0 %v4154_v0  ;;  %v4498_v0 = vmov 0.0  }
 0x2a0   :  { %3618 = vmatprep.subr.bf16.mxu1 %v4498_v0 }
 0x2a2   :  { %2681 = vmatpush1.bf16.msra.mxu0 %v4152_v24  ;;  %v4196_v24 = vld [vmem:[%s4910_s9 + $0x10] sm:$0xff]  }
 0x2a3   :  { %2682 = vmatprep.subr.bf16.mxu0 %v4157_v25  ;;  %v4197_v25 = vld [vmem:[%s4910_s9 + $0x18] sm:$0xff]  }
 0x2a6   :  { %2683 = vmatpush1.bf16.msra.mxu0 %v4155_v26  ;;  %v4198_v26 = vld [vmem:[%s4910_s9 + $0x20] sm:$0xff]  }
 0x2a7   :  { %2684 = vmatprep.subr.bf16.mxu0 %v4160_v27  ;;  %v4199_v27 = vld [vmem:[%s4910_s9 + $0x28] sm:$0xff]  }
 0x2aa   :  { %2685 = vmatpush1.bf16.msra.mxu0 %v4158_v39  ;;  %v4200_v39 = vld [vmem:[%s4910_s9 + $0x30] sm:$0xff]  }
 0x2ab   :  { %2686 = vmatprep.subr.bf16.mxu0 %v4163_v28  ;;  %v4201_v28 = vld [vmem:[%s4910_s9 + $0x38] sm:$0xff]  }
 0x2ae   :  { %2687 = vmatpush1.bf16.msra.mxu0 %v4161_v29 }
 0x2af   :  { %2688 = vmatprep.subr.bf16.mxu0 %v4166_v31 }
 0x2b2   :  { %2689 = vmatpush1.bf16.msra.mxu0 %v4164_v33 }
 0x2b3   :  { %2690 = vmatprep.subr.bf16.mxu0 %v4169_v34 }
 0x2b6   :  { %2691 = vmatpush1.bf16.msra.mxu0 %v4167_v35 }
 0x2b7   :  { %2692 = vmatprep.subr.bf16.mxu0 %v4172_v37 }
 0x2ba   :  { %2693 = vmatpush1.bf16.msra.mxu0 %v4170_v38 }
 0x2bb   :  { %2694 = vmatprep.subr.bf16.mxu0 %v4175_v40 }
 0x2be   :  { %2695 = vmatpush1.bf16.msra.mxu0 %v4173_v43 }
 0x2bf   :  { %3536 = vmatprep.subr.msk.bf16.mxu0 %vm2618_vm3, %v3535_v44 }
 0x2c2   :  { %2697 = vmatpush1.bf16.msra.mxu0 %v2620_v50  ;;  %v4205_v50 = vld [vmem:[%s4912_s11 + $0x18] sm:$0xff]  }
 0x2c5   :  { %2699 = vmatmul.mubr.bf16.vlgmr.msra.gmra.mrb[4].mxu0 %v2286_v51  ;;  %v3558_v51 = vld [vmem:[#allocation13] ss:$0 sm:$0xff] }
 0x398   :  { %v2700_v7 = vpop.f32.mrb[4].mxu0 }
 0x399   :  { %v3662_v54 = vadd.f32 %v2700_v7, %v2292_v5  ;;  %v2702_v14 = vpop.f32.mrb[5].mxu0 }
 0x39a   :  { %v3663_v8 = vadd.f32 %v2702_v14, %v2296_v6  ;;  %v2704_v9 = vpop.f32.mrb[6].mxu0 }
 0x39b   :  { %v3538_v10 = vmul.f32 -1.442695, %v3662_v54  ;;  %v2705_v12 = vpop.f32.mrb[7].mxu0 }
 0x39c   :  { %v3539_v13 = vmul.f32 -1.442695, %v3663_v8  ;;  %v3575_v12 = vld [vmem:[%s4915_s14] ss:$0 sm:$0xff] }
 0x39d   :  { %4256 = vpow2.f32 %v3538_v10 }
 0x39e   :  { %4258 = vpow2.f32 %v3539_v13 }
 0x3a7   :  { %v4257_v15 = vpop.eup %4256 }
 0x3a8   :  { %v4259_v55 = vpop.eup %4258  ;;  %v2746_v16 = vadd.f32 1.0, %v4257_v15 }
 0x3a9   :  { %v2747_v17 = vadd.f32 1.0, %v4259_v55 }
 0x3aa   :  { %4260 = vrcp.f32 %v2746_v16 }
 0x3ab   :  { %4262 = vrcp.f32 %v2747_v17 }
 0x3b4   :  { %v4261_v18 = vpop.eup %4260 }
 0x3b5   :  { %v4263_v48 = vpop.eup %4262  ;;  %v2752_v19 = vmul.f32 %v4261_v18, %v3662_v54 }
 0x3b6   :  { %v2753_v47 = vmul.f32 %v4263_v48, %v3663_v8 }
 0x3b7   :  { %v2754_v21 = vpack.c.bf16 %v2752_v19, %v2752_v19 }
 0x3b8   :  { %v2755_v20 = vpack.c.bf16 %v2753_v47, %v2753_v47 }
 0x3ba   :  { %2890 = vmatprep.mubr.bf16.mxu1 %v2755_v20 }
 0x3bb   :  { %2891 = vmatmul.mubr.bf16.vlgmr.msra.gmra.mrb[4].mxu1 %v2754_v21 }
 0x3bc   :  { %3619 = vmatpush3.bf16.msra.mxu1 %v4194_v22  ;;  %3634 = vmatprep.mubr.msk.bf16.mxu1 %vm4499_vm4, %v4498_v0 }
 0x3bd   :  { %3620 = vmatprep.subr.bf16.mxu1 %v4498_v0 }
 0x3c0   :  { %3621 = vmatpush3.bf16.msra.mxu1 %v4195_v23 }
 0x3c1   :  { %3622 = vmatprep.subr.bf16.mxu1 %v4498_v0 }
 0x3c4   :  { %3623 = vmatpush3.bf16.msra.mxu1 %v4196_v24 }
 0x3c5   :  { %3624 = vmatprep.subr.bf16.mxu1 %v4498_v0 }
 0x3c8   :  { %3625 = vmatpush3.bf16.msra.mxu1 %v4197_v25 }
 0x3c9   :  { %3626 = vmatprep.subr.bf16.mxu1 %v4498_v0 }
 0x3cc   :  { %3627 = vmatpush3.bf16.msra.mxu1 %v4198_v26 }
 0x3cd   :  { %3628 = vmatprep.subr.bf16.mxu1 %v4498_v0 }
 0x3d0   :  { %3629 = vmatpush3.bf16.msra.mxu1 %v4199_v27 }
 0x3d1   :  { %3630 = vmatprep.subr.bf16.mxu1 %v4498_v0 }
 0x3d4   :  { %3631 = vmatpush3.bf16.msra.mxu1 %v4200_v39 }
 0x3d5   :  { %3632 = vmatprep.subr.bf16.mxu1 %v4498_v0 }
 0x3d8   :  { %3633 = vmatpush3.bf16.msra.mxu1 %v4201_v28 }
 0x3d9   :  { %3638 = vmatprep.subr.bf16.mxu1 %v4498_v0 }
 0x48e   :  { %v3595_v29 = vpop.f32.mrb[4].mxu1 }
 0x48f   :  { %v3596_v31 = vpop.f32.mrb[5].mxu1 }
 0x490   :  { %v3597_v32 = vadd.f32 %v3596_v31, %v3595_v29  ;;  %v3598_v33 = vpop.f32.mrb[6].mxu1 }
 0x491   :  { %v3599_v34 = vpop.f32.mrb[7].mxu1 }
 0x492   :  { %v2893_v35 = vadd.f32 %v3597_v32, %v3540_v30 }
 0x494   :  { %v3557_v37 = vmul.f32 -1.442695, %v2893_v35 }
 0x496   :  { %4264 = vpow2.f32 %v3557_v37 }
 0x4a0   :  { %v4265_v38 = vpop.eup %4264 }
 0x4a1   :  { %v2918_v40 = vadd.f32 1.0, %v4265_v38 }
 0x4a3   :  { %4266 = vrcp.f32 %v2918_v40 }
 0x4ad   :  { %v4267_v41 = vpop.eup %4266 }
 0x4ae   :  { %v2921_v43 = vmul.f32 %v4267_v41, %v2893_v35 }
 0x4b0   :  { %v2922_v44 = vpack.c.bf16 %v2921_v43, %v2921_v43 }
 0x4b2   :  { %3635 = vmatmul.mubr.bf16.vlgmr.msra.gmra.mrb[8].mxu1 %v2922_v44 }
 0x4b3   :  { %3646 = vmatprep.mubr.msk.bf16.mxu1 %vm4499_vm4, %v4498_v0  ;;  %3639 = vmatpush3.bf16.msra.mxu1 %v4202_v45 }
 0x4b4   :  { %3640 = vmatprep.subr.bf16.mxu1 %v4498_v0 }
 0x4b7   :  { %3641 = vmatpush3.bf16.msra.mxu1 %v4203_v46 }
 0x4b8   :  { %3642 = vmatprep.subr.bf16.mxu1 %v4498_v0 }
 0x4bb   :  { %3643 = vmatpush3.bf16.msra.mxu1 %v4204_v49 }
 0x4bc   :  { %3644 = vmatprep.subr.bf16.mxu1 %v4498_v0 }
 0x4bf   :  { %3645 = vmatpush3.bf16.msra.mxu1 %v4205_v50 }
 0x4c0   :  { %3650 = vmatprep.subr.bf16.mxu1 %v4498_v0 }
 0x585   :  { %v3011_v52 = vpop.f32.mrb[8].mxu1 }
 0x586   :  { %v3012_v53 = vadd.f32 %v3558_v51, %v3011_v52  ;;  %v3636_v56 = vpop.f32.mrb[9].mxu1 }
 0x587   :  { %v3014_v57 = vpop.f32.mrb[10].mxu1 }
 0x588   :  { %v3567_v58 = vmul.f32 -1.442695, %v3012_v53  ;;  %v3637_v59 = vpop.f32.mrb[11].mxu1 }
 0x58a   :  { %4268 = vpow2.f32 %v3567_v58 }
 0x594   :  { %v4269_v60 = vpop.eup %4268 }
 0x595   :  { %v3029_v61 = vadd.f32 1.0, %v4269_v60 }
 0x597   :  { %4270 = vrcp.f32 %v3029_v61 }
 0x5a1   :  { %v4271_v36 = vpop.eup %4270 }
 0x5a2   :  { %v3032_v62 = vmul.f32 %v4271_v36, %v3012_v53 }
 0x5a4   :  { %v3033_v63 = vpack.c.bf16 %v3032_v62, %v3032_v62 }
 0x5a6   :  { %3647 = vmatmul.mubr.msk.bf16.vlgmr.msra.gmra.mrb[12].mxu1 %vm3064_vm5, %v3033_v63 }
 0x5a7   :  { %3654 = vmatprep.mubr.msk.bf16.mxu1 %vm4499_vm4, %v4498_v0  ;;  %3651 = vmatpush3.bf16.msra.mxu1 %v4206_v42 }
 0x5a8   :  { %3652 = vmatprep.subr.bf16.mxu1 %v4498_v0 }
 0x5ab   :  { %3653 = vmatpush3.bf16.msra.mxu1 %v4207_v1 }
 0x679   :  { %v3102_v2 = vpop.f32.mrb[12].mxu1 }
 0x67a   :  { %v3103_v3 = vadd.f32 %v3568_v11, %v3102_v2  ;;  %v3648_v4 = vpop.f32.mrb[13].mxu1 }
 0x67b   :  { %v3105_v5 = vpop.f32.mrb[14].mxu1 }
 0x67c   :  { %v3574_v6 = vmul.f32 -1.442695, %v3103_v3  ;;  %v3649_v7 = vpop.f32.mrb[15].mxu1 }
 0x67e   :  { %4272 = vpow2.f32 %v3574_v6 }
 0x688   :  { %v4273_v54 = vpop.eup %4272 }
 0x689   :  { %v3116_v14 = vadd.f32 1.0, %v4273_v54 }
 0x68b   :  { %4274 = vrcp.f32 %v3116_v14 }
 0x695   :  { %v4275_v8 = vpop.eup %4274 }
 0x696   :  { %v3119_v9 = vmul.f32 %v4275_v8, %v3103_v3 }
 0x698   :  { %v3120_v10 = vpack.c.bf16 %v3119_v9, %v3119_v9 }
 0x69a   :  { %3655 = vmatmul.mubr.msk.bf16.vlgmr.msra.gmra.mrb[16].mxu1 %vm3139_vm6, %v3120_v10 }
 0x76d   :  { %v3177_v13 = vpop.f32.mrb[16].mxu1 }
 0x76e   :  { %v3178_v15 = vadd.f32 %v3575_v12, %v3177_v13  ;;  %v3656_v55 = vpop.f32.mrb[17].mxu1 }
 0x76f   :  { %v3180_v16 = vpop.f32.mrb[18].mxu1 }
 0x770   :  { %v3657_v17 = vpop.f32.mrb[19].mxu1  ;;  %3184 = vst.msk [vmem:[#allocation16] sm:$0xff] %vm3183_vm7, %v3178_v15 }
 0x771   :  { %4463 = shalt.err (!%p4460_p12)
}
 0x772   :  { %s4464_s14 = scalar_lea.hbm %s4916_s15, 128 }
 0x773   :  { %p4465_p13 = scmp.ne.s32.totalorder %s4916_s15, %s4464_s14  ;;  %p4468_p0 = scmp.lt.u32.totalorder %s4464_s14, %s4916_s15 }
 0x775   :  { %p4470_p1 = pnand %p4468_p0, %p4465_p13 }
 0x777   :  { %4473 = shalt.err (!%p4470_p1)
}
 0x778   :  { %3194 = dma.vmem_to_hbm [thread:$0]  %s3192_s2, 128, %s4916_s15, [#allocation4]  }
 0x779   :  { %4484 = dma.done.wait [#allocation4], 128  }
 0x77a   :  { %4485 = vsyncadd [#allocation4], 4294967168 }
 0x77b   :  { %3198 = vsyncpa [#allocation3], 1 }
 0x77c   :  { %3199 = vsyncpa [#allocation6], 1 }
 0x77d   :  { %3200 = vsyncpa [#allocation9], 1 }
 0x77e   :  { %3201 = vsyncpa [#allocation12], 1 }
 0x77f   :  { %3202 = vsyncpa [#allocation15], 1 }
 0x780   :  { %3203 = vsyncpa [#allocation4], 1 }

</bundles_post_ra>
